<compile_context>
chip_gen: v7x
topology: tpu7x:2x2x1
jax: 0.10.0
libtpu: 0.0.40
codegen_flags: <defaults>
</compile_context>

<pallas_src>
import jax
import jax.numpy as jnp
from jax.experimental import pallas as pl
from jax.experimental.pallas import tpu as pltpu


def _make_rdb_kernel(n_layers, growth, H, W, C):
    c_final = C + n_layers * growth

    def kernel(x_ref, *refs):
        dense_w_refs = refs[:n_layers]            # each (9*cin_i, growth) bf16
        w1_ref = refs[n_layers]                   # (C, c_final) bf16, scale folded in
        out_ref = refs[n_layers + 1]              # (1, C, H*W) f32
        feat_ref = refs[n_layers + 2]             # VMEM (H+2, W+2, c_final) f32

        x_cp = x_ref[0]                           # (C, H*W) f32, lane-dense

        # Zero only the 1-pixel border (== SAME padding).  The interior is fully
        # overwritten below, so no full-buffer memset is needed.
        feat_ref[0:1, :, :] = jnp.zeros((1, W + 2, c_final), jnp.float32)
        feat_ref[H + 1:H + 2, :, :] = jnp.zeros((1, W + 2, c_final), jnp.float32)
        feat_ref[:, 0:1, :] = jnp.zeros((H + 2, 1, c_final), jnp.float32)
        feat_ref[:, W + 1:W + 2, :] = jnp.zeros((H + 2, 1, c_final), jnp.float32)

        # Residual input into the first C channels of the interior (HWC order).
        x_hwc = jnp.transpose(x_cp, (1, 0)).reshape(H, W, C)
        feat_ref[1:H + 1, 1:W + 1, 0:C] = x_hwc

        off = C
        for li in range(n_layers):
            cin = C + li * growth
            # im2col: concatenate the 9 shifted taps of the current channel
            # prefix -> one (H*W, 9*cin) bf16 matrix, one K=9*cin MXU matmul.
            fb = feat_ref[:, :, 0:cin].astype(jnp.bfloat16)       # (H+2, W+2, cin)
            taps = [fb[dy:dy + H, dx:dx + W, :]
                    for dy in range(3) for dx in range(3)]
            tap_mat = jnp.concatenate(taps, axis=-1).reshape(H * W, 9 * cin)
            acc = jnp.dot(tap_mat, dense_w_refs[li][...],
                          preferred_element_type=jnp.float32)      # (H*W, growth)
            out = jnp.maximum(acc, 0.0)
            feat_ref[1:H + 1, 1:W + 1, off:off + growth] = out.reshape(H, W, growth)
            off += growth

        # 1x1 conv in the transposed orientation: (C, Cf) @ (Cf, H*W) -> (C, H*W).
        # MXU friendly (M = C) and already in the lane-dense NCHW output layout,
        # so the residual add and the final store are unmasked.
        fall = feat_ref[1:H + 1, 1:W + 1, :].reshape(H * W, c_final)
        fall_t = jnp.transpose(fall, (1, 0)).astype(jnp.bfloat16)   # (Cf, H*W)
        y = jnp.dot(w1_ref[...], fall_t, preferred_element_type=jnp.float32)
        out_ref[0] = y + x_cp                      # scale already folded into w1

    return kernel


def rdb_pallas(x_nchw, dense_ws_oihw, w1x1_oihw, scale):
    """x_nchw: (N, C, H, W).  dense_ws_oihw[i]: (growth, cin_i, 3, 3) PyTorch OIHW.
    w1x1_oihw: (C, Cfinal, 1, 1).  Returns (N, C, H, W)."""
    N, C, H, W = x_nchw.shape
    n_layers = len(dense_ws_oihw)
    growth = dense_ws_oihw[0].shape[0]
    c_final = C + n_layers * growth

    # Lane-dense NCHW I/O: just flatten the spatial dims (free reshape, no transpose).
    x_flat = x_nchw.reshape(N, C, H * W).astype(jnp.float32)

    # OIHW (growth, cin, 3, 3) -> HWIO -> flattened (9*cin, growth) bf16 slabs,
    # matching the (dy, dx, channel) order of the in-kernel tap concatenation.
    dense_ws = []
    for w in dense_ws_oihw:
        cin = w.shape[1]
        w_hwio = jnp.transpose(w, (2, 3, 1, 0)).astype(jnp.float32)   # (3,3,cin,growth)
        dense_ws.append(w_hwio.reshape(9 * cin, growth).astype(jnp.bfloat16))

    # 1x1 conv weight kept as (C, c_final); fold `scale` in f32 before the bf16 cast.
    w1 = (w1x1_oihw[:, :, 0, 0].astype(jnp.float32) * scale).astype(jnp.bfloat16)

    in_specs = [pl.BlockSpec((1, C, H * W), lambda n: (n, 0, 0))]
    for w in dense_ws:
        in_specs.append(pl.BlockSpec(w.shape, lambda n: (0, 0)))
    in_specs.append(pl.BlockSpec(w1.shape, lambda n: (0, 0)))

    kernel = _make_rdb_kernel(n_layers, growth, H, W, C)

    out_flat = pl.pallas_call(
        kernel,
        out_shape=jax.ShapeDtypeStruct((N, C, H * W), jnp.float32),
        grid=(N,),
        in_specs=in_specs,
        out_specs=pl.BlockSpec((1, C, H * W), lambda n: (n, 0, 0)),
        scratch_shapes=[
            pltpu.VMEM((H + 2, W + 2, c_final), jnp.float32),   # padded concat buffer
        ],
        compiler_params=pltpu.CompilerParams(
            dimension_semantics=("parallel",),
            vmem_limit_bytes=64 * 1024 * 1024),
    )(x_flat, *dense_ws, w1)

    return out_flat.reshape(N, C, H, W)


def rdb_reference(x_nchw, dense_ws_oihw, w1x1_oihw, scale):
    """Pure-JAX fp32 reference matching the PyTorch forward (NCHW)."""
    cur = x_nchw
    for w in dense_ws_oihw:
        out = jax.lax.conv_general_dilated(
            cur, w, (1, 1), "SAME",
            dimension_numbers=("NCHW", "OIHW", "NCHW"))
        out = jnp.maximum(out, 0.0)
        cur = jnp.concatenate([cur, out], axis=1)
    y = jax.lax.conv_general_dilated(
        cur, w1x1_oihw, (1, 1), "SAME",
        dimension_numbers=("NCHW", "OIHW", "NCHW"))
    return y * scale + x_nchw


if __name__ == "__main__":
    # Small synthetic config (matching RDB(nChannels, nDenselayer, growthRate, scale)).
    N, C, H, W = 2, 8, 16, 16
    n_dense, growth, scale = 3, 8, 0.5

    key = jax.random.PRNGKey(0)
    k_x, *k_ws = jax.random.split(key, 2 + n_dense)

    x = jax.random.normal(k_x, (N, C, H, W), dtype=jnp.float32)

    dense_ws = []
    cin = C
    for i in range(n_dense):
        w = 0.1 * jax.random.normal(k_ws[i], (growth, cin, 3, 3), dtype=jnp.float32)
        dense_ws.append(w)
        cin += growth
    w1x1 = 0.1 * jax.random.normal(k_ws[n_dense], (C, cin, 1, 1), dtype=jnp.float32)

    y_pallas = jax.block_until_ready(rdb_pallas(x, dense_ws, w1x1, scale))
    y_ref = jax.block_until_ready(rdb_reference(x, dense_ws, w1x1, scale))

    assert y_pallas.shape == (N, C, H, W)
    max_err = float(jnp.max(jnp.abs(y_pallas - y_ref)))
    # bf16 matmul inputs (fp32 accumulation) -> relaxed tolerance vs fp32 reference.
    assert jnp.allclose(y_pallas, y_ref, atol=5e-2, rtol=5e-2), max_err
    print("KERNEL_OK")
</pallas_src>

<mosaic_0001>
module attributes {stable_mosaic.version = 11 : i64} {
  func.func @kernel(%arg0: i32, %arg1: memref<1x8x256xf32, #tpu.memory_space<vmem>>, %arg2: memref<72x8xbf16, #tpu.memory_space<vmem>>, %arg3: memref<144x8xbf16, #tpu.memory_space<vmem>>, %arg4: memref<216x8xbf16, #tpu.memory_space<vmem>>, %arg5: memref<8x32xbf16, #tpu.memory_space<vmem>>, %arg6: memref<1x8x256xf32, #tpu.memory_space<vmem>>, %arg7: memref<18x18x32xf32, #tpu.memory_space<vmem>>) attributes {dimension_semantics = [#tpu.dimension_semantics<parallel>], iteration_bounds = array<i64: 2>, scalar_prefetch = 0 : i64, scratch_operands = 1 : i64, tpu.core_type = #tpu.core_type<tc>, window_params = [{transform_indices = @transform_0, window_bounds = array<i64: 1, 8, 256>}, {pipeline_mode = #tpu.pipeline_mode<synchronous>, transform_indices = @transform_1, window_bounds = array<i64: 72, 8>}, {pipeline_mode = #tpu.pipeline_mode<synchronous>, transform_indices = @transform_2, window_bounds = array<i64: 144, 8>}, {pipeline_mode = #tpu.pipeline_mode<synchronous>, transform_indices = @transform_3, window_bounds = array<i64: 216, 8>}, {pipeline_mode = #tpu.pipeline_mode<synchronous>, transform_indices = @transform_4, window_bounds = array<i64: 8, 32>}, {transform_indices = @transform_5, window_bounds = array<i64: 1, 8, 256>}]} {
    %c0 = arith.constant 0 : index
    %c0_0 = arith.constant 0 : index
    %c0_1 = arith.constant 0 : index
    %0 = vector.load %arg1[%c0, %c0_0, %c0_1] : memref<1x8x256xf32, #tpu.memory_space<vmem>>, vector<1x8x256xf32>
    %1 = vector.shape_cast %0 : vector<1x8x256xf32> to vector<8x256xf32>
    %cst = arith.constant 0.000000e+00 : f32
    %2 = vector.broadcast %cst : f32 to vector<1x18x32xf32>
    %c0_2 = arith.constant 0 : index
    %c0_3 = arith.constant 0 : index
    %c0_4 = arith.constant 0 : index
    %3 = vector.load %arg7[%c0_2, %c0_3, %c0_4] : memref<18x18x32xf32, #tpu.memory_space<vmem>>, vector<1x18x32xf32>
    tpu.vector_store %arg7[%c0_2, %c0_3, %c0_4], %2 {strides = array<i32>} : memref<18x18x32xf32, #tpu.memory_space<vmem>>, vector<1x18x32xf32>,
    %cst_5 = arith.constant 0.000000e+00 : f32
    %4 = vector.broadcast %cst_5 : f32 to vector<1x18x32xf32>
    %c17 = arith.constant 17 : index
    %c0_6 = arith.constant 0 : index
    %c0_7 = arith.constant 0 : index
    %5 = vector.load %arg7[%c17, %c0_6, %c0_7] : memref<18x18x32xf32, #tpu.memory_space<vmem>>, vector<1x18x32xf32>
    tpu.vector_store %arg7[%c17, %c0_6, %c0_7], %4 {strides = array<i32>} : memref<18x18x32xf32, #tpu.memory_space<vmem>>, vector<1x18x32xf32>,
    %cst_8 = arith.constant 0.000000e+00 : f32
    %6 = vector.broadcast %cst_8 : f32 to vector<18x1x32xf32>
    %c0_9 = arith.constant 0 : index
    %c0_10 = arith.constant 0 : index
    %c0_11 = arith.constant 0 : index
    %7 = vector.load %arg7[%c0_9, %c0_10, %c0_11] : memref<18x18x32xf32, #tpu.memory_space<vmem>>, vector<18x1x32xf32>
    tpu.vector_store %arg7[%c0_9, %c0_10, %c0_11], %6 {strides = array<i32>} : memref<18x18x32xf32, #tpu.memory_space<vmem>>, vector<18x1x32xf32>,
    %cst_12 = arith.constant 0.000000e+00 : f32
    %8 = vector.broadcast %cst_12 : f32 to vector<18x1x32xf32>
    %c0_13 = arith.constant 0 : index
    %c17_14 = arith.constant 17 : index
    %c0_15 = arith.constant 0 : index
    %9 = vector.load %arg7[%c0_13, %c17_14, %c0_15] : memref<18x18x32xf32, #tpu.memory_space<vmem>>, vector<18x1x32xf32>
    tpu.vector_store %arg7[%c0_13, %c17_14, %c0_15], %8 {strides = array<i32>} : memref<18x18x32xf32, #tpu.memory_space<vmem>>, vector<18x1x32xf32>,
    %10 = tpu.transpose %1, [1, 0] : vector<8x256xf32> -> vector<256x8xf32>
    %11 = vector.shape_cast %10 : vector<256x8xf32> to vector<16x16x8xf32>
    %c1 = arith.constant 1 : index
    %c1_16 = arith.constant 1 : index
    %c0_17 = arith.constant 0 : index
    %12 = vector.load %arg7[%c1, %c1_16, %c0_17] : memref<18x18x32xf32, #tpu.memory_space<vmem>>, vector<16x16x8xf32>
    tpu.vector_store %arg7[%c1, %c1_16, %c0_17], %11 {strides = array<i32>} : memref<18x18x32xf32, #tpu.memory_space<vmem>>, vector<16x16x8xf32>,
    %c0_18 = arith.constant 0 : index
    %c0_19 = arith.constant 0 : index
    %c0_20 = arith.constant 0 : index
    %13 = vector.load %arg7[%c0_18, %c0_19, %c0_20] : memref<18x18x32xf32, #tpu.memory_space<vmem>>, vector<18x18x8xf32>
    %14 = arith.truncf %13 : vector<18x18x8xf32> to vector<18x18x8xbf16>
    %15 = vector.extract_strided_slice %14 {offsets = [0, 0, 0], sizes = [16, 16, 8], strides = [1, 1, 1]} : vector<18x18x8xbf16> to vector<16x16x8xbf16>
    %16 = vector.extract_strided_slice %14 {offsets = [0, 1, 0], sizes = [16, 16, 8], strides = [1, 1, 1]} : vector<18x18x8xbf16> to vector<16x16x8xbf16>
    %17 = vector.extract_strided_slice %14 {offsets = [0, 2, 0], sizes = [16, 16, 8], strides = [1, 1, 1]} : vector<18x18x8xbf16> to vector<16x16x8xbf16>
    %18 = vector.extract_strided_slice %14 {offsets = [1, 0, 0], sizes = [16, 16, 8], strides = [1, 1, 1]} : vector<18x18x8xbf16> to vector<16x16x8xbf16>
    %19 = vector.extract_strided_slice %14 {offsets = [1, 1, 0], sizes = [16, 16, 8], strides = [1, 1, 1]} : vector<18x18x8xbf16> to vector<16x16x8xbf16>
    %20 = vector.extract_strided_slice %14 {offsets = [1, 2, 0], sizes = [16, 16, 8], strides = [1, 1, 1]} : vector<18x18x8xbf16> to vector<16x16x8xbf16>
    %21 = vector.extract_strided_slice %14 {offsets = [2, 0, 0], sizes = [16, 16, 8], strides = [1, 1, 1]} : vector<18x18x8xbf16> to vector<16x16x8xbf16>
    %22 = vector.extract_strided_slice %14 {offsets = [2, 1, 0], sizes = [16, 16, 8], strides = [1, 1, 1]} : vector<18x18x8xbf16> to vector<16x16x8xbf16>
    %23 = vector.extract_strided_slice %14 {offsets = [2, 2, 0], sizes = [16, 16, 8], strides = [1, 1, 1]} : vector<18x18x8xbf16> to vector<16x16x8xbf16>
    %24 = tpu.concatenate %15, %16, %17, %18, %19, %20, %21, %22, %23 in 2 : vector<16x16x8xbf16>, vector<16x16x8xbf16>, vector<16x16x8xbf16>, vector<16x16x8xbf16>, vector<16x16x8xbf16>, vector<16x16x8xbf16>, vector<16x16x8xbf16>, vector<16x16x8xbf16>, vector<16x16x8xbf16> -> vector<16x16x72xbf16>
    %25 = vector.shape_cast %24 : vector<16x16x72xbf16> to vector<256x72xbf16>
    %c0_21 = arith.constant 0 : index
    %c0_22 = arith.constant 0 : index
    %26 = vector.load %arg2[%c0_21, %c0_22] : memref<72x8xbf16, #tpu.memory_space<vmem>>, vector<72x8xbf16>
    %cst_23 = arith.constant dense<0.000000e+00> : vector<256x8xf32>
    %27 = tpu.matmul %25, %26, %cst_23 {dimension_numbers = #tpu.dot_dimension_numbers<[1], [0], [0], [1], [0, 0, 1, 1], [], []>} : vector<256x72xbf16>, vector<72x8xbf16>, vector<256x8xf32> -> vector<256x8xf32>
    %cst_24 = arith.constant 0.000000e+00 : f32
    %28 = vector.broadcast %cst_24 : f32 to vector<256x8xf32>
    %29 = arith.maximumf %27, %28 : vector<256x8xf32>
    %30 = vector.shape_cast %29 : vector<256x8xf32> to vector<16x16x8xf32>
    %c1_25 = arith.constant 1 : index
    %c1_26 = arith.constant 1 : index
    %c8 = arith.constant 8 : index
    %31 = vector.load %arg7[%c1_25, %c1_26, %c8] : memref<18x18x32xf32, #tpu.memory_space<vmem>>, vector<16x16x8xf32>
    tpu.vector_store %arg7[%c1_25, %c1_26, %c8], %30 {strides = array<i32>} : memref<18x18x32xf32, #tpu.memory_space<vmem>>, vector<16x16x8xf32>,
    %c0_27 = arith.constant 0 : index
    %c0_28 = arith.constant 0 : index
    %c0_29 = arith.constant 0 : index
    %32 = vector.load %arg7[%c0_27, %c0_28, %c0_29] : memref<18x18x32xf32, #tpu.memory_space<vmem>>, vector<18x18x16xf32>
    %33 = arith.truncf %32 : vector<18x18x16xf32> to vector<18x18x16xbf16>
    %34 = vector.extract_strided_slice %33 {offsets = [0, 0, 0], sizes = [16, 16, 16], strides = [1, 1, 1]} : vector<18x18x16xbf16> to vector<16x16x16xbf16>
    %35 = vector.extract_strided_slice %33 {offsets = [0, 1, 0], sizes = [16, 16, 16], strides = [1, 1, 1]} : vector<18x18x16xbf16> to vector<16x16x16xbf16>
    %36 = vector.extract_strided_slice %33 {offsets = [0, 2, 0], sizes = [16, 16, 16], strides = [1, 1, 1]} : vector<18x18x16xbf16> to vector<16x16x16xbf16>
    %37 = vector.extract_strided_slice %33 {offsets = [1, 0, 0], sizes = [16, 16, 16], strides = [1, 1, 1]} : vector<18x18x16xbf16> to vector<16x16x16xbf16>
    %38 = vector.extract_strided_slice %33 {offsets = [1, 1, 0], sizes = [16, 16, 16], strides = [1, 1, 1]} : vector<18x18x16xbf16> to vector<16x16x16xbf16>
    %39 = vector.extract_strided_slice %33 {offsets = [1, 2, 0], sizes = [16, 16, 16], strides = [1, 1, 1]} : vector<18x18x16xbf16> to vector<16x16x16xbf16>
    %40 = vector.extract_strided_slice %33 {offsets = [2, 0, 0], sizes = [16, 16, 16], strides = [1, 1, 1]} : vector<18x18x16xbf16> to vector<16x16x16xbf16>
    %41 = vector.extract_strided_slice %33 {offsets = [2, 1, 0], sizes = [16, 16, 16], strides = [1, 1, 1]} : vector<18x18x16xbf16> to vector<16x16x16xbf16>
    %42 = vector.extract_strided_slice %33 {offsets = [2, 2, 0], sizes = [16, 16, 16], strides = [1, 1, 1]} : vector<18x18x16xbf16> to vector<16x16x16xbf16>
    %43 = tpu.concatenate %34, %35, %36, %37, %38, %39, %40, %41, %42 in 2 : vector<16x16x16xbf16>, vector<16x16x16xbf16>, vector<16x16x16xbf16>, vector<16x16x16xbf16>, vector<16x16x16xbf16>, vector<16x16x16xbf16>, vector<16x16x16xbf16>, vector<16x16x16xbf16>, vector<16x16x16xbf16> -> vector<16x16x144xbf16>
    %44 = vector.shape_cast %43 : vector<16x16x144xbf16> to vector<256x144xbf16>
    %c0_30 = arith.constant 0 : index
    %c0_31 = arith.constant 0 : index
    %45 = vector.load %arg3[%c0_30, %c0_31] : memref<144x8xbf16, #tpu.memory_space<vmem>>, vector<144x8xbf16>
    %cst_32 = arith.constant dense<0.000000e+00> : vector<256x8xf32>
    %46 = tpu.matmul %44, %45, %cst_32 {dimension_numbers = #tpu.dot_dimension_numbers<[1], [0], [0], [1], [0, 0, 1, 1], [], []>} : vector<256x144xbf16>, vector<144x8xbf16>, vector<256x8xf32> -> vector<256x8xf32>
    %cst_33 = arith.constant 0.000000e+00 : f32
    %47 = vector.broadcast %cst_33 : f32 to vector<256x8xf32>
    %48 = arith.maximumf %46, %47 : vector<256x8xf32>
    %49 = vector.shape_cast %48 : vector<256x8xf32> to vector<16x16x8xf32>
    %c1_34 = arith.constant 1 : index
    %c1_35 = arith.constant 1 : index
    %c16 = arith.constant 16 : index
    %50 = vector.load %arg7[%c1_34, %c1_35, %c16] : memref<18x18x32xf32, #tpu.memory_space<vmem>>, vector<16x16x8xf32>
    tpu.vector_store %arg7[%c1_34, %c1_35, %c16], %49 {strides = array<i32>} : memref<18x18x32xf32, #tpu.memory_space<vmem>>, vector<16x16x8xf32>,
    %c0_36 = arith.constant 0 : index
    %c0_37 = arith.constant 0 : index
    %c0_38 = arith.constant 0 : index
    %51 = vector.load %arg7[%c0_36, %c0_37, %c0_38] : memref<18x18x32xf32, #tpu.memory_space<vmem>>, vector<18x18x24xf32>
    %52 = arith.truncf %51 : vector<18x18x24xf32> to vector<18x18x24xbf16>
    %53 = vector.extract_strided_slice %52 {offsets = [0, 0, 0], sizes = [16, 16, 24], strides = [1, 1, 1]} : vector<18x18x24xbf16> to vector<16x16x24xbf16>
    %54 = vector.extract_strided_slice %52 {offsets = [0, 1, 0], sizes = [16, 16, 24], strides = [1, 1, 1]} : vector<18x18x24xbf16> to vector<16x16x24xbf16>
    %55 = vector.extract_strided_slice %52 {offsets = [0, 2, 0], sizes = [16, 16, 24], strides = [1, 1, 1]} : vector<18x18x24xbf16> to vector<16x16x24xbf16>
    %56 = vector.extract_strided_slice %52 {offsets = [1, 0, 0], sizes = [16, 16, 24], strides = [1, 1, 1]} : vector<18x18x24xbf16> to vector<16x16x24xbf16>
    %57 = vector.extract_strided_slice %52 {offsets = [1, 1, 0], sizes = [16, 16, 24], strides = [1, 1, 1]} : vector<18x18x24xbf16> to vector<16x16x24xbf16>
    %58 = vector.extract_strided_slice %52 {offsets = [1, 2, 0], sizes = [16, 16, 24], strides = [1, 1, 1]} : vector<18x18x24xbf16> to vector<16x16x24xbf16>
    %59 = vector.extract_strided_slice %52 {offsets = [2, 0, 0], sizes = [16, 16, 24], strides = [1, 1, 1]} : vector<18x18x24xbf16> to vector<16x16x24xbf16>
    %60 = vector.extract_strided_slice %52 {offsets = [2, 1, 0], sizes = [16, 16, 24], strides = [1, 1, 1]} : vector<18x18x24xbf16> to vector<16x16x24xbf16>
    %61 = vector.extract_strided_slice %52 {offsets = [2, 2, 0], sizes = [16, 16, 24], strides = [1, 1, 1]} : vector<18x18x24xbf16> to vector<16x16x24xbf16>
    %62 = tpu.concatenate %53, %54, %55, %56, %57, %58, %59, %60, %61 in 2 : vector<16x16x24xbf16>, vector<16x16x24xbf16>, vector<16x16x24xbf16>, vector<16x16x24xbf16>, vector<16x16x24xbf16>, vector<16x16x24xbf16>, vector<16x16x24xbf16>, vector<16x16x24xbf16>, vector<16x16x24xbf16> -> vector<16x16x216xbf16>
    %63 = vector.shape_cast %62 : vector<16x16x216xbf16> to vector<256x216xbf16>
    %c0_39 = arith.constant 0 : index
    %c0_40 = arith.constant 0 : index
    %64 = vector.load %arg4[%c0_39, %c0_40] : memref<216x8xbf16, #tpu.memory_space<vmem>>, vector<216x8xbf16>
    %cst_41 = arith.constant dense<0.000000e+00> : vector<256x8xf32>
    %65 = tpu.matmul %63, %64, %cst_41 {dimension_numbers = #tpu.dot_dimension_numbers<[1], [0], [0], [1], [0, 0, 1, 1], [], []>} : vector<256x216xbf16>, vector<216x8xbf16>, vector<256x8xf32> -> vector<256x8xf32>
    %cst_42 = arith.constant 0.000000e+00 : f32
    %66 = vector.broadcast %cst_42 : f32 to vector<256x8xf32>
    %67 = arith.maximumf %65, %66 : vector<256x8xf32>
    %68 = vector.shape_cast %67 : vector<256x8xf32> to vector<16x16x8xf32>
    %c1_43 = arith.constant 1 : index
    %c1_44 = arith.constant 1 : index
    %c24 = arith.constant 24 : index
    %69 = vector.load %arg7[%c1_43, %c1_44, %c24] : memref<18x18x32xf32, #tpu.memory_space<vmem>>, vector<16x16x8xf32>
    tpu.vector_store %arg7[%c1_43, %c1_44, %c24], %68 {strides = array<i32>} : memref<18x18x32xf32, #tpu.memory_space<vmem>>, vector<16x16x8xf32>,
    %c1_45 = arith.constant 1 : index
    %c1_46 = arith.constant 1 : index
    %c0_47 = arith.constant 0 : index
    %70 = vector.load %arg7[%c1_45, %c1_46, %c0_47] : memref<18x18x32xf32, #tpu.memory_space<vmem>>, vector<16x16x32xf32>
    %71 = vector.shape_cast %70 : vector<16x16x32xf32> to vector<256x32xf32>
    %72 = tpu.transpose %71, [1, 0] : vector<256x32xf32> -> vector<32x256xf32>
    %73 = arith.truncf %72 : vector<32x256xf32> to vector<32x256xbf16>
    %c0_48 = arith.constant 0 : index
    %c0_49 = arith.constant 0 : index
    %74 = vector.load %arg5[%c0_48, %c0_49] : memref<8x32xbf16, #tpu.memory_space<vmem>>, vector<8x32xbf16>
    %cst_50 = arith.constant dense<0.000000e+00> : vector<8x256xf32>
    %75 = tpu.matmul %74, %73, %cst_50 {dimension_numbers = #tpu.dot_dimension_numbers<[1], [0], [0], [1], [0, 0, 1, 1], [], []>} : vector<8x32xbf16>, vector<32x256xbf16>, vector<8x256xf32> -> vector<8x256xf32>
    %76 = arith.addf %75, %1 : vector<8x256xf32>
    %c0_51 = arith.constant 0 : index
    %c0_52 = arith.constant 0 : index
    %c0_53 = arith.constant 0 : index
    %77 = vector.load %arg6[%c0_51, %c0_52, %c0_53] : memref<1x8x256xf32, #tpu.memory_space<vmem>>, vector<1x8x256xf32>
    %78 = vector.shape_cast %77 : vector<1x8x256xf32> to vector<8x256xf32>
    %79 = vector.shape_cast %76 : vector<8x256xf32> to vector<1x8x256xf32>
    tpu.vector_store %arg6[%c0_51, %c0_52, %c0_53], %79 {strides = array<i32>} : memref<1x8x256xf32, #tpu.memory_space<vmem>>, vector<1x8x256xf32>,
    return
  }
  func.func @transform_0(%arg0: i32) -> (i32, i32, i32) {
    %c0_i32 = arith.constant 0 : i32
    %c0_i32_0 = arith.constant 0 : i32
    %c0_i32_1 = arith.constant 0 : i32
    return %arg0, %c0_i32, %c0_i32_0 : i32, i32, i32
  }
  func.func @transform_1(%arg0: i32) -> (i32, i32) {
    %c0_i32 = arith.constant 0 : i32
    %c0_i32_0 = arith.constant 0 : i32
    %c0_i32_1 = arith.constant 0 : i32
    return %c0_i32, %c0_i32_0 : i32, i32
  }
  func.func @transform_2(%arg0: i32) -> (i32, i32) {
    %c0_i32 = arith.constant 0 : i32
    %c0_i32_0 = arith.constant 0 : i32
    %c0_i32_1 = arith.constant 0 : i32
    return %c0_i32, %c0_i32_0 : i32, i32
  }
  func.func @transform_3(%arg0: i32) -> (i32, i32) {
    %c0_i32 = arith.constant 0 : i32
    %c0_i32_0 = arith.constant 0 : i32
    %c0_i32_1 = arith.constant 0 : i32
    return %c0_i32, %c0_i32_0 : i32, i32
  }
  func.func @transform_4(%arg0: i32) -> (i32, i32) {
    %c0_i32 = arith.constant 0 : i32
    %c0_i32_0 = arith.constant 0 : i32
    %c0_i32_1 = arith.constant 0 : i32
    return %c0_i32, %c0_i32_0 : i32, i32
  }
  func.func @transform_5(%arg0: i32) -> (i32, i32, i32) {
    %c0_i32 = arith.constant 0 : i32
    %c0_i32_0 = arith.constant 0 : i32
    %c0_i32_1 = arith.constant 0 : i32
    return %arg0, %c0_i32, %c0_i32_0 : i32, i32, i32
  }
}

</mosaic_0001>

<bundles_post_ra>
// kernel: tpu_custom_call.1
= control target key start
LH: loop header
LB: loop body
LE: loop exit
PB: predicated region body
PF: predicated region fallthrough
CT: control target
= control target key end

     0   :  { %10 = vsyncpa [#allocation4], 0  ;;  %s7768_s0 = inlined_call_operand.hbm [shape: f32[2,8,256], index: 0, kind: input, shape index: {}]   ;;  %s7769_s1 = inlined_call_operand.hbm [shape: bf16[72,8], index: 1, kind: input, shape index: {}]   ;;  %s7770_s2 = inlined_call_operand.hbm [shape: bf16[144,8], index: 2, kind: input, shape index: {}]   ;;  %s7771_s3 = inlined_call_operand.hbm [shape: bf16[216,8], index: 3, kind: input, shape index: {}]   ;;  %s7772_s4 = inlined_call_operand.hbm [shape: bf16[8,32], index: 4, kind: input, shape index: {}]   ;;  %s7773_s5 = inlined_call_operand.hbm [shape: f32[2,8,256], index: 5, kind: output, shape index: {}]  }
   0x1   :  { %12 = vsyncpa [#allocation4 + $0x1], 0 }
   0x2   :  { %13 = vsyncpa [#allocation7], 0 }
   0x3   :  { %14 = vsyncpa [#allocation10], 0 }
   0x4   :  { %15 = vsyncpa [#allocation5], 0 }
   0x5   :  { %17 = vsyncpa [#allocation5 + $0x1], 0  ;;  %s5467_s18 = smov 0   ;;  %s5469_s19 = smov 0  }
   0x6   :  { %s5471_s20 = smov 0   ;;  %s5473_s21 = smov 0  }
   0x7 LB: > { %s5414_s22 = smov [#allocation6]   ;;  %s5488_s24 = sadd.s32 4294967295, %s5412_s21   ;;  %s5412_s21 = sphi %s5473_s21, %s7797_s21   ;;  %s5408_s20 = sphi %s5471_s20, %s7796_s20   ;;  %s5404_s19 = sphi %s5469_s19, %s7795_s19   ;;  %s5400_s18 = sphi %s5467_s18, %s7794_s18  }
   0x8   : > { %s176_s23 = sshll.u32 %s5414_s22, 4  ;;  %p4818_p0 = scmp.ge.s32.totalorder %s5412_s21, 1  ;;  %s5493_s23 = int_to_ptr.vmem [resolvable:$true] %s176_s23 }
   0x9   : > { %p7774_p1 = scmp.eq.s32.totalorder %s5488_s24, 0  ;;  %p164_p2 = scmp.lt.s32.totalorder %s5412_s21, 3 }
   0xa   : > { %s5415_s26 = smov [#allocation9]   ;;  %s5416_s29 = smov [#allocation8]  }
   0xb   : > { %p5495_p3 = pnand %p4818_p0, %p164_p2  ;;  %s202_s27 = sshll.u32 %s5415_s26, 4  ;;  %s5508_s27 = int_to_ptr.vmem [resolvable:$true] %s202_s27 }
   0xc   : > { %s189_s30 = sshll.u32 %s5416_s29, 4  ;;  %s5196_s8 = scalar_lea.hbm %s7769_s1, 576  ;;  %s5510_s30 = int_to_ptr.vmem [resolvable:$true] %s189_s30 }
   0xd   : > { %s7777_s25 = scalar_select %p5495_p3, 1, 0 }
   0xe   : > { %p5030_p5 = pneg %p5495_p3  ;;  %p5197_p7 = scmp.ne.s32.totalorder %s7769_s1, %s5196_s8 }
   0xf   : > { %p5203_p11 = scmp.lt.u32.totalorder %s5196_s8, %s7769_s1 }
  0x10   : > { %p5504_p6 = pnand %p5030_p5, %p7774_p1 }
  0x12   : > { %p5520_p8 = pneg %p5504_p6 }
  0x14   : > { %p5199_p9 = pnand %p5520_p8, %p5197_p7 }
  0x16   : > { %p5200_p10 = pneg %p5199_p9 }
  0x18   : > { %p5205_p12 = pnand %p5203_p11, %p5200_p10 }
  0x1a   : > { %5208 = shalt.err (!%p5205_p12)
}
  0x1b   : > { %s5209_s14 = scalar_lea.vmem %s5493_s23, 576  ;;  %p5217_p5 = scmp.lt.s32.totalorder %s5493_s23, %s5493_s23 }
  0x1c   : > { %p5210_p13 = scmp.ne.s32.totalorder %s5493_s23, %s5209_s14  ;;  %p5218_p4 = scmp.lt.s32.totalorder %s5209_s14, %s5209_s14 }
  0x1e   : > { %p5212_p0 = pnand %p5210_p13, %p5520_p8  ;;  %p5219_p7 = por %p5218_p4, %p5217_p5 }
  0x20   : > { %p5213_p2 = pneg %p5212_p0 }
  0x22   : > { %p5220_p9 = pnand %p5219_p7, %p5213_p2 }
  0x24   : > { %5223 = shalt.err (!%p5220_p9)
}
  0x25   : > { %s5417_s15 = smov 64   ;;  %s5418_s16 = smov 4  }
  0x26   : > { %5033 = dma.hbm_to_vmem [thread:$0]  (!%p5504_p6), %s7769_s1, 576, %s5493_s23, [#allocation7], %s5417_s15, %s5417_s15, %s5418_s16  }
  0x27   : > { %s5224_s6 = scalar_lea.hbm %s7771_s3, 1728 }
  0x28   : > { %p5225_p4 = scmp.ne.s32.totalorder %s7771_s3, %s5224_s6  ;;  %p5231_p12 = scmp.lt.u32.totalorder %s5224_s6, %s7771_s3 }
  0x2a   : > { %p5227_p10 = pnand %p5225_p4, %p5520_p8 }
  0x2c   : > { %p5228_p11 = pneg %p5227_p10 }
  0x2e   : > { %p5233_p13 = pnand %p5231_p12, %p5228_p11 }
  0x30   : > { %5236 = shalt.err (!%p5233_p13)
}
  0x31   : > { %s5237_s23 = scalar_lea.vmem %s5508_s27, 1728  ;;  %p5245_p7 = scmp.lt.s32.totalorder %s5508_s27, %s5508_s27 }
  0x32   : > { %p5238_p0 = scmp.ne.s32.totalorder %s5508_s27, %s5237_s23  ;;  %p5246_p9 = scmp.lt.s32.totalorder %s5237_s23, %s5237_s23 }
  0x34   : > { %p5240_p2 = pnand %p5238_p0, %p5520_p8  ;;  %p5247_p4 = por %p5246_p9, %p5245_p7 }
  0x36   : > { %p5241_p5 = pneg %p5240_p2 }
  0x38   : > { %p5248_p10 = pnand %p5247_p4, %p5241_p5 }
  0x3a   : > { %5251 = shalt.err (!%p5248_p10)
}
  0x3b   : > { %5039 = dma.hbm_to_vmem [thread:$0]  (!%p5504_p6), %s7771_s3, 1728, %s5508_s27, [#allocation10], %s5417_s15, %s5417_s15, %s5418_s16  }
  0x3c   : > { %s5252_s22 = scalar_lea.hbm %s7770_s2, 1152 }
  0x3d   : > { %p5253_p11 = scmp.ne.s32.totalorder %s7770_s2, %s5252_s22  ;;  %p5259_p0 = scmp.lt.u32.totalorder %s5252_s22, %s7770_s2 }
  0x3f   : > { %p5255_p12 = pnand %p5253_p11, %p5520_p8 }
  0x41   : > { %p5256_p13 = pneg %p5255_p12 }
  0x43   : > { %p5261_p2 = pnand %p5259_p0, %p5256_p13 }
  0x45   : > { %5264 = shalt.err (!%p5261_p2)
}
  0x46   : > { %s5265_s27 = scalar_lea.vmem %s5510_s30, 1152  ;;  %p5273_p4 = scmp.lt.s32.totalorder %s5510_s30, %s5510_s30 }
  0x47   : > { %p5266_p5 = scmp.ne.s32.totalorder %s5510_s30, %s5265_s27  ;;  %p5274_p10 = scmp.lt.s32.totalorder %s5265_s27, %s5265_s27 }
  0x49   : > { %p5268_p7 = pnand %p5266_p5, %p5520_p8  ;;  %p5275_p11 = por %p5274_p10, %p5273_p4 }
  0x4b   : > { %p5269_p9 = pneg %p5268_p7 }
  0x4d   : > { %p5276_p12 = pnand %p5275_p11, %p5269_p9 }
  0x4f   : > { %5279 = shalt.err (!%p5276_p12)
}
  0x50   : > { %5036 = dma.hbm_to_vmem [thread:$0]  (!%p5504_p6), %s7770_s2, 1152, %s5510_s30, [#allocation7], %s5417_s15, %s5417_s15, %s5418_s16  }
  0x51   : > { %s5419_s10 = smov [#allocation11]   ;;  %s5280_s14 = scalar_lea.hbm %s7772_s4, 64 }
  0x52   : > { %s216_s23 = sshll.u32 %s5419_s10, 4  ;;  %p5281_p13 = scmp.ne.s32.totalorder %s7772_s4, %s5280_s14  ;;  %s217_s23 = int_to_ptr.vmem [resolvable:$true] %s216_s23 }
  0x53   : > { %p5287_p5 = scmp.lt.u32.totalorder %s5280_s14, %s7772_s4 }
  0x54   : > { %p5283_p0 = pnand %p5281_p13, %p5520_p8 }
  0x56   : > { %p5284_p2 = pneg %p5283_p0 }
  0x58   : > { %p5289_p7 = pnand %p5287_p5, %p5284_p2 }
  0x5a   : > { %5292 = shalt.err (!%p5289_p7)
}
  0x5b   : > { %s5293_s30 = scalar_lea.vmem %s217_s23, 64  ;;  %p5301_p11 = scmp.lt.s32.totalorder %s217_s23, %s217_s23 }
  0x5c   : > { %p5294_p9 = scmp.ne.s32.totalorder %s217_s23, %s5293_s30  ;;  %p5302_p12 = scmp.lt.s32.totalorder %s5293_s30, %s5293_s30 }
  0x5e   : > { %p5296_p4 = pnand %p5294_p9, %p5520_p8  ;;  %p5303_p1 = por %p5302_p12, %p5301_p11 }
  0x60   : > { %p5297_p10 = pneg %p5296_p4 }
  0x62   : > { %p5304_p3 = pnand %p5303_p1, %p5297_p10 }
  0x64   : > { %5307 = shalt.err (!%p5304_p3)
}
  0x65   : > { %5042 = dma.hbm_to_vmem [thread:$0]  (!%p5504_p6), %s7772_s4, 64, %s217_s23, [#allocation10]  }
  0x66   : > { %s4817_s11 = sadd.s32 4294967294, %s5412_s21   ;;  %s5616_s28 = sadd.s32 1, %s5412_s21  }
  0x67   : > { %s27_s6 = ssub.s32 %s5412_s21, %s5616_s28  ;;  %s30_s7 = sadd.s32 1, %s5408_s20 }
  0x68   : > { %p28_p1 = scmp.eq.s32.totalorder %s27_s6, 0  ;;  %p37_p3 = scmp.ne.s32.totalorder %s5408_s20, %s5404_s19 }
  0x69   : > { %p38_p8 = scmp.eq.s32.totalorder %s5412_s21, 0  ;;  %p43_p13 = scmp.ne.s32.totalorder %s5404_s19, %s5400_s18 }
  0x6a   : > { %s5627_s27 = scalar_select %p28_p1, %s5408_s20, %s30_s7  }
  0x6b   : > { %p5629_p0 = por %p38_p8, %p37_p3  ;;  %p7781_p2 = scmp.eq.s32.totalorder %s5488_s24, 0 }
  0x6c   : > { %p151_p5 = scmp.eq.s32.totalorder %s5488_s24, 1  ;;  %p157_p7 = scmp.eq.s32.totalorder %s4817_s11, 1 }
  0x6d   : > { %p5635_p6 = por %p7781_p2, %p43_p13  ;;  %p5055_p9 = scmp.lt.s32.totalorder %s5412_s21, 2 }
  0x6e   : > { %s227_s10 = sand.u32 1, %s5408_s20   ;;  %p5642_p4 = por %p151_p5, %p37_p3 }
  0x6f   : > { %p5646_p10 = por %p157_p7, %p43_p13  ;;  %s4824_s13 = sshll.u32 %s227_s10, 4 }
  0x70   : > { %s7783_s23 = scalar_select %p5642_p4, 1, 0 }
  0x71   : > { %s7784_s12 = scalar_select %p5646_p10, 1, 0 }
  0x72   : > { %s4916_s14 = sshll.u32 %s5412_s21, 8  ;;  %s231_s29 = scalar_lea.vmem [#allocation3], %s4824_s13 }
  0x73   : > { %s5654_s26 = scalar_lea.hbm %s7768_s0, %s4916_s14  ;;  %s239_s30 = sshll.u32 %s231_s29, 4  ;;  %s5656_s30 = int_to_ptr.vmem [resolvable:$true] %s239_s30 }
  0x74   : > { %p5660_p11 = pnand %p5055_p9, %p5629_p0  ;;  %s228_s16 = scalar_lea.sflag [#allocation4], %s227_s10 }
  0x75   : > { %s5308_s11 = scalar_lea.hbm %s5654_s26, 256  ;;  %s5313_s13 = scalar_lea.hbm %s7768_s0, 512 }
  0x76   : > { %p5309_p12 = scmp.ne.s32.totalorder %s5654_s26, %s5308_s11  ;;  %p5310_p1 = pneg %p5660_p11 }
  0x77   : > { %p5314_p13 = scmp.lt.u32.totalorder %s5654_s26, %s7768_s0  ;;  %p5315_p0 = scmp.lt.u32.totalorder %s5313_s13, %s5308_s11 }
  0x78   : > { %p5311_p3 = pnand %p5310_p1, %p5309_p12  ;;  %p5317_p5 = scmp.lt.u32.totalorder %s5308_s11, %s5654_s26 }
  0x79   : > { %p5316_p2 = por %p5315_p0, %p5314_p13 }
  0x7a   : > { %p5312_p8 = pneg %p5311_p3 }
  0x7b   : > { %p5318_p7 = por %p5317_p5, %p5316_p2 }
  0x7d   : > { %p5319_p9 = pnand %p5318_p7, %p5312_p8 }
  0x7f   : > { %5322 = shalt.err (!%p5319_p9)
}
  0x80   : > { %s5323_s10 = scalar_lea.vmem %s5656_s30, 256  ;;  %s5420_s17 = smov [#allocation3]  }
  0x81   : > { %p5324_p12 = scmp.ne.s32.totalorder %s5656_s30, %s5323_s10  ;;  %s5328_s22 = sshll.u32 %s5420_s17, 4  ;;  %s5329_s22 = int_to_ptr.vmem [resolvable:$false] %s5328_s22 }
  0x82   : > { %s5330_s29 = scalar_lea.vmem %s5329_s22, 512  ;;  %p5331_p4 = scmp.lt.s32.totalorder %s5656_s30, %s5329_s22 }
  0x83   : > { %p5326_p3 = pnand %p5324_p12, %p5310_p1  ;;  %p5332_p13 = scmp.lt.s32.totalorder %s5330_s29, %s5323_s10 }
  0x85   : > { %p5327_p10 = pneg %p5326_p3  ;;  %p5333_p0 = por %p5332_p13, %p5331_p4 }
  0x87   : > { %p5334_p2 = pnand %p5333_p0, %p5327_p10 }
  0x89   : > { %5337 = shalt.err (!%p5334_p2)
}
  0x8a   : > { %5046 = dma.hbm_to_vmem [thread:$0]  (!%p5660_p11), %s5654_s26, 256, %s5656_s30, %s228_s16  }
  0x8b   : > { %p7786_p8 = scmp.ne.s32.totalorder %s7777_s25, 0 }
  0x8c   : > { %s5692_s11 = sand.u32 (!%p7786_p8), 1, %s5404_s19  }
  0x8d   : > { %248 = sbr.rel (%p7786_p8) target bundleno = 2541 (0x9ed), region = 40  ;;  %s4828_s6 = sshll.u32 (!%p7786_p8), %s5692_s11, 4 }
  0x8e   : > { %s251_s7 = scalar_lea.sflag (!%p7786_p8), [#allocation4], %s5692_s11  ;;  %s5698_s13 = scalar_lea.vmem (!%p7786_p8), [#allocation3], %s4828_s6 }
  0x94   : > { %5383 = dma.done.wait (%p5635_p6), %s251_s7, 256  }
  0x95   : > { %5385 = vsyncadd (%p5635_p6), %s251_s7, 4294967040  ;;  %p7787_p4 = scmp.eq.s32.totalorder %s5488_s24, 0 }
  0x97   : > { %5387 = dma.done.wait (%p7787_p4), [#allocation7], 1728   ;;  %p7788_p10 = pmov %p7787_p4 }
  0x98   : > { %p7789_p11 = pmov %p7787_p4 }
  0x99   : > { %5389 = vsyncadd (%p7788_p10), [#allocation7], 4294965568 }
  0x9a   : > { %5391 = dma.done.wait (%p7789_p11), [#allocation10], 1792   ;;  %p7790_p1 = pmov %p7787_p4 }
  0x9b   : > { %vm300_vm0 = vcmask 261120   ;;  %vm303_vm1 = vcmask 254976   ;;  %v5421_v0 = vmov 0.0   ;;  %vm309_vm2 = vcmask 253952   ;;  %v298_v1 = vld [vmem:[%s5698_s13] sm:$0xff]  ;;  %s5422_s25 = smov 16  }
  0x9c   : > { %5393 = vsyncadd (%p7790_p1), [#allocation10], 4294965504  ;;  %301 = vst.msk [vmem:[#allocation2] sm:$0xff] %vm300_vm0, %v5421_v0  ;;  %346 = vxpose.xlu0.b32.start.end [1/1] (short) %v298_v1, 128  ;;  %vm791_vm3 = vcmask 1046528   ;;  %vm534_vm4 = vsmask.f32 7424 }
  0x9d   : > { %302 = vst.msk [vmem:[#allocation2 + $0x8] sm:$0xff] %vm300_vm0, %v5421_v0  ;;  %306 = vst.msk [vmem:[#allocation2 + $0x198] sm:$0xff] %vm300_vm0, %v5421_v0  ;;  %s5423_s9 = smov 8   ;;  %v299_v17 = vld [vmem:[%s5698_s13 + $0x8] sm:$0xff]  ;;  %vm411_vm5 = vcmask 64512   ;;  %s5424_s26 = smov 24  }
  0x9e   : > { %304 = vst.msk [vmem:[#allocation2 + $0x10] sm:$0x3] %vm303_vm1, %v5421_v0  ;;  %308 = vst.msk [vmem:[#allocation2 + $0x1a8] sm:$0x3] %vm303_vm1, %v5421_v0  ;;  %s5425_s30 = smov 40   ;;  %s5426_s15 = smov 32  }
  0x9f   : > { %307 = vst.msk [vmem:[#allocation2 + $0x1a0] sm:$0xff] %vm300_vm0, %v5421_v0  ;;  %s5427_s16 = smov 48   ;;  %v5166_v63 = vld [vmem:[#allocation6] sm:$0xff]   ;;  %s5428_s8 = smov 64   ;;  %vm1429_vm6 = vcmask 1043456   ;;  %vm1130_vm7 = vcmask 130048  }
  0xa0   : > { %310 = vst.msk [vmem:[#allocation2] sm:$0x1] %vm309_vm2, %v5421_v0  ;;  %328 = vst.msk [vmem:[#allocation2 + $0x11] sm:$0x1] %vm309_vm2, %v5421_v0  ;;  %4939 = vmatprep.subr.bf16.mxu0 %v5166_v63  ;;  %s5429_s14 = smov 56   ;;  %vm1163_vm8 = vcmask 195584  }
  0xa1   : > { %311 = vst.msk [vmem:[#allocation2 + $0x18] sm:$0x1] %vm309_vm2, %v5421_v0  ;;  %312 = vst.msk [vmem:[#allocation2 + $0x30] sm:$0x1] %vm309_vm2, %v5421_v0  ;;  %4940 = vmatpush3.bf16.msra.mxu0 %v5166_v63  ;;  %vm1228_vm9 = vcmask 326656   ;;  %vm1261_vm10 = vcmask 392192  }
  0xa2   : > { %313 = vst.msk [vmem:[#allocation2 + $0x48] sm:$0x1] %vm309_vm2, %v5421_v0  ;;  %314 = vst.msk [vmem:[#allocation2 + $0x60] sm:$0x1] %vm309_vm2, %v5421_v0  ;;  %vm1294_vm11 = vcmask 457728   ;;  %vm1327_vm12 = vcmask 523264  }
  0xa3   : > { %315 = vst.msk [vmem:[#allocation2 + $0x78] sm:$0x1] %vm309_vm2, %v5421_v0  ;;  %316 = vst.msk [vmem:[#allocation2 + $0x90] sm:$0x1] %vm309_vm2, %v5421_v0  ;;  %vm1396_vm13 = vcmask 588800   ;;  %vm1754_vm14 = vcmask 130112  }
  0xa4   : > { %317 = vst.msk [vmem:[#allocation2 + $0xa8] sm:$0x1] %vm309_vm2, %v5421_v0  ;;  %318 = vst.msk [vmem:[#allocation2 + $0xc0] sm:$0x1] %vm309_vm2, %v5421_v0  ;;  %v445_v2 = vld [vmem:[#allocation2 + $0x8] sm:$0xff]  ;;  %s5431_s10 = smov 96  }
  0xa5   : > { %319 = vst.msk [vmem:[#allocation2 + $0xd8] sm:$0x1] %vm309_vm2, %v5421_v0  ;;  %320 = vst.msk [vmem:[#allocation2 + $0xf0] sm:$0x1] %vm309_vm2, %v5421_v0  ;;  %s5432_s17 = smov 80   ;;  %s5433_s22 = smov 112  }
  0xa6   : > { %321 = vst.msk [vmem:[#allocation2 + $0x108] sm:$0x1] %vm309_vm2, %v5421_v0  ;;  %322 = vst.msk [vmem:[#allocation2 + $0x120] sm:$0x1] %vm309_vm2, %v5421_v0  ;;  %vm2535_vm15 = vcmask 654336   ;;  %vm2568_vm1 = vcmask 785408  }
  0xa7   : > { %323 = vst.msk [vmem:[#allocation2 + $0x138] sm:$0x1] %vm309_vm2, %v5421_v0  ;;  %324 = vst.msk [vmem:[#allocation2 + $0x150] sm:$0x1] %vm309_vm2, %v5421_v0  ;;  %v444_v3 = vld [vmem:[#allocation2] sm:$0xff]  ;;  %s5434_s29 = smov 72  }
  0xa8   : > { %325 = vst.msk [vmem:[#allocation2 + $0x168] sm:$0x1] %vm309_vm2, %v5421_v0  ;;  %326 = vst.msk [vmem:[#allocation2 + $0x180] sm:$0x1] %vm309_vm2, %v5421_v0  ;;  %v446_v4 = vld [vmem:[#allocation2 + $0x10] sm:$0x3]  ;;  %v5753_v5 = vpack.c.bf16 %v445_v2, %v444_v3 }
  0xa9   : > { %329 = vst.msk [vmem:[#allocation2 + $0x29] sm:$0x1] %vm309_vm2, %v5421_v0  ;;  %330 = vst.msk [vmem:[#allocation2 + $0x41] sm:$0x1] %vm309_vm2, %v5421_v0  ;;  %v499_v6 = vpack.c.bf16 %v446_v4, %v446_v4  ;;  %s5435_s7 = smov 120   ;;  %p7791_p5 = scmp.ne.s32.totalorder %s7783_s23, 0 }
  0xaa   : > { %331 = vst.msk [vmem:[#allocation2 + $0x59] sm:$0x1] %vm309_vm2, %v5421_v0  ;;  %332 = vst.msk [vmem:[#allocation2 + $0x71] sm:$0x1] %vm309_vm2, %v5421_v0  ;;  %v792_v7 = vrot.slane %v5753_v5, 1  ;;  %v536_v9 = vshrl.u32 %v5753_v5, 16 }
  0xab   : > { %333 = vst.msk [vmem:[#allocation2 + $0x89] sm:$0x1] %vm309_vm2, %v5421_v0  ;;  %334 = vst.msk [vmem:[#allocation2 + $0xa1] sm:$0x1] %vm309_vm2, %v5421_v0  ;;  %v793_v8 = vrot.slane %v499_v6, 1  ;;  %v538_v10 = vshll.u32 %v5753_v5, 16 }
  0xac   : > { %335 = vst.msk [vmem:[#allocation2 + $0xb9] sm:$0x1] %vm309_vm2, %v5421_v0  ;;  %336 = vst.msk [vmem:[#allocation2 + $0xd1] sm:$0x1] %vm309_vm2, %v5421_v0  ;;  %v543_v11 = vshll.u32 %v499_v6, 16  ;;  %v5167_v6 = vld [vmem:[#allocation6 + $0x8] sm:$0xff]  }
  0xad   : > { %337 = vst.msk [vmem:[#allocation2 + $0xe9] sm:$0x1] %vm309_vm2, %v5421_v0  ;;  %338 = vst.msk [vmem:[#allocation2 + $0x101] sm:$0x1] %vm309_vm2, %v5421_v0  ;;  %v794_v12 = vsel %vm791_vm3, %v792_v7, %v793_v8  ;;  %v540_v13 = vrot.slane %v538_v10, 1  ;;  %4941 = vmatprep.subr.bf16.mxu0 %v5167_v6  ;;  %v5168_v10 = vld [vmem:[#allocation6 + $0x10] sm:$0xff]  }
  0xae   : > { %339 = vst.msk [vmem:[#allocation2 + $0x119] sm:$0x1] %vm309_vm2, %v5421_v0  ;;  %340 = vst.msk [vmem:[#allocation2 + $0x131] sm:$0x1] %vm309_vm2, %v5421_v0  ;;  %840 = vrot.lane.b32.xlu1 %v794_v12, %s5422_s25  ;;  %v545_v14 = vrot.slane %v543_v11, 1  ;;  %4942 = vmatpush3.bf16.msra.mxu0 %v5167_v6 }
  0xaf   : > { %341 = vst.msk [vmem:[#allocation2 + $0x149] sm:$0x1] %vm309_vm2, %v5421_v0  ;;  %342 = vst.msk [vmem:[#allocation2 + $0x161] sm:$0x1] %vm309_vm2, %v5421_v0  ;;  %v541_v15 = vor.u32 %v540_v13, %v536_v9  ;;  %4943 = vmatprep.subr.bf16.mxu0 %v5168_v10  ;;  %v5169_v13 = vld [vmem:[#allocation6 + $0x18] sm:$0xff]  }
  0xb0   : > { %343 = vst.msk [vmem:[#allocation2 + $0x179] sm:$0x1] %vm309_vm2, %v5421_v0  ;;  %344 = vst.msk [vmem:[#allocation2 + $0x191] sm:$0x1] %vm309_vm2, %v5421_v0 }
  0xb1   : > { %327 = vst.msk [vmem:[#allocation2 + $0x198] sm:$0x1] %vm309_vm2, %v5421_v0  ;;  %345 = vst.msk [vmem:[#allocation2 + $0x1a9] sm:$0x1] %vm309_vm2, %v5421_v0  ;;  %v546_v16 = vsel %vm534_vm4, %v541_v15, %v545_v14  ;;  %v5170_v15 = vld [vmem:[#allocation6 + $0x20] ss:$0 sps:$4 sm:$0xff]  }
  0xb2   : > { %727 = vrot.lane.b32.xlu1 %v546_v16, %s5423_s9  ;;  %4944 = vmatpush3.bf16.msra.mxu0 %v5168_v10  ;;  %vm2601_vm2 = vcmask 916480  }
  0xb3   : > { %4945 = vmatprep.subr.bf16.mxu0 %v5169_v13 }
  0xb6   : > { %4946 = vmatpush3.bf16.msra.mxu0 %v5169_v13 }
  0xb7   : > { %5009 = vmatprep.subr.msk.bf16.mxu0 %vm1429_vm6, %v5170_v15 }
  0xd9   : > { %378 = vxpose.xlu0.b32.start.end [1/1] (short) %v299_v17, 128  ;;  %v1431_v17 = vsel %vm1429_vm6, %v5170_v15, 0 }
  0xda   : > { %4948 = vmatpush3.bf16.msra.mxu0 %v1431_v17 }
 0x11c   : > { %v362_v18 = vpop.trf.xlu0 }
 0x11d   : > { %412 = vst.msk [vmem:[#allocation2 + $0x19] sm:$0xff] %vm411_vm5, %v362_v18 }
 0x120   : > { %v363_v19 = vpop.trf.xlu0 }
 0x121   : > { %413 = vst.msk [vmem:[#allocation2 + $0x21] sm:$0xff] %vm411_vm5, %v363_v19 }
 0x124   : > { %v364_v20 = vpop.trf.xlu0  ;;  %v447_v22 = vld [vmem:[#allocation2 + $0x18] sm:$0xff] }
 0x125   : > { %414 = vst.msk [vmem:[#allocation2 + $0x31] sm:$0xff] %vm411_vm5, %v364_v20 }
 0x128   : > { %v365_v21 = vpop.trf.xlu0  ;;  %v448_v23 = vld [vmem:[#allocation2 + $0x20] sm:$0xff]  ;;  %v449_v24 = vld [vmem:[#allocation2 + $0x28] sm:$0x3] }
 0x129   : > { %415 = vst.msk [vmem:[#allocation2 + $0x39] sm:$0xff] %vm411_vm5, %v365_v21  ;;  %v5767_v25 = vpack.c.bf16 %v448_v23, %v447_v22  ;;  %v501_v26 = vpack.c.bf16 %v449_v24, %v449_v24 }
 0x12b   : > { %873 = vrot.lane.b32.xlu1 %v5767_v25, %s5424_s26  ;;  %v795_v27 = vrot.slane %v5767_v25, 1  ;;  %v796_v28 = vrot.slane %v501_v26, 1  ;;  %v550_v29 = vshll.u32 %v5767_v25, 16  ;;  %v548_v34 = vshrl.u32 %v5767_v25, 16 }
 0x12c   : > { %v366_v30 = vpop.trf.xlu0  ;;  %v555_v35 = vshll.u32 %v501_v26, 16  ;;  %v450_v46 = vld [vmem:[#allocation2 + $0x30] sm:$0xff] }
 0x12d   : > { %416 = vst.msk [vmem:[#allocation2 + $0x49] sm:$0xff] %vm411_vm5, %v366_v30  ;;  %v797_v31 = vsel %vm791_vm3, %v795_v27, %v796_v28  ;;  %v552_v32 = vrot.slane %v550_v29, 1 }
 0x12e   : > { %v557_v38 = vrot.slane %v555_v35, 1 }
 0x12f   : > { %842 = vrot.lane.b32.xlu1 %v797_v31, %s5422_s25  ;;  %v553_v36 = vor.u32 %v552_v32, %v548_v34 }
 0x130   : > { %v367_v33 = vpop.trf.xlu0  ;;  %v451_v47 = vld [vmem:[#allocation2 + $0x38] sm:$0xff]  ;;  %v452_v51 = vld [vmem:[#allocation2 + $0x40] sm:$0x3] }
 0x131   : > { %417 = vst.msk [vmem:[#allocation2 + $0x51] sm:$0xff] %vm411_vm5, %v367_v33  ;;  %v558_v39 = vsel %vm534_vm4, %v553_v36, %v557_v38  ;;  %v5792_v53 = vpack.c.bf16 %v451_v47, %v450_v46  ;;  %v503_v56 = vpack.c.bf16 %v452_v51, %v452_v51 }
 0x133   : > { %953 = vrot.lane.b32.xlu1 %v797_v31, %s5425_s30  ;;  %v798_v60 = vrot.slane %v5792_v53, 1  ;;  %v799_v61 = vrot.slane %v503_v56, 1  ;;  %v562_v62 = vshll.u32 %v5792_v53, 16  ;;  %v560_v2 = vshrl.u32 %v5792_v53, 16 }
 0x134   : > { %v368_v37 = vpop.trf.xlu0  ;;  %v453_v40 = vld [vmem:[#allocation2 + $0x48] sm:$0xff]  ;;  %v567_v4 = vshll.u32 %v503_v56, 16 }
 0x135   : > { %418 = vst.msk [vmem:[#allocation2 + $0x61] sm:$0xff] %vm411_vm5, %v368_v37  ;;  %v5808_v1 = vsel %vm791_vm3, %v798_v60, %v799_v61  ;;  %v564_v3 = vrot.slane %v562_v62, 1 }
 0x136   : > { %v569_v9 = vrot.slane %v567_v4, 1 }
 0x137   : > { %729 = vrot.lane.b32.xlu1 %v558_v39, %s5423_s9  ;;  %v565_v8 = vor.u32 %v564_v3, %v560_v2 }
 0x138   : > { %v454_v41 = vld [vmem:[#allocation2 + $0x50] sm:$0xff]  ;;  %v369_v42 = vpop.trf.xlu0  ;;  %v455_v43 = vld [vmem:[#allocation2 + $0x58] sm:$0x3] }
 0x139   : > { %419 = vst.msk [vmem:[#allocation2 + $0x69] sm:$0xff] %vm411_vm5, %v369_v42  ;;  %v5783_v44 = vpack.c.bf16 %v454_v41, %v453_v40  ;;  %v5785_v45 = vpack.c.bf16 %v455_v43, %v455_v43  ;;  %v570_v12 = vsel %vm534_vm4, %v565_v8, %v569_v9 }
 0x13b   : > { %917 = vrot.lane.b32.xlu1 %v558_v39, %s5426_s15  ;;  %v572_v48 = vshrl.u32 %v5783_v44, 16  ;;  %v574_v49 = vshll.u32 %v5783_v44, 16  ;;  %v579_v50 = vshll.u32 %v5785_v45, 16  ;;  %v801_v24 = vrot.slane %v5783_v44, 1 }
 0x13c   : > { %v370_v52 = vpop.trf.xlu0  ;;  %v802_v26 = vrot.slane %v5785_v45, 1  ;;  %v456_v4 = vld [vmem:[#allocation2 + $0x60] sm:$0xff] }
 0x13d   : > { %420 = vst.msk [vmem:[#allocation2 + $0x79] sm:$0xff] %vm411_vm5, %v370_v52  ;;  %v576_v54 = vrot.slane %v574_v49, 1  ;;  %v581_v55 = vrot.slane %v579_v50, 1 }
 0x13e   : > { %v803_v33 = vsel %vm791_vm3, %v801_v24, %v802_v26 }
 0x13f   : > { %875 = vrot.lane.b32.xlu1 %v5792_v53, %s5424_s26  ;;  %v577_v57 = vor.u32 %v576_v54, %v572_v48 }
 0x140   : > { %v371_v58 = vpop.trf.xlu0  ;;  %v457_v6 = vld [vmem:[#allocation2 + $0x68] sm:$0xff] }
 0x141   : > { %421 = vst.msk [vmem:[#allocation2 + $0x81] sm:$0xff] %vm411_vm5, %v371_v58  ;;  %v5798_v59 = vsel %vm534_vm4, %v577_v57, %v581_v55  ;;  %v5889_v13 = vpack.c.bf16 %v457_v6, %v456_v4  ;;  %v5946_v4 = vpop.permute.xlu1 %840 }
 0x142   : > { %733 = vrot.lane.b32.xlu0 %v5798_v59, %s5423_s9 }
 0x143   : > { %986 = vrot.lane.b32.xlu1 %v5792_v53, %s5427_s16  ;;  %v804_v17 = vrot.slane %v5889_v13, 1 }
 0x144   : > { %v372_v0 = vpop.trf.xlu0 }
 0x145   : > { %422 = vst.msk [vmem:[#allocation2 + $0x91] sm:$0xff] %vm411_vm5, %v372_v0 }
 0x147   : > { %955 = vrot.lane.b32.xlu1 %v5808_v1, %s5425_s30 }
 0x148   : > { %v373_v7 = vpop.trf.xlu0 }
 0x149   : > { %423 = vst.msk [vmem:[#allocation2 + $0x99] sm:$0xff] %vm411_vm5, %v373_v7 }
 0x14b   : > { %1066 = vrot.lane.b32.xlu1 %v5808_v1, %s5428_s8 }
 0x14c   : > { %v374_v11 = vpop.trf.xlu0 }
 0x14d   : > { %424 = vst.msk [vmem:[#allocation2 + $0xa9] sm:$0xff] %vm411_vm5, %v374_v11  ;;  %v458_v11 = vld [vmem:[#allocation2 + $0x70] sm:$0x3] }
 0x14f   : > { %919 = vrot.lane.b32.xlu1 %v570_v12, %s5426_s15 }
 0x150   : > { %v375_v14 = vpop.trf.xlu0 }
 0x151   : > { %425 = vst.msk [vmem:[#allocation2 + $0xb1] sm:$0xff] %vm411_vm5, %v375_v14  ;;  %v507_v14 = vpack.c.bf16 %v458_v11, %v458_v11 }
 0x153   : > { %1030 = vrot.lane.b32.xlu1 %v570_v12, %s5429_s14 }
 0x154   : > { %v376_v16 = vpop.trf.xlu0  ;;  %v465_v18 = vld [vmem:[#allocation2 + $0xa8] sm:$0xff] }
 0x155   : > { %426 = vst.msk [vmem:[#allocation2 + $0xc1] sm:$0xff] %vm411_vm5, %v376_v16 }
 0x157   : > { %731 = vrot.lane.b32.xlu1 %v570_v12, %s5423_s9 }
 0x158   : > { %v466_v19 = vld [vmem:[#allocation2 + $0xb0] sm:$0xff]  ;;  %v467_v20 = vld [vmem:[#allocation2 + $0xb8] sm:$0x3]  ;;  %v377_v21 = vpop.trf.xlu0 }
 0x159   : > { %v5825_v22 = vpack.c.bf16 %v466_v19, %v465_v18  ;;  %v513_v23 = vpack.c.bf16 %v467_v20, %v467_v20  ;;  %427 = vst.msk [vmem:[#allocation2 + $0xc9] sm:$0xff] %vm411_vm5, %v377_v21  ;;  %v805_v18 = vrot.slane %v507_v14, 1  ;;  %v586_v19 = vshll.u32 %v5889_v13, 16 }
 0x15b   : > { %988 = vrot.lane.b32.xlu1 %v5783_v44, %s5427_s16  ;;  %996 = vrot.lane.b32.xlu0 %v5825_v22, %s5427_s16  ;;  %v620_v27 = vshrl.u32 %v5825_v22, 16  ;;  %v622_v28 = vshll.u32 %v5825_v22, 16  ;;  %v627_v29 = vshll.u32 %v513_v23, 16  ;;  %v813_v35 = vrot.slane %v5825_v22, 1 }
 0x15c   : > { %v394_v30 = vpop.trf.xlu0  ;;  %v814_v36 = vrot.slane %v513_v23, 1  ;;  %v468_v38 = vld [vmem:[#allocation2 + $0xc0] sm:$0xff] }
 0x15d   : > { %v624_v31 = vrot.slane %v622_v28, 1  ;;  %v629_v32 = vrot.slane %v627_v29, 1  ;;  %428 = vst.msk [vmem:[#allocation2 + $0xd9] sm:$0xff] %vm411_vm5, %v394_v30  ;;  %v5911_v28 = vsel %vm791_vm3, %v804_v17, %v805_v18  ;;  %v584_v29 = vshrl.u32 %v5889_v13, 16 }
 0x15e   : > { %v5849_v41 = vsel %vm791_vm3, %v813_v35, %v814_v36  ;;  %v588_v30 = vrot.slane %v586_v19, 1 }
 0x15f   : > { %1068 = vrot.lane.b32.xlu1 %v803_v33, %s5428_s8  ;;  %v625_v34 = vor.u32 %v624_v31, %v620_v27  ;;  %v591_v31 = vshll.u32 %v507_v14, 16 }
 0x160   : > { %v395_v37 = vpop.trf.xlu0  ;;  %v469_v39 = vld [vmem:[#allocation2 + $0xc8] sm:$0xff]  ;;  %v470_v43 = vld [vmem:[#allocation2 + $0xd0] sm:$0x3]  ;;  %v589_v36 = vor.u32 %v588_v30, %v584_v29 }
 0x161   : > { %v5841_v40 = vsel %vm534_vm4, %v625_v34, %v629_v32  ;;  %429 = vst.msk [vmem:[#allocation2 + $0xe1] sm:$0xff] %vm411_vm5, %v395_v37  ;;  %v5851_v42 = vpack.c.bf16 %v469_v39, %v468_v38  ;;  %v515_v46 = vpack.c.bf16 %v470_v43, %v470_v43  ;;  %v593_v37 = vrot.slane %v591_v31, 1 }
 0x162   : > { %1040 = vrot.lane.b32.xlu0 %v5841_v40, %s5429_s14 }
 0x163   : > { %1032 = vrot.lane.b32.xlu1 %v5798_v59, %s5429_s14  ;;  %v634_v47 = vshll.u32 %v5851_v42, 16  ;;  %v632_v49 = vshrl.u32 %v5851_v42, 16  ;;  %v639_v51 = vshll.u32 %v515_v46, 16  ;;  %v816_v62 = vrot.slane %v5851_v42, 1 }
 0x164   : > { %v396_v45 = vpop.trf.xlu0  ;;  %v471_v52 = vld [vmem:[#allocation2 + $0xd8] sm:$0xff]  ;;  %v817_v0 = vrot.slane %v515_v46, 1 }
 0x165   : > { %430 = vst.msk [vmem:[#allocation2 + $0xf1] sm:$0xff] %vm411_vm5, %v396_v45  ;;  %v636_v50 = vrot.slane %v634_v47, 1  ;;  %v641_v57 = vrot.slane %v639_v51, 1  ;;  %v594_v45 = vsel %vm534_vm4, %v589_v36, %v593_v37 }
 0x166   : > { %1076 = vrot.lane.b32.xlu0 %v5849_v41, %s5428_s8  ;;  %v5886_v7 = vsel %vm791_vm3, %v816_v62, %v817_v0 }
 0x167   : > { %844 = vrot.lane.b32.xlu1 %v5808_v1, %s5422_s25  ;;  %v637_v56 = vor.u32 %v636_v50, %v632_v49  ;;  %v459_v49 = vld [vmem:[#allocation2 + $0x78] sm:$0xff]  ;;  %v460_v50 = vld [vmem:[#allocation2 + $0x80] sm:$0xff] }
 0x168   : > { %v397_v48 = vpop.trf.xlu0  ;;  %v472_v54 = vld [vmem:[#allocation2 + $0xe0] sm:$0xff]  ;;  %v473_v60 = vld [vmem:[#allocation2 + $0xe8] sm:$0x3] }
 0x169   : > { %431 = vst.msk [vmem:[#allocation2 + $0xf9] sm:$0xff] %vm411_vm5, %v397_v48  ;;  %v5869_v58 = vpack.c.bf16 %v472_v54, %v471_v52  ;;  %v5877_v63 = vsel %vm534_vm4, %v637_v56, %v641_v57  ;;  %v517_v1 = vpack.c.bf16 %v473_v60, %v473_v60  ;;  %v461_v60 = vld [vmem:[#allocation2 + $0x88] sm:$0x3] }
 0x16a   : > { %741 = vrot.lane.b32.xlu0 %v5841_v40, %s5423_s9 }
 0x16b   : > { %846 = vrot.lane.b32.xlu1 %v803_v33, %s5422_s25  ;;  %v646_v2 = vshll.u32 %v5869_v58, 16  ;;  %v644_v8 = vshrl.u32 %v5869_v58, 16  ;;  %v651_v10 = vshll.u32 %v517_v1, 16  ;;  %v819_v21 = vrot.slane %v5869_v58, 1 }
 0x16c   : > { %v398_v55 = vpop.trf.xlu0  ;;  %v820_v23 = vrot.slane %v517_v1, 1  ;;  %v474_v24 = vld [vmem:[#allocation2 + $0xf0] sm:$0xff] }
 0x16d   : > { %432 = vst.msk [vmem:[#allocation2 + $0x109] sm:$0xff] %vm411_vm5, %v398_v55  ;;  %v648_v9 = vrot.slane %v646_v2, 1  ;;  %v653_v15 = vrot.slane %v651_v10, 1  ;;  %v5936_v55 = vpack.c.bf16 %v460_v50, %v459_v49  ;;  %v509_v2 = vpack.c.bf16 %v461_v60, %v461_v60  ;;  %v462_v50 = vld [vmem:[#allocation2 + $0x90] sm:$0xff] }
 0x16e   : > { %854 = vrot.lane.b32.xlu0 %v5849_v41, %s5422_s25  ;;  %v5917_v32 = vsel %vm791_vm3, %v819_v21, %v820_v23 }
 0x16f   : > { %877 = vrot.lane.b32.xlu1 %v5783_v44, %s5424_s26  ;;  %v808_v14 = vrot.slane %v509_v2, 1 }
 0x170   : > { %v399_v61 = vpop.trf.xlu0  ;;  %v475_v26 = vld [vmem:[#allocation2 + $0xf8] sm:$0xff]  ;;  %v476_v34 = vld [vmem:[#allocation2 + $0x100] sm:$0x3] }
 0x171   : > { %433 = vst.msk [vmem:[#allocation2 + $0x111] sm:$0xff] %vm411_vm5, %v399_v61  ;;  %v519_v38 = vpack.c.bf16 %v476_v34, %v476_v34 }
 0x172   : > { %887 = vrot.lane.b32.xlu0 %v5851_v42, %s5424_s26 }
 0x173   : > { %957 = vrot.lane.b32.xlu1 %v803_v33, %s5425_s30  ;;  %v5919_v33 = vpack.c.bf16 %v475_v26, %v474_v24  ;;  %v663_v48 = vshll.u32 %v519_v38, 16  ;;  %v5964_v24 = vpop.permute.xlu1 %727 }
 0x174   : > { %v400_v3 = vpop.trf.xlu0  ;;  %v477_v51 = vld [vmem:[#allocation2 + $0x108] sm:$0xff] }
 0x175   : > { %434 = vst.msk [vmem:[#allocation2 + $0x121] sm:$0xff] %vm411_vm5, %v400_v3  ;;  %v658_v39 = vshll.u32 %v5919_v33, 16  ;;  %v656_v46 = vshrl.u32 %v5919_v33, 16  ;;  %v665_v57 = vrot.slane %v663_v48, 1  ;;  %v822_v1 = vrot.slane %v5919_v33, 1 }
 0x176   : > { %931 = vrot.lane.b32.xlu0 %v5877_v63, %s5426_s15  ;;  %v598_v3 = vshll.u32 %v5936_v55, 16 }
 0x177   : > { %921 = vrot.lane.b32.xlu1 %v5798_v59, %s5426_s15  ;;  %v649_v59 = vor.u32 %v648_v9, %v644_v8  ;;  %v660_v47 = vrot.slane %v658_v39, 1  ;;  %v823_v8 = vrot.slane %v519_v38, 1 }
 0x178   : > { %v401_v12 = vpop.trf.xlu0  ;;  %v478_v52 = vld [vmem:[#allocation2 + $0x110] sm:$0xff]  ;;  %v479_v62 = vld [vmem:[#allocation2 + $0x118] sm:$0x3] }
 0x179   : > { %435 = vst.msk [vmem:[#allocation2 + $0x129] sm:$0xff] %vm411_vm5, %v401_v12  ;;  %v5904_v20 = vsel %vm534_vm4, %v649_v59, %v653_v15  ;;  %v661_v56 = vor.u32 %v660_v47, %v656_v46  ;;  %v5939_v61 = vpack.c.bf16 %v478_v52, %v477_v51  ;;  %v521_v9 = vpack.c.bf16 %v479_v62, %v479_v62  ;;  %v463_v51 = vld [vmem:[#allocation2 + $0x98] sm:$0xff] }
 0x17a   : > { %967 = vrot.lane.b32.xlu0 %v5886_v7, %s5425_s30  ;;  %v807_v12 = vrot.slane %v5936_v55, 1  ;;  %v596_v59 = vshrl.u32 %v5936_v55, 16  ;;  %v600_v15 = vrot.slane %v598_v3, 1  ;;  %v5961_v17 = vsel %vm791_vm3, %v822_v1, %v823_v8 }
 0x17b   : > { %879 = vrot.lane.b32.xlu1 %v5889_v13, %s5424_s26  ;;  %v5950_v6 = vsel %vm534_vm4, %v661_v56, %v665_v57  ;;  %v670_v10 = vshll.u32 %v5939_v61, 16  ;;  %v668_v18 = vshrl.u32 %v5939_v61, 16  ;;  %v675_v21 = vshll.u32 %v521_v9, 16 }
 0x17c   : > { %v402_v16 = vpop.trf.xlu0  ;;  %v5970_v26 = vsel %vm791_vm3, %v807_v12, %v808_v14  ;;  %v825_v37 = vrot.slane %v5939_v61, 1  ;;  %v826_v38 = vrot.slane %v521_v9, 1  ;;  %v480_v39 = vld [vmem:[#allocation2 + $0x120] sm:$0xff]  ;;  %v6005_v57 = vpack.c.bf16 %v463_v51, %v462_v50 }
 0x17d   : > { %436 = vst.msk [vmem:[#allocation2 + $0x139] sm:$0xff] %vm411_vm5, %v402_v16  ;;  %v603_v16 = vshll.u32 %v509_v2, 16  ;;  %v672_v19 = vrot.slane %v670_v10, 1  ;;  %v677_v31 = vrot.slane %v675_v21, 1 }
 0x17e   : > { %1000 = vrot.lane.b32.xlu0 %v5869_v58, %s5427_s16  ;;  %v5990_v46 = vsel %vm791_vm3, %v825_v37, %v826_v38  ;;  %v610_v9 = vshll.u32 %v6005_v57, 16 }
 0x17f   : > { %990 = vrot.lane.b32.xlu1 %v5889_v13, %s5427_s16  ;;  %v605_v29 = vrot.slane %v603_v16, 1  ;;  %v673_v30 = vor.u32 %v672_v19, %v668_v18  ;;  %v608_v16 = vshrl.u32 %v6005_v57, 16 }
 0x180   : > { %v403_v27 = vpop.trf.xlu0  ;;  %v482_v48 = vld [vmem:[#allocation2 + $0x130] sm:$0x3]  ;;  %v612_v18 = vrot.slane %v610_v9, 1 }
 0x181   : > { %437 = vst.msk [vmem:[#allocation2 + $0x141] sm:$0xff] %vm411_vm5, %v403_v27  ;;  %v601_v27 = vor.u32 %v600_v15, %v596_v59  ;;  %v5981_v36 = vsel %vm534_vm4, %v673_v30, %v677_v31  ;;  %v523_v52 = vpack.c.bf16 %v482_v48, %v482_v48 }
 0x182   : > { %1044 = vrot.lane.b32.xlu0 %v5904_v20, %s5429_s14  ;;  %v613_v31 = vor.u32 %v612_v18, %v608_v16 }
 0x183   : > { %959 = vrot.lane.b32.xlu1 %v5911_v28, %s5425_s30 }
 0x184   : > { %v404_v35 = vpop.trf.xlu0  ;;  %v483_v1 = vld [vmem:[#allocation2 + $0x138] sm:$0xff] }
 0x185   : > { %438 = vst.msk [vmem:[#allocation2 + $0x151] sm:$0xff] %vm411_vm5, %v404_v35  ;;  %v606_v35 = vsel %vm534_vm4, %v601_v27, %v605_v29 }
 0x186   : > { %1080 = vrot.lane.b32.xlu0 %v5917_v32, %s5428_s8 }
 0x187   : > { %1070 = vrot.lane.b32.xlu1 %v5911_v28, %s5428_s8 }
 0x188   : > { %v405_v43 = vpop.trf.xlu0  ;;  %v484_v2 = vld [vmem:[#allocation2 + $0x140] sm:$0xff]  ;;  %v485_v14 = vld [vmem:[#allocation2 + $0x148] sm:$0x3] }
 0x189   : > { %439 = vst.msk [vmem:[#allocation2 + $0x159] sm:$0xff] %vm411_vm5, %v405_v43  ;;  %v481_v43 = vld [vmem:[#allocation2 + $0x128] sm:$0xff]  ;;  %v6015_v12 = vpack.c.bf16 %v484_v2, %v483_v1  ;;  %v525_v27 = vpack.c.bf16 %v485_v14, %v485_v14 }
 0x18a   : > { %745 = vrot.lane.b32.xlu0 %v5904_v20, %s5423_s9  ;;  %v5992_v47 = vpack.c.bf16 %v481_v43, %v480_v39 }
 0x18b   : > { %923 = vrot.lane.b32.xlu1 %v594_v45, %s5426_s15  ;;  %v694_v29 = vshll.u32 %v6015_v12, 16  ;;  %v692_v39 = vshrl.u32 %v6015_v12, 16  ;;  %v699_v48 = vshll.u32 %v525_v27, 16 }
 0x18c   : > { %v406_v54 = vpop.trf.xlu0  ;;  %v680_v60 = vshrl.u32 %v5992_v47, 16  ;;  %v828_v15 = vrot.slane %v5992_v47, 1  ;;  %v486_v9 = vld [vmem:[#allocation2 + $0x150] sm:$0xff] }
 0x18d   : > { %440 = vst.msk [vmem:[#allocation2 + $0x169] sm:$0xff] %vm411_vm5, %v406_v54  ;;  %v682_v54 = vshll.u32 %v5992_v47, 16  ;;  %v696_v43 = vrot.slane %v694_v29, 1 }
 0x18e   : > { %858 = vrot.lane.b32.xlu0 %v5917_v32, %s5422_s25 }
 0x18f   : > { %1034 = vrot.lane.b32.xlu1 %v594_v45, %s5429_s14  ;;  %v684_v62 = vrot.slane %v682_v54, 1  ;;  %v1099_v54 = vsel %vm411_vm5, %v5753_v5, %v5964_v24  ;;  %v831_v5 = vrot.slane %v6015_v12, 1  ;;  %v832_v24 = vrot.slane %v525_v27, 1 }
 0x190   : > { %v407_v0 = vpop.trf.xlu0 }
 0x191   : > { %441 = vst.msk [vmem:[#allocation2 + $0x171] sm:$0xff] %vm411_vm5, %v407_v0  ;;  %v687_v0 = vshll.u32 %v523_v52, 16  ;;  %v685_v10 = vor.u32 %v684_v62, %v680_v60  ;;  %v810_v62 = vrot.slane %v6005_v57, 1 }
 0x192   : > { %891 = vrot.lane.b32.xlu0 %v5919_v33, %s5424_s26 }
 0x193   : > { %735 = vrot.lane.b32.xlu1 %v594_v45, %s5423_s9 }
 0x194   : > { %v408_v11 = vpop.trf.xlu0 }
 0x195   : > { %442 = vst.msk [vmem:[#allocation2 + $0x181] sm:$0xff] %vm411_vm5, %v408_v11  ;;  %v689_v11 = vrot.slane %v687_v0, 1 }
 0x196   : > { %935 = vrot.lane.b32.xlu0 %v5950_v6, %s5426_s15 }
 0x197   : > { %992 = vrot.lane.b32.xlu1 %v5936_v55, %s5427_s16  ;;  %v6026_v21 = vsel %vm534_vm4, %v685_v10, %v689_v11  ;;  %v487_v10 = vld [vmem:[#allocation2 + $0x158] sm:$0xff] }
 0x198   : > { %v409_v23 = vpop.trf.xlu0  ;;  %v6069_v14 = vpack.c.bf16 %v487_v10, %v486_v9 }
 0x199   : > { %443 = vst.msk [vmem:[#allocation2 + $0x189] sm:$0xff] %vm411_vm5, %v409_v23  ;;  %v829_v23 = vrot.slane %v523_v52, 1  ;;  %v697_v52 = vor.u32 %v696_v43, %v692_v39  ;;  %v489_v39 = vld [vmem:[#allocation2 + $0x168] sm:$0xff]  ;;  %v490_v43 = vld [vmem:[#allocation2 + $0x170] sm:$0xff] }
 0x19a   : > { %971 = vrot.lane.b32.xlu0 %v5961_v17, %s5425_s30  ;;  %v706_v27 = vshll.u32 %v6069_v14, 16  ;;  %v704_v29 = vshrl.u32 %v6069_v14, 16 }
 0x19b   : > { %1072 = vrot.lane.b32.xlu1 %v5970_v26, %s5428_s8  ;;  %v6033_v38 = vsel %vm791_vm3, %v828_v15, %v829_v23 }
 0x19d   : > { %v5974_v34 = vpop.permute.xlu1 %873 }
 0x19e   : > { %1004 = vrot.lane.b32.xlu0 %v5939_v61, %s5427_s16 }
 0x19f   : > { %1036 = vrot.lane.b32.xlu1 %v606_v35, %s5429_s14 }
 0x1a1   : > { %v5984_v45 = vpop.permute.xlu1 %842 }
 0x1a2   : > { %1048 = vrot.lane.b32.xlu0 %v5981_v36, %s5429_s14 }
 0x1a3   : > { %737 = vrot.lane.b32.xlu1 %v606_v35, %s5423_s9 }
 0x1a5   : > { %v5994_v49 = vpop.permute.xlu1 %953 }
 0x1a6   : > { %1084 = vrot.lane.b32.xlu0 %v5990_v46, %s5428_s8 }
 0x1a7   : > { %848 = vrot.lane.b32.xlu1 %v5911_v28, %s5422_s25  ;;  %v464_v28 = vld [vmem:[#allocation2 + $0xa0] sm:$0x3] }
 0x1a8   : > { %v511_v8 = vpack.c.bf16 %v464_v28, %v464_v28  ;;  %v1132_v28 = vsel %vm1130_vm7, %v1099_v54, %v5946_v4 }
 0x1a9   : > { %v6001_v56 = vpop.permute.xlu1 %729  ;;  %v1165_v2 = vsel %vm1163_vm8, %v1132_v28, %v5974_v34  ;;  %v834_v28 = vrot.slane %v6069_v14, 1 }
 0x1aa   : > { %749 = vrot.lane.b32.xlu0 %v5981_v36, %s5423_s9  ;;  %v615_v19 = vshll.u32 %v511_v8, 16  ;;  %v811_v0 = vrot.slane %v511_v8, 1 }
 0x1ab   : > { %850 = vrot.lane.b32.xlu1 %v5970_v26, %s5422_s25 }
 0x1ac   : > { %v617_v37 = vrot.slane %v615_v19, 1  ;;  %v812_v4 = vsel %vm791_vm3, %v810_v62, %v811_v0  ;;  %v491_v0 = vld [vmem:[#allocation2 + $0x178] sm:$0x3] }
 0x1ad   : > { %v918_v3 = vpop.permute.xlu1 %917 }
 0x1ae   : > { %862 = vrot.lane.b32.xlu0 %v5990_v46, %s5422_s25  ;;  %v6041_v51 = vsel %vm534_vm4, %v613_v31, %v617_v37  ;;  %v1197_v11 = vsel %vm300_vm0, %v1165_v2, %v918_v3  ;;  %v488_v3 = vld [vmem:[#allocation2 + $0x160] sm:$0x3]  ;;  %v1101_v37 = vsel %vm411_vm5, %v5767_v25, %v6001_v56 }
 0x1af   : > { %881 = vrot.lane.b32.xlu1 %v5936_v55, %s5424_s26  ;;  %v1230_v34 = vsel %vm1228_vm9, %v1197_v11, %v5994_v49  ;;  %v527_v23 = vpack.c.bf16 %v488_v3, %v488_v3 }
 0x1b1   : > { %v6017_v59 = vpop.permute.xlu1 %875  ;;  %v711_v31 = vshll.u32 %v527_v23, 16 }
 0x1b2   : > { %895 = vrot.lane.b32.xlu0 %v5992_v47, %s5424_s26 }
 0x1b3   : > { %883 = vrot.lane.b32.xlu1 %v6005_v57, %s5424_s26  ;;  %v713_v54 = vrot.slane %v711_v31, 1  ;;  %v493_v31 = vld [vmem:[#allocation2 + $0x188] sm:$0xff] }
 0x1b5   : > { %v987_v30 = vpop.permute.xlu1 %986 }
 0x1b6   : > { %939 = vrot.lane.b32.xlu0 %v6026_v21, %s5426_s15  ;;  %v1263_v15 = vsel %vm1261_vm10, %v1230_v34, %v987_v30  ;;  %v708_v30 = vrot.slane %v706_v27, 1 }
 0x1b7   : > { %925 = vrot.lane.b32.xlu1 %v606_v35, %s5426_s15  ;;  %v701_v35 = vrot.slane %v699_v48, 1 }
 0x1b9   : > { %v6036_v50 = vpop.permute.xlu1 %955  ;;  %v6056_v1 = vsel %vm534_vm4, %v697_v52, %v701_v35  ;;  %v1134_v52 = vsel %vm1130_vm7, %v1101_v37, %v5984_v45  ;;  %v709_v35 = vor.u32 %v708_v30, %v704_v29  ;;  %v6140_v29 = vpop.permute.xlu0 %733  ;;  %v492_v30 = vld [vmem:[#allocation2 + $0x180] sm:$0xff] }
 0x1ba   : > { %975 = vrot.lane.b32.xlu0 %v6033_v38, %s5425_s30  ;;  %v1167_v62 = vsel %vm1163_vm8, %v1134_v52, %v6017_v59 }
 0x1bb   : > { %927 = vrot.lane.b32.xlu1 %v6041_v51, %s5426_s15  ;;  %v6108_v45 = vsel %vm534_vm4, %v709_v35, %v713_v54 }
 0x1bd   : > { %v1067_v60 = vpop.permute.xlu1 %1066 }
 0x1be   : > { %1008 = vrot.lane.b32.xlu0 %v6015_v12, %s5427_s16 }
 0x1bf   : > { %961 = vrot.lane.b32.xlu1 %v5970_v26, %s5425_s30  ;;  %v6067_v26 = vsel %vm791_vm3, %v831_v5, %v832_v24  ;;  %v835_v5 = vrot.slane %v527_v23, 1  ;;  %v529_v24 = vpack.c.bf16 %v491_v0, %v491_v0 }
 0x1c1   : > { %v920_v8 = vpop.permute.xlu1 %919  ;;  %v838_v27 = vrot.slane %v529_v24, 1 }
 0x1c2   : > { %1052 = vrot.lane.b32.xlu0 %v6056_v1, %s5429_s14  ;;  %v1199_v25 = vsel %vm300_vm0, %v1167_v62, %v920_v8  ;;  %v6118_v8 = vsel %vm791_vm3, %v834_v28, %v835_v5  ;;  %v495_v28 = vld [vmem:[#allocation2 + $0x198] sm:$0xff]  ;;  %v496_v5 = vld [vmem:[#allocation2 + $0x1a0] sm:$0xff] }
 0x1c3   : > { %963 = vrot.lane.b32.xlu1 %v812_v4, %s5425_s30  ;;  %v1232_v59 = vsel %vm1228_vm9, %v1199_v25, %v6036_v50 }
 0x1c5   : > { %v1031_v16 = vpop.permute.xlu1 %1030 }
 0x1c6   : > { %v1296_v18 = vsel %vm1294_vm11, %v1263_v15, %v1031_v16  ;;  %1088 = vrot.lane.b32.xlu0 %v6067_v26, %s5428_s8  ;;  %v723_v15 = vshll.u32 %v529_v24, 16 }
 0x1c7   : > { %994 = vrot.lane.b32.xlu1 %v6005_v57, %s5427_s16  ;;  %v1329_v19 = vsel %vm1327_vm12, %v1296_v18, %v1067_v60  ;;  %v6097_v60 = vpack.c.bf16 %v490_v43, %v489_v39 }
 0x1c8   : > { %4949 = vmatprep.mubr.msk.bf16.mxu0 %vm1396_vm13, %v1329_v19  ;;  %v725_v18 = vrot.slane %v723_v15, 1 }
 0x1c9   : > { %v6082_v49 = vpop.permute.xlu1 %731  ;;  %v718_v2 = vshll.u32 %v6097_v60, 16  ;;  %v716_v34 = vshrl.u32 %v6097_v60, 16  ;;  %v837_v23 = vrot.slane %v6097_v60, 1 }
 0x1ca   : > { %753 = vrot.lane.b32.xlu0 %v6056_v1, %s5423_s9 }
 0x1cb   : > { %1038 = vrot.lane.b32.xlu1 %v6041_v51, %s5429_s14  ;;  %v720_v3 = vrot.slane %v718_v2, 1  ;;  %v6147_v39 = vsel %vm791_vm3, %v837_v23, %v838_v27 }
 0x1cd   : > { %v989_v48 = vpop.permute.xlu1 %988  ;;  %v721_v16 = vor.u32 %v720_v3, %v716_v34  ;;  %v6151_v43 = vpop.permute.xlu0 %996 }
 0x1ce   : > { %866 = vrot.lane.b32.xlu0 %v6067_v26, %s5422_s25  ;;  %v1265_v9 = vsel %vm1261_vm10, %v1232_v59, %v989_v48  ;;  %v494_v48 = vld [vmem:[#allocation2 + $0x190] sm:$0x3] }
 0x1cf   : > { %1074 = vrot.lane.b32.xlu1 %v812_v4, %s5428_s8  ;;  %v531_v35 = vpack.c.bf16 %v494_v48, %v494_v48 }
 0x1d1   : > { %v1069_v56 = vpop.permute.xlu1 %1068 }
 0x1d2   : > { %899 = vrot.lane.b32.xlu0 %v6069_v14, %s5424_s26 }
 0x1d3   : > { %739 = vrot.lane.b32.xlu1 %v6041_v51, %s5423_s9 }
 0x1d5   : > { %v1033_v10 = vpop.permute.xlu1 %1032 }
 0x1d6   : > { %v1298_v11 = vsel %vm1294_vm11, %v1265_v9, %v1033_v10  ;;  %943 = vrot.lane.b32.xlu0 %v6108_v45, %s5426_s15  ;;  %v532_v9 = vpack.c.bf16 %v496_v5, %v495_v28  ;;  %v497_v10 = vld [vmem:[#allocation2 + $0x1a8] sm:$0x3] }
 0x1d7   : > { %852 = vrot.lane.b32.xlu1 %v812_v4, %s5422_s25  ;;  %v1331_v51 = vsel %vm1327_vm12, %v1298_v11, %v1069_v56  ;;  %v6137_v4 = vsel %vm534_vm4, %v721_v16, %v725_v18  ;;  %v913_v56 = vshll.u32 %v531_v35, 16  ;;  %v533_v34 = vpack.c.bf16 %v497_v10, %v497_v10 }
 0x1d8   : > { %4950 = vmatmul.mubr.msk.bf16.vlgmr.msra.gmra.mrb[0].mxu0 %vm1396_vm13, %v1331_v51  ;;  %v951_v16 = vrot.slane %v531_v35, 1  ;;  %v1021_v18 = vshll.u32 %v532_v9, 16  ;;  %v1103_v35 = vsel %vm411_vm5, %v5792_v53, %v6082_v49  ;;  %v1063_v49 = vrot.slane %v532_v9, 1 }
 0x1d9   : > { %v6124_v50 = vpop.permute.xlu1 %844  ;;  %v915_v59 = vrot.slane %v913_v56, 1  ;;  %v1026_v48 = vshll.u32 %v533_v34, 16 }
 0x1da   : > { %979 = vrot.lane.b32.xlu0 %v6118_v8, %s5425_s30 }
 0x1db   : > { %885 = vrot.lane.b32.xlu1 %v5825_v22, %s5424_s26 }
 0x1dd   : > { %v6130_v19 = vpop.permute.xlu1 %846 }
 0x1de   : > { %1012 = vrot.lane.b32.xlu0 %v6097_v60, %s5427_s16 }
 0x1df   : > { %929 = vrot.lane.b32.xlu1 %v5841_v40, %s5426_s15  ;;  %v6149_v40 = vpack.c.bf16 %v493_v31, %v492_v30  ;;  %v1023_v31 = vrot.slane %v1021_v18, 1 }
 0x1e1   : > { %v878_v37 = vpop.permute.xlu1 %877  ;;  %v908_v54 = vshll.u32 %v6149_v40, 16  ;;  %v906_v0 = vshrl.u32 %v6149_v40, 16  ;;  %v950_v15 = vrot.slane %v6149_v40, 1 }
 0x1e2   : > { %1056 = vrot.lane.b32.xlu0 %v6137_v4, %s5429_s14 }
 0x1e3   : > { %965 = vrot.lane.b32.xlu1 %v5849_v41, %s5425_s30  ;;  %v6158_v41 = vpop.permute.xlu0 %1040  ;;  %v910_v25 = vrot.slane %v908_v54, 1  ;;  %v6186_v30 = vsel %vm791_vm3, %v950_v15, %v951_v16 }
 0x1e5   : > { %v958_v52 = vpop.permute.xlu1 %957  ;;  %v911_v2 = vor.u32 %v910_v25, %v906_v0  ;;  %v1136_v0 = vsel %vm1130_vm7, %v1103_v35, %v6124_v50  ;;  %v1028_v25 = vrot.slane %v1026_v48, 1  ;;  %v1064_v50 = vrot.slane %v533_v34, 1 }
 0x1e6   : > { %1092 = vrot.lane.b32.xlu0 %v6147_v39, %s5428_s8  ;;  %v1169_v28 = vsel %vm1163_vm8, %v1136_v0, %v878_v37  ;;  %v1105_v34 = vsel %vm411_vm5, %v5783_v44, %v6140_v29 }
 0x1e7   : > { %998 = vrot.lane.b32.xlu1 %v5851_v42, %s5427_s16  ;;  %v6169_v11 = vpop.permute.xlu0 %1076  ;;  %v6176_v3 = vsel %vm534_vm4, %v911_v2, %v915_v59 }
 0x1e9   : > { %v922_v62 = vpop.permute.xlu1 %921 }
 0x1ea   : > { %757 = vrot.lane.b32.xlu0 %v6137_v4, %s5423_s9  ;;  %v1201_v5 = vsel %vm300_vm0, %v1169_v28, %v922_v62  ;;  %v1065_v62 = vsel %vm791_vm3, %v1063_v49, %v1064_v50 }
 0x1eb   : > { %1042 = vrot.lane.b32.xlu1 %v5877_v63, %s5429_s14  ;;  %v6179_v27 = vpop.permute.xlu0 %741  ;;  %v1234_v59 = vsel %vm1228_vm9, %v1201_v5, %v958_v52 }
 0x1ed   : > { %v880_v24 = vpop.permute.xlu1 %879 }
 0x1ee   : > { %870 = vrot.lane.b32.xlu0 %v6147_v39, %s5422_s25 }
 0x1ef   : > { %1078 = vrot.lane.b32.xlu1 %v5886_v7, %s5428_s8  ;;  %v6197_v56 = vpop.permute.xlu0 %854 }
 0x1f1   : > { %v991_v51 = vpop.permute.xlu1 %990 }
 0x1f2   : > { %903 = vrot.lane.b32.xlu0 %v6149_v40, %s5424_s26  ;;  %v1267_v10 = vsel %vm1261_vm10, %v1234_v59, %v991_v51 }
 0x1f3   : > { %743 = vrot.lane.b32.xlu1 %v5877_v63, %s5423_s9  ;;  %v1019_v63 = vshrl.u32 %v532_v9, 16  ;;  %v6207_v16 = vpop.permute.xlu0 %887 }
 0x1f5   : > { %v960_v23 = vpop.permute.xlu1 %959 }
 0x1f6   : > { %947 = vrot.lane.b32.xlu0 %v6176_v3, %s5426_s15 }
 0x1f7   : > { %856 = vrot.lane.b32.xlu1 %v5886_v7, %s5422_s25  ;;  %v1024_v7 = vor.u32 %v1023_v31, %v1019_v63  ;;  %v6219_v52 = vpop.permute.xlu0 %931 }
 0x1f9   : > { %v1071_v54 = vpop.permute.xlu1 %1070  ;;  %v1029_v53 = vsel %vm534_vm4, %v1024_v7, %v1028_v25 }
 0x1fa   : > { %983 = vrot.lane.b32.xlu0 %v6186_v30, %s5425_s30 }
 0x1fb   : > { %889 = vrot.lane.b32.xlu1 %v5869_v58, %s5424_s26  ;;  %v6230_v48 = vpop.permute.xlu0 %967 }
 0x1fd   : > { %v924_v2 = vpop.permute.xlu1 %923 }
 0x1fe   : > { %1016 = vrot.lane.b32.xlu0 %v532_v9, %s5427_s16 }
 0x1ff   : > { %933 = vrot.lane.b32.xlu1 %v5904_v20, %s5426_s15  ;;  %v6240_v35 = vpop.permute.xlu0 %1000 }
 0x201   : > { %v1035_v15 = vpop.permute.xlu1 %1034 }
 0x202   : > { %v1300_v37 = vsel %vm1294_vm11, %v1267_v10, %v1035_v15  ;;  %1060 = vrot.lane.b32.xlu0 %v1029_v53, %s5429_s14  ;;  %v1788_v53 = vld [vmem:[#allocation2 + $0x8] sm:$0xff] }
 0x203   : > { %969 = vrot.lane.b32.xlu1 %v5917_v32, %s5425_s30  ;;  %v1333_v20 = vsel %vm1327_vm12, %v1300_v37, %v1071_v54  ;;  %v1138_v32 = vsel %vm1130_vm7, %v1105_v34, %v6130_v19 }
 0x204   : > { %4953 = vmatprep.mubr.msk.bf16.mxu0 %vm1396_vm13, %v1333_v20  ;;  %v1171_v18 = vsel %vm1163_vm8, %v1138_v32, %v880_v24 }
 0x205   : > { %v736_v9 = vpop.permute.xlu1 %735  ;;  %v1203_v63 = vsel %vm300_vm0, %v1171_v18, %v924_v2  ;;  %v1787_v2 = vld [vmem:[#allocation2] sm:$0xff] }
 0x206   : > { %1096 = vrot.lane.b32.xlu0 %v1065_v62, %s5428_s8  ;;  %v1236_v54 = vsel %vm1228_vm9, %v1203_v63, %v960_v23  ;;  %v6245_v23 = vpop.permute.xlu0 %1044  ;;  %v6259_v50 = vpack.c.bf16 %v1788_v53, %v1787_v2 }
 0x207   : > { %1002 = vrot.lane.b32.xlu1 %v5919_v33, %s5427_s16 }
 0x208   : > { %v2133_v10 = vrot.slane %v6259_v50, 1 }
 0x209   : > { %v993_v51 = vpop.permute.xlu1 %992 }
 0x20a   : > { %v1269_v44 = vsel %vm1261_vm10, %v1236_v54, %v993_v51 }
 0x20b   : > { %1046 = vrot.lane.b32.xlu1 %v5950_v6, %s5429_s14 }
 0x20d   : > { %v1073_v31 = vpop.permute.xlu1 %1072 }
 0x20f   : > { %1082 = vrot.lane.b32.xlu1 %v5961_v17, %s5428_s8 }
 0x211   : > { %v1037_v29 = vpop.permute.xlu1 %1036 }
 0x212   : > { %v1302_v19 = vsel %vm1294_vm11, %v1269_v44, %v1037_v29 }
 0x213   : > { %747 = vrot.lane.b32.xlu1 %v5950_v6, %s5423_s9  ;;  %v1335_v24 = vsel %vm1327_vm12, %v1302_v19, %v1073_v31  ;;  %v6251_v6 = vpop.permute.xlu0 %1080 }
 0x214   : > { %4954 = vmatmul.mubr.msk.bf16.gmra.mrb[4].mxu0 %vm1396_vm13, %v1335_v24 }
 0x215   : > { %v738_v0 = vpop.permute.xlu1 %737 }
 0x216   : > { %v1109_v32 = vsel %vm411_vm5, %v5936_v55, %v738_v0 }
 0x217   : > { %860 = vrot.lane.b32.xlu1 %v5961_v17, %s5422_s25  ;;  %v1789_v17 = vld [vmem:[#allocation2 + $0x10] sm:$0x3]  ;;  %v6255_v49 = vpop.permute.xlu0 %745 }
 0x218   : > { %v6261_v59 = vpack.c.bf16 %v1789_v17, %v1789_v17 }
 0x219   : > { %v849_v7 = vpop.permute.xlu1 %848 }
 0x21a   : > { %v2134_v15 = vrot.slane %v6261_v59, 1 }
 0x21b   : > { %893 = vrot.lane.b32.xlu1 %v5939_v61, %s5424_s26 }
 0x21c   : > { %v2135_v37 = vsel %vm791_vm3, %v2133_v10, %v2134_v15 }
 0x21d   : > { %v851_v25 = vpop.permute.xlu1 %850  ;;  %2181 = vrot.lane.b32.xlu0 %v2135_v37, %s5426_s15 }
 0x21e   : > { %v1142_v18 = vsel %vm1130_vm7, %v1109_v32, %v851_v25 }
 0x21f   : > { %937 = vrot.lane.b32.xlu1 %v5981_v36, %s5426_s15 }
 0x221   : > { %v882_v28 = vpop.permute.xlu1 %881 }
 0x223   : > { %973 = vrot.lane.b32.xlu1 %v5990_v46, %s5425_s30  ;;  %v6267_v46 = vpop.permute.xlu0 %858 }
 0x225   : > { %v884_v5 = vpop.permute.xlu1 %883 }
 0x226   : > { %v1175_v31 = vsel %vm1163_vm8, %v1142_v18, %v884_v5 }
 0x227   : > { %1006 = vrot.lane.b32.xlu1 %v5992_v47, %s5427_s16  ;;  %v6273_v51 = vpop.permute.xlu0 %891 }
 0x229   : > { %v926_v36 = vpop.permute.xlu1 %925 }
 0x22b   : > { %1050 = vrot.lane.b32.xlu1 %v6026_v21, %s5429_s14  ;;  %v6282_v63 = vpop.permute.xlu0 %935 }
 0x22d   : > { %v928_v20 = vpop.permute.xlu1 %927 }
 0x22e   : > { %v1207_v54 = vsel %vm300_vm0, %v1175_v31, %v928_v20 }
 0x22f   : > { %1086 = vrot.lane.b32.xlu1 %v6033_v38, %s5428_s8  ;;  %v6295_v0 = vpop.permute.xlu0 %971 }
 0x231   : > { %v962_v62 = vpop.permute.xlu1 %961 }
 0x233   : > { %751 = vrot.lane.b32.xlu1 %v6026_v21, %s5423_s9  ;;  %v1107_v21 = vsel %vm411_vm5, %v5889_v13, %v736_v9  ;;  %v6311_v53 = vpop.permute.xlu0 %1004 }
 0x234   : > { %v1140_v55 = vsel %vm1130_vm7, %v1107_v21, %v849_v7 }
 0x235   : > { %v964_v34 = vpop.permute.xlu1 %963  ;;  %v1173_v19 = vsel %vm1163_vm8, %v1140_v55, %v882_v28 }
 0x236   : > { %v1240_v29 = vsel %vm1228_vm9, %v1207_v54, %v964_v34  ;;  %v1205_v25 = vsel %vm300_vm0, %v1173_v19, %v926_v36  ;;  %v1878_v19 = vshrl.u32 %v6259_v50, 16 }
 0x237   : > { %864 = vrot.lane.b32.xlu1 %v6033_v38, %s5422_s25  ;;  %v1273_v38 = vsel %vm1261_vm10, %v1240_v29, %v6151_v43  ;;  %v1238_v5 = vsel %vm1228_vm9, %v1205_v25, %v962_v62  ;;  %v6316_v17 = vpop.permute.xlu0 %1048  ;;  %v1113_v62 = vsel %vm411_vm5, %v5825_v22, %v6179_v27 }
 0x238   : > { %v1306_v9 = vsel %vm1294_vm11, %v1273_v38, %v6158_v41  ;;  %v1146_v32 = vsel %vm1130_vm7, %v1113_v62, %v6197_v56 }
 0x239   : > { %v995_v44 = vpop.permute.xlu1 %994  ;;  %v1339_v2 = vsel %vm1327_vm12, %v1306_v9, %v6169_v11 }
 0x23a   : > { %v1271_v13 = vsel %vm1261_vm10, %v1238_v5, %v995_v44 }
 0x23b   : > { %897 = vrot.lane.b32.xlu1 %v6015_v12, %s5424_s26  ;;  %v6322_v36 = vpop.permute.xlu0 %1084 }
 0x23d   : > { %v1039_v24 = vpop.permute.xlu1 %1038 }
 0x23e   : > { %v1304_v7 = vsel %vm1294_vm11, %v1271_v13, %v1039_v24  ;;  %v1885_v24 = vshll.u32 %v6261_v59, 16 }
 0x23f   : > { %941 = vrot.lane.b32.xlu1 %v6056_v1, %s5426_s15  ;;  %v6326_v15 = vpop.permute.xlu0 %749 }
 0x240   : > { %v1887_v25 = vrot.slane %v1885_v24, 1 }
 0x241   : > { %v1075_v28 = vpop.permute.xlu1 %1074 }
 0x242   : > { %v1337_v43 = vsel %vm1327_vm12, %v1304_v7, %v1075_v28 }
 0x243   : > { %977 = vrot.lane.b32.xlu1 %v6067_v26, %s5425_s30  ;;  %4957 = vmatprep.mubr.msk.bf16.mxu0 %vm1396_vm13, %v1337_v43  ;;  %v6337_v34 = vpop.permute.xlu0 %862 }
 0x244   : > { %4958 = vmatmul.mubr.msk.bf16.gmra.mrb[8].mxu0 %vm1396_vm13, %v1339_v2 }
 0x245   : > { %v740_v1 = vpop.permute.xlu1 %739 }
 0x246   : > { %v1111_v20 = vsel %vm411_vm5, %v6005_v57, %v740_v1  ;;  %v1179_v57 = vsel %vm1163_vm8, %v1146_v32, %v6207_v16 }
 0x247   : > { %1010 = vrot.lane.b32.xlu1 %v6069_v14, %s5427_s16  ;;  %v1211_v54 = vsel %vm300_vm0, %v1179_v57, %v6219_v52  ;;  %v6359_v52 = vpop.permute.xlu0 %895 }
 0x248   : > { %v1244_v27 = vsel %vm1228_vm9, %v1211_v54, %v6230_v48  ;;  %v1880_v48 = vshll.u32 %v6259_v50, 16 }
 0x249   : > { %v853_v41 = vpop.permute.xlu1 %852  ;;  %v1277_v44 = vsel %vm1261_vm10, %v1244_v27, %v6240_v35 }
 0x24a   : > { %v1310_v21 = vsel %vm1294_vm11, %v1277_v44, %v6245_v23  ;;  %v1882_v38 = vrot.slane %v1880_v48, 1 }
 0x24b   : > { %1054 = vrot.lane.b32.xlu1 %v6108_v45, %s5429_s14  ;;  %v940_v23 = vpop.permute.xlu0 %939 }
 0x24d   : > { %v886_v26 = vpop.permute.xlu1 %885 }
 0x24f   : > { %1090 = vrot.lane.b32.xlu1 %v6118_v8, %s5428_s8  ;;  %v976_v13 = vpop.permute.xlu0 %975 }
 0x251   : > { %v930_v11 = vpop.permute.xlu1 %929 }
 0x253   : > { %755 = vrot.lane.b32.xlu1 %v6108_v45, %s5423_s9  ;;  %v1144_v45 = vsel %vm1130_vm7, %v1111_v20, %v853_v41  ;;  %v1009_v7 = vpop.permute.xlu0 %1008 }
 0x255   : > { %v966_v10 = vpop.permute.xlu1 %965 }
 0x257   : > { %868 = vrot.lane.b32.xlu1 %v6118_v8, %s5422_s25  ;;  %v1177_v8 = vsel %vm1163_vm8, %v1144_v45, %v886_v26  ;;  %v1053_v59 = vpop.permute.xlu0 %1052 }
 0x258   : > { %v1209_v31 = vsel %vm300_vm0, %v1177_v8, %v930_v11 }
 0x259   : > { %v999_v37 = vpop.permute.xlu1 %998  ;;  %v1242_v22 = vsel %vm1228_vm9, %v1209_v31, %v966_v10 }
 0x25a   : > { %v1275_v56 = vsel %vm1261_vm10, %v1242_v22, %v999_v37 }
 0x25b   : > { %901 = vrot.lane.b32.xlu1 %v6097_v60, %s5424_s26 }
 0x25d   : > { %v1043_v18 = vpop.permute.xlu1 %1042 }
 0x25e   : > { %v1308_v16 = vsel %vm1294_vm11, %v1275_v56, %v1043_v18 }
 0x25f   : > { %945 = vrot.lane.b32.xlu1 %v6137_v4, %s5426_s15  ;;  %v1343_v4 = vsel %vm1327_vm12, %v1310_v21, %v6251_v6 }
 0x261   : > { %v1079_v29 = vpop.permute.xlu1 %1078 }
 0x262   : > { %v1341_v55 = vsel %vm1327_vm12, %v1308_v16, %v1079_v29 }
 0x263   : > { %981 = vrot.lane.b32.xlu1 %v6147_v39, %s5425_s30  ;;  %4961 = vmatprep.mubr.msk.bf16.mxu0 %vm1396_vm13, %v1341_v55  ;;  %v1883_v39 = vor.u32 %v1882_v38, %v1878_v19 }
 0x264   : > { %4962 = vmatmul.mubr.msk.bf16.gmra.mrb[12].mxu0 %vm1396_vm13, %v1343_v4 }
 0x265   : > { %v744_v35 = vpop.permute.xlu1 %743  ;;  %v1888_v9 = vsel %vm534_vm4, %v1883_v39, %v1887_v25 }
 0x266   : > { %v1115_v2 = vsel %vm411_vm5, %v5851_v42, %v744_v35 }
 0x267   : > { %1014 = vrot.lane.b32.xlu1 %v6149_v40, %s5427_s16 }
 0x269   : > { %v857_v6 = vpop.permute.xlu1 %856 }
 0x26a   : > { %v1148_v1 = vsel %vm1130_vm7, %v1115_v2, %v857_v6 }
 0x26b   : > { %1058 = vrot.lane.b32.xlu1 %v6176_v3, %s5429_s14  ;;  %v1117_v3 = vsel %vm411_vm5, %v5869_v58, %v6255_v49  ;;  %v1089_v49 = vpop.permute.xlu0 %1088 }
 0x26d   : > { %v890_v5 = vpop.permute.xlu1 %889 }
 0x26e   : > { %v1181_v41 = vsel %vm1163_vm8, %v1148_v1, %v890_v5 }
 0x26f   : > { %1094 = vrot.lane.b32.xlu1 %v6186_v30, %s5428_s8  ;;  %v1150_v30 = vsel %vm1130_vm7, %v1117_v3, %v6267_v46  ;;  %v754_v8 = vpop.permute.xlu0 %753 }
 0x270   : > { %v1183_v11 = vsel %vm1163_vm8, %v1150_v30, %v6273_v51 }
 0x271   : > { %v934_v40 = vpop.permute.xlu1 %933  ;;  %v1215_v42 = vsel %vm300_vm0, %v1183_v11, %v6282_v63 }
 0x272   : > { %v1213_v10 = vsel %vm300_vm0, %v1181_v41, %v934_v40  ;;  %v1248_v58 = vsel %vm1228_vm9, %v1215_v42, %v6295_v0  ;;  %v1125_v42 = vsel %vm411_vm5, %v6015_v12, %v754_v8 }
 0x273   : > { %2069 = vrot.lane.b32.xlu1 %v1888_v9, %s5422_s25  ;;  %v1281_v46 = vsel %vm1261_vm10, %v1248_v58, %v6311_v53  ;;  %v867_v57 = vpop.permute.xlu0 %866 }
 0x274   : > { %v1314_v51 = vsel %vm1294_vm11, %v1281_v46, %v6316_v17 }
 0x275   : > { %v970_v28 = vpop.permute.xlu1 %969  ;;  %v1347_v63 = vsel %vm1327_vm12, %v1314_v51, %v6322_v36  ;;  %v1121_v36 = vsel %vm411_vm5, %v5939_v61, %v6326_v15 }
 0x276   : > { %v1246_v37 = vsel %vm1228_vm9, %v1213_v10, %v970_v28  ;;  %v1154_v16 = vsel %vm1130_vm7, %v1121_v36, %v6337_v34 }
 0x277   : > { %v900_v54 = vpop.permute.xlu0 %899  ;;  %v1187_v55 = vsel %vm1163_vm8, %v1154_v16, %v6359_v52 }
 0x279   : > { %v1003_v43 = vpop.permute.xlu1 %1002 }
 0x27a   : > { %v1279_v20 = vsel %vm1261_vm10, %v1246_v37, %v1003_v43 }
 0x27b   : > { %v944_v27 = vpop.permute.xlu0 %943 }
 0x27d   : > { %v1047_v26 = vpop.permute.xlu1 %1046 }
 0x27e   : > { %v1312_v62 = vsel %vm1294_vm11, %v1279_v20, %v1047_v26 }
 0x27f   : > { %v980_v4 = vpop.permute.xlu0 %979 }
 0x281   : > { %v1083_v45 = vpop.permute.xlu1 %1082 }
 0x282   : > { %v1345_v32 = vsel %vm1327_vm12, %v1312_v62, %v1083_v45 }
 0x283   : > { %4965 = vmatprep.mubr.msk.bf16.mxu0 %vm1396_vm13, %v1345_v32 }
 0x284   : > { %4966 = vmatmul.mubr.msk.bf16.gmra.mrb[16].mxu0 %vm1396_vm13, %v1347_v63 }
 0x285   : > { %v748_v0 = vpop.permute.xlu1 %747 }
 0x286   : > { %v1119_v17 = vsel %vm411_vm5, %v5919_v33, %v748_v0  ;;  %v1219_v33 = vsel %vm300_vm0, %v1187_v55, %v940_v23  ;;  %v1013_v23 = vpop.permute.xlu0 %1012 }
 0x287   : > { %v1252_v61 = vsel %vm1228_vm9, %v1219_v33, %v976_v13 }
 0x288   : > { %v1285_v19 = vsel %vm1261_vm10, %v1252_v61, %v1009_v7 }
 0x289   : > { %v861_v18 = vpop.permute.xlu1 %860  ;;  %v1318_v24 = vsel %vm1294_vm11, %v1285_v19, %v1053_v59 }
 0x28a   : > { %v1152_v44 = vsel %vm1130_vm7, %v1119_v17, %v861_v18  ;;  %v1351_v6 = vsel %vm1327_vm12, %v1318_v24, %v1089_v49  ;;  %v1057_v5 = vpop.permute.xlu0 %1056  ;;  %v1158_v49 = vsel %vm1130_vm7, %v1125_v42, %v867_v57 }
 0x28b   : > { %v1191_v62 = vsel %vm1163_vm8, %v1158_v49, %v900_v54 }
 0x28c   : > { %v1223_v51 = vsel %vm300_vm0, %v1191_v62, %v944_v27 }
 0x28d   : > { %v894_v53 = vpop.permute.xlu1 %893 }
 0x28e   : > { %v1185_v29 = vsel %vm1163_vm8, %v1152_v44, %v894_v53  ;;  %v1093_v59 = vpop.permute.xlu0 %1092 }
 0x291   : > { %v938_v31 = vpop.permute.xlu1 %937 }
 0x292   : > { %v1217_v48 = vsel %vm300_vm0, %v1185_v29, %v938_v31  ;;  %v758_v26 = vpop.permute.xlu0 %757 }
 0x295   : > { %v974_v22 = vpop.permute.xlu1 %973 }
 0x296   : > { %v1250_v35 = vsel %vm1228_vm9, %v1217_v48, %v974_v22  ;;  %v871_v37 = vpop.permute.xlu0 %870 }
 0x299   : > { %v1007_v56 = vpop.permute.xlu1 %1006 }
 0x29a   : > { %v1283_v15 = vsel %vm1261_vm10, %v1250_v35, %v1007_v56  ;;  %v904_v57 = vpop.permute.xlu0 %903 }
 0x29d   : > { %v1051_v21 = vpop.permute.xlu1 %1050 }
 0x29e   : > { %v1316_v34 = vsel %vm1294_vm11, %v1283_v15, %v1051_v21  ;;  %v948_v22 = vpop.permute.xlu0 %947 }
 0x2a1   : > { %v1087_v38 = vpop.permute.xlu1 %1086 }
 0x2a2   : > { %v1349_v52 = vsel %vm1327_vm12, %v1316_v34, %v1087_v38  ;;  %v984_v17 = vpop.permute.xlu0 %983 }
 0x2a3   : > { %4969 = vmatprep.mubr.msk.bf16.mxu0 %vm1396_vm13, %v1349_v52 }
 0x2a4   : > { %4970 = vmatmul.mubr.msk.bf16.gmra.mrb[20].mxu0 %vm1396_vm13, %v1351_v6 }
 0x2a5   : > { %v752_v39 = vpop.permute.xlu1 %751 }
 0x2a6   : > { %v1123_v10 = vsel %vm411_vm5, %v5992_v47, %v752_v39  ;;  %v1256_v47 = vsel %vm1228_vm9, %v1223_v51, %v980_v4  ;;  %v1017_v44 = vpop.permute.xlu0 %1016  ;;  %v1129_v4 = vsel %vm411_vm5, %v6097_v60, %v758_v26 }
 0x2a7   : > { %v1289_v63 = vsel %vm1261_vm10, %v1256_v47, %v1013_v23  ;;  %v1162_v33 = vsel %vm1130_vm7, %v1129_v4, %v871_v37 }
 0x2a8   : > { %v1322_v18 = vsel %vm1294_vm11, %v1289_v63, %v1057_v5  ;;  %v1195_v15 = vsel %vm1163_vm8, %v1162_v33, %v904_v57 }
 0x2a9   : > { %v865_v25 = vpop.permute.xlu1 %864  ;;  %v1355_v31 = vsel %vm1327_vm12, %v1322_v18, %v1093_v59  ;;  %v1227_v34 = vsel %vm300_vm0, %v1195_v15, %v948_v22 }
 0x2aa   : > { %v1156_v58 = vsel %vm1130_vm7, %v1123_v10, %v865_v25  ;;  %v1061_v21 = vpop.permute.xlu0 %1060 }
 0x2ab   : > { %v4951_v13 = vpop.f32.mrb[0].mxu0 }
 0x2ac   : > { %v1596_v9 = vmax.f32 %v4951_v13, 0.0  ;;  %v1467_v40 = vpop.f32.mrb[1].mxu0 }
 0x2ad   : > { %v4952_v7 = vpop.f32.mrb[2].mxu0  ;;  %v898_v28 = vpop.permute.xlu1 %897  ;;  %v1594_v3 = vmax.f32 %v1467_v40, 0.0 }
 0x2ae   : > { %v1597_v43 = vmax.f32 %v4952_v7, 0.0  ;;  %v1470_v2 = vpop.f32.mrb[3].mxu0  ;;  %1662 = vrot.lane.b32.xlu1 %v1596_v9, %s5423_s9  ;;  %v1189_v20 = vsel %vm1163_vm8, %v1156_v58, %v898_v28  ;;  %v1097_v24 = vpop.permute.xlu0 %1096 }
 0x2af   : > { %v1595_v30 = vmax.f32 %v1470_v2, 0.0 }
 0x2b0   : > { %1664 = vrot.lane.b32.xlu0 %v1597_v43, %s5423_s9 }
 0x2b1   : > { %v942_v1 = vpop.permute.xlu1 %941 }
 0x2b2   : > { %1658 = vrot.lane.b32.xlu1 %v1594_v3, %s5423_s9  ;;  %v1221_v45 = vsel %vm300_vm0, %v1189_v20, %v942_v1  ;;  %v6482_v37 = vpop.permute.xlu0 %2181 }
 0x2b4   : > { %1660 = vrot.lane.b32.xlu0 %v1595_v30, %s5423_s9 }
 0x2b5   : > { %v978_v41 = vpop.permute.xlu1 %977 }
 0x2b6   : > { %v1254_v32 = vsel %vm1228_vm9, %v1221_v45, %v978_v41 }
 0x2b9   : > { %v1011_v11 = vpop.permute.xlu1 %1010 }
 0x2ba   : > { %v1287_v12 = vsel %vm1261_vm10, %v1254_v32, %v1011_v11 }
 0x2bd   : > { %v1055_v46 = vpop.permute.xlu1 %1054 }
 0x2be   : > { %v1320_v0 = vsel %vm1294_vm11, %v1287_v12, %v1055_v46 }
 0x2c1   : > { %v1091_v8 = vpop.permute.xlu1 %1090 }
 0x2c2   : > { %v1353_v53 = vsel %vm1327_vm12, %v1320_v0, %v1091_v8 }
 0x2c3   : > { %4973 = vmatprep.mubr.msk.bf16.mxu0 %vm1396_vm13, %v1353_v53 }
 0x2c4   : > { %4974 = vmatmul.mubr.msk.bf16.gmra.mrb[24].mxu0 %vm1396_vm13, %v1355_v31 }
 0x2c5   : > { %v756_v54 = vpop.permute.xlu1 %755 }
 0x2c6   : > { %v1127_v55 = vsel %vm411_vm5, %v6069_v14, %v756_v54  ;;  %v1260_v14 = vsel %vm1228_vm9, %v1227_v34, %v984_v17  ;;  %vm3091_vm5 = vcmask 195712  }
 0x2c7   : > { %v1293_v52 = vsel %vm1261_vm10, %v1260_v14, %v1017_v44 }
 0x2c8   : > { %v1326_v39 = vsel %vm1294_vm11, %v1293_v52, %v1061_v21 }
 0x2c9   : > { %v869_v27 = vpop.permute.xlu1 %868  ;;  %v1359_v5 = vsel %vm1327_vm12, %v1326_v39, %v1097_v24 }
 0x2ca   : > { %v1160_v48 = vsel %vm1130_vm7, %v1127_v55, %v869_v27 }
 0x2cd   : > { %v902_v56 = vpop.permute.xlu1 %901 }
 0x2ce   : > { %v1193_v35 = vsel %vm1163_vm8, %v1160_v48, %v902_v56 }
 0x2d1   : > { %v946_v36 = vpop.permute.xlu1 %945 }
 0x2d2   : > { %v1225_v19 = vsel %vm300_vm0, %v1193_v35, %v946_v36 }
 0x2d5   : > { %v982_v16 = vpop.permute.xlu1 %981 }
 0x2d6   : > { %v1258_v38 = vsel %vm1228_vm9, %v1225_v19, %v982_v16 }
 0x2d9   : > { %v1015_v29 = vpop.permute.xlu1 %1014 }
 0x2da   : > { %v1291_v60 = vsel %vm1261_vm10, %v1258_v38, %v1015_v29 }
 0x2dd   : > { %v1059_v61 = vpop.permute.xlu1 %1058 }
 0x2de   : > { %v1324_v6 = vsel %vm1294_vm11, %v1291_v60, %v1059_v61  ;;  %vm4157_vm11 = vcmask 719872  }
 0x2e1   : > { %v1095_v23 = vpop.permute.xlu1 %1094 }
 0x2e2   : > { %v1357_v25 = vsel %vm1327_vm12, %v1324_v6, %v1095_v23 }
 0x2e3   : > { %4977 = vmatprep.mubr.msk.bf16.mxu0 %vm1396_vm13, %v1357_v25 }
 0x2e4   : > { %4978 = vmatmul.mubr.msk.bf16.gmra.mrb[28].mxu0 %vm1396_vm13, %v1359_v5 }
 0x2e5   : > { %v6479_v10 = vpop.permute.xlu1 %2069 }
 0x2e7   : > { %v4955_v13 = vpop.f32.mrb[4].mxu0 }
 0x2e8   : > { %v1600_v9 = vmax.f32 %v4955_v13, 0.0  ;;  %v1483_v40 = vpop.f32.mrb[5].mxu0 }
 0x2e9   : > { %v4956_v7 = vpop.f32.mrb[6].mxu0  ;;  %v1598_v2 = vmax.f32 %v1483_v40, 0.0 }
 0x2ea   : > { %v1601_v28 = vmax.f32 %v4956_v7, 0.0  ;;  %1670 = vrot.lane.b32.xlu1 %v1600_v9, %s5423_s9  ;;  %v1486_v43 = vpop.f32.mrb[7].mxu0 }
 0x2eb   : > { %v1599_v59 = vmax.f32 %v1486_v43, 0.0 }
 0x2ec   : > { %1672 = vrot.lane.b32.xlu0 %v1601_v28, %s5423_s9 }
 0x2ee   : > { %1666 = vrot.lane.b32.xlu1 %v1598_v2, %s5423_s9 }
 0x2f0   : > { %1668 = vrot.lane.b32.xlu0 %v1599_v59, %s5423_s9  ;;  %v5430_v59 = vmov 0  }
 0x2f1   : > { %2770 = vmatprep.subr.bf16.mxu1 %v5430_v59  ;;  %4193 = vmatprep.subr.bf16.mxu0 %v5430_v59 }
 0x317   : > { %v4959_v3 = vpop.f32.mrb[8].mxu0 }
 0x318   : > { %v1604_v1 = vmax.f32 %v4959_v3, 0.0  ;;  %v1499_v30 = vpop.f32.mrb[9].mxu0  ;;  %v5171_v3 = vld [vmem:[#allocation8] sm:$0xff]  }
 0x319   : > { %v4960_v41 = vpop.f32.mrb[10].mxu0  ;;  %v1602_v42 = vmax.f32 %v1499_v30, 0.0  ;;  %2771 = vmatpush1.bf16.msra.mxu1 %v5171_v3 }
 0x31a   : > { %v1605_v26 = vmax.f32 %v4960_v41, 0.0  ;;  %1678 = vrot.lane.b32.xlu1 %v1604_v1, %s5423_s9  ;;  %v1502_v11 = vpop.f32.mrb[11].mxu0  ;;  %2772 = vmatprep.subr.bf16.mxu1 %v5430_v59  ;;  %v5172_v1 = vld [vmem:[#allocation8 + $0x8] sm:$0xff]  }
 0x31b   : > { %v1603_v58 = vmax.f32 %v1502_v11, 0.0 }
 0x31c   : > { %1680 = vrot.lane.b32.xlu0 %v1605_v26, %s5423_s9  ;;  %v5173_v26 = vld [vmem:[#allocation8 + $0x10] sm:$0xff]  }
 0x31d   : > { %2773 = vmatpush1.bf16.msra.mxu1 %v5172_v1 }
 0x31e   : > { %1674 = vrot.lane.b32.xlu1 %v1602_v42, %s5423_s9  ;;  %2774 = vmatprep.subr.bf16.mxu1 %v5430_v59 }
 0x320   : > { %v1663_v49 = vpop.permute.xlu1 %1662  ;;  %1676 = vrot.lane.b32.xlu0 %v1603_v58, %s5423_s9  ;;  %v5174_v58 = vld [vmem:[#allocation8 + $0x18] sm:$0xff]  }
 0x321   : > { %1757 = vst.msk [vmem:[#allocation2 + $0x31] sm:$0xff] %vm1754_vm14, %v1663_v49  ;;  %2775 = vmatpush1.bf16.msra.mxu1 %v5173_v26  ;;  %v5175_v49 = vld [vmem:[#allocation8 + $0x20] sm:$0xff]  }
 0x322   : > { %v1665_v20 = vpop.permute.xlu0 %1664  ;;  %2776 = vmatprep.subr.bf16.mxu1 %v5430_v59 }
 0x323   : > { %1758 = vst.msk [vmem:[#allocation2 + $0x39] sm:$0xff] %vm1754_vm14, %v1665_v20 }
 0x324   : > { %v1659_v46 = vpop.permute.xlu1 %1658 }
 0x325   : > { %1755 = vst.msk [vmem:[#allocation2 + $0x19] sm:$0xff] %vm1754_vm14, %v1659_v46  ;;  %2777 = vmatpush1.bf16.msra.mxu1 %v5174_v58 }
 0x326   : > { %v1661_v62 = vpop.permute.xlu0 %1660  ;;  %2778 = vmatprep.subr.bf16.mxu1 %v5430_v59 }
 0x327   : > { %1756 = vst.msk [vmem:[#allocation2 + $0x21] sm:$0xff] %vm1754_vm14, %v1661_v62 }
 0x328   : > { %v1793_v45 = vld [vmem:[#allocation2 + $0x30] sm:$0xff] }
 0x329   : > { %2779 = vmatpush1.bf16.msra.mxu1 %v5175_v49 }
 0x32a   : > { %v1794_v51 = vld [vmem:[#allocation2 + $0x38] sm:$0xff]  ;;  %v1795_v32 = vld [vmem:[#allocation2 + $0x40] sm:$0x3]  ;;  %2780 = vmatprep.subr.bf16.mxu1 %v5430_v59 }
 0x32b   : > { %v6490_v47 = vpack.c.bf16 %v1794_v51, %v1793_v45  ;;  %v6492_v12 = vpack.c.bf16 %v1795_v32, %v1795_v32 }
 0x32d   : > { %v2139_v63 = vrot.slane %v6490_v47, 1  ;;  %v2140_v0 = vrot.slane %v6492_v12, 1 }
 0x32f   : > { %v6497_v8 = vsel %vm791_vm3, %v2139_v63, %v2140_v0  ;;  %v1791_v63 = vld [vmem:[#allocation2 + $0x20] sm:$0xff]  ;;  %v1792_v0 = vld [vmem:[#allocation2 + $0x28] sm:$0x3] }
 0x330   : > { %4864 = vmatprep.mubr.msk.bf16.mxu1 %vm1130_vm7, %v6497_v8 }
 0x337   : > { %v4963_v18 = vpop.f32.mrb[12].mxu0 }
 0x338   : > { %v1608_v57 = vmax.f32 %v4963_v18, 0.0  ;;  %v1515_v53 = vpop.f32.mrb[13].mxu0 }
 0x339   : > { %v4964_v31 = vpop.f32.mrb[14].mxu0  ;;  %v1606_v27 = vmax.f32 %v1515_v53, 0.0  ;;  %v1790_v53 = vld [vmem:[#allocation2 + $0x18] sm:$0xff] }
 0x33a   : > { %v1609_v54 = vmax.f32 %v4964_v31, 0.0  ;;  %1686 = vrot.lane.b32.xlu1 %v1608_v57, %s5423_s9  ;;  %v1518_v22 = vpop.f32.mrb[15].mxu0  ;;  %v5176_v57 = vld [vmem:[#allocation8 + $0x28] sm:$0xff]  }
 0x33b   : > { %v1607_v56 = vmax.f32 %v1518_v22, 0.0  ;;  %v1844_v22 = vpack.c.bf16 %v1792_v0, %v1792_v0  ;;  %2781 = vmatpush1.bf16.msra.mxu1 %v5176_v57 }
 0x33c   : > { %1688 = vrot.lane.b32.xlu0 %v1609_v54, %s5423_s9  ;;  %v6538_v54 = vpack.c.bf16 %v1791_v63, %v1790_v53  ;;  %2782 = vmatprep.subr.bf16.mxu1 %v5430_v59 }
 0x33e   : > { %1682 = vrot.lane.b32.xlu1 %v1606_v27, %s5423_s9  ;;  %v5177_v27 = vld [vmem:[#allocation8 + $0x30] sm:$0xff]  }
 0x33f   : > { %2783 = vmatpush1.bf16.msra.mxu1 %v5177_v27 }
 0x340   : > { %1684 = vrot.lane.b32.xlu0 %v1607_v56, %s5423_s9  ;;  %v2136_v56 = vrot.slane %v6538_v54, 1  ;;  %2784 = vmatprep.subr.bf16.mxu1 %v5430_v59 }
 0x357   : > { %v4967_v17 = vpop.f32.mrb[16].mxu0 }
 0x358   : > { %v1612_v36 = vmax.f32 %v4967_v17, 0.0  ;;  %v1531_v44 = vpop.f32.mrb[17].mxu0  ;;  %v2137_v17 = vrot.slane %v1844_v22, 1 }
 0x359   : > { %v4968_v16 = vpop.f32.mrb[18].mxu0  ;;  %v1610_v55 = vmax.f32 %v1531_v44, 0.0  ;;  %v5178_v44 = vld [vmem:[#allocation8 + $0x38] sm:$0xff]  }
 0x35a   : > { %v1613_v29 = vmax.f32 %v4968_v16, 0.0  ;;  %1694 = vrot.lane.b32.xlu1 %v1612_v36, %s5423_s9  ;;  %v1534_v21 = vpop.f32.mrb[19].mxu0  ;;  %v1904_v36 = vshll.u32 %v6490_v47, 16  ;;  %v2138_v16 = vsel %vm791_vm3, %v2136_v56, %v2137_v17  ;;  %2785 = vmatpush1.bf16.msra.mxu1 %v5178_v44 }
 0x35b   : > { %v1611_v48 = vmax.f32 %v1534_v21, 0.0  ;;  %v1892_v21 = vshll.u32 %v6538_v54, 16  ;;  %2786 = vmatprep.subr.bf16.mxu1 %v5430_v59 }
 0x35c   : > { %v1671_v4 = vpop.permute.xlu1 %1670  ;;  %1696 = vrot.lane.b32.xlu0 %v1613_v29, %s5423_s9  ;;  %v1906_v29 = vrot.slane %v1904_v36, 1 }
 0x35d   : > { %1761 = vst.msk [vmem:[#allocation2 + $0x61] sm:$0xff] %vm1754_vm14, %v1671_v4  ;;  %v1909_v4 = vshll.u32 %v6492_v12, 16 }
 0x35e   : > { %1690 = vrot.lane.b32.xlu1 %v1610_v55, %s5423_s9  ;;  %v1673_v33 = vpop.permute.xlu0 %1672  ;;  %v1902_v55 = vshrl.u32 %v6490_v47, 16 }
 0x35f   : > { %1762 = vst.msk [vmem:[#allocation2 + $0x69] sm:$0xff] %vm1754_vm14, %v1673_v33 }
 0x360   : > { %v1667_v35 = vpop.permute.xlu1 %1666  ;;  %1692 = vrot.lane.b32.xlu0 %v1611_v48, %s5423_s9  ;;  %v5179_v48 = vld [vmem:[#allocation8 + $0x40] sm:$0xff]   ;;  %v1907_v33 = vor.u32 %v1906_v29, %v1902_v55 }
 0x361   : > { %1759 = vst.msk [vmem:[#allocation2 + $0x49] sm:$0xff] %vm1754_vm14, %v1667_v35  ;;  %2787 = vmatpush1.bf16.msra.mxu1 %v5179_v48  ;;  %v1894_v35 = vrot.slane %v1892_v21, 1 }
 0x362   : > { %v1669_v61 = vpop.permute.xlu0 %1668  ;;  %4981 = vmatprep.subr.bf16.mxu1 %v5430_v59 }
 0x363   : > { %1760 = vst.msk [vmem:[#allocation2 + $0x51] sm:$0xff] %vm1754_vm14, %v1669_v61  ;;  %v1911_v61 = vrot.slane %v1909_v4, 1 }
 0x365   : > { %v1912_v12 = vsel %vm534_vm4, %v1907_v33, %v1911_v61 }
 0x377   : > { %v4971_v15 = vpop.f32.mrb[20].mxu0 }
 0x378   : > { %v1616_v19 = vmax.f32 %v4971_v15, 0.0  ;;  %v1547_v34 = vpop.f32.mrb[21].mxu0 }
 0x379   : > { %v1614_v38 = vmax.f32 %v1547_v34, 0.0  ;;  %v4972_v14 = vpop.f32.mrb[22].mxu0  ;;  %v1897_v34 = vshll.u32 %v1844_v22, 16 }
 0x37a   : > { %1702 = vrot.lane.b32.xlu1 %v1616_v19, %s5423_s9  ;;  %v1550_v24 = vpop.f32.mrb[23].mxu0  ;;  %v1617_v52 = vmax.f32 %v4972_v14, 0.0  ;;  %v1890_v19 = vshrl.u32 %v6538_v54, 16 }
 0x37b   : > { %v1615_v60 = vmax.f32 %v1550_v24, 0.0  ;;  %1698 = vrot.lane.b32.xlu0 %v1614_v38, %s5423_s9 }
 0x37c   : > { %v1895_v14 = vor.u32 %v1894_v35, %v1890_v19 }
 0x37e   : > { %1700 = vrot.lane.b32.xlu1 %v1615_v60, %s5423_s9  ;;  %v1899_v60 = vrot.slane %v1897_v34, 1 }
 0x37f   : > { %1704 = vrot.lane.b32.xlu0 %v1617_v52, %s5423_s9 }
 0x38c   : > { %v1679_v6 = vpop.permute.xlu1 %1678 }
 0x38d   : > { %1765 = vst.msk [vmem:[#allocation2 + $0x91] sm:$0xff] %vm1754_vm14, %v1679_v6  ;;  %v1900_v6 = vsel %vm534_vm4, %v1895_v14, %v1899_v60 }
 0x38e   : > { %v1681_v23 = vpop.permute.xlu0 %1680 }
 0x38f   : > { %1766 = vst.msk [vmem:[#allocation2 + $0x99] sm:$0xff] %vm1754_vm14, %v1681_v23  ;;  %v1797_v23 = vld [vmem:[#allocation2 + $0x50] sm:$0xff] }
 0x390   : > { %v1675_v39 = vpop.permute.xlu1 %1674 }
 0x391   : > { %1763 = vst.msk [vmem:[#allocation2 + $0x79] sm:$0xff] %vm1754_vm14, %v1675_v39  ;;  %v1800_v39 = vld [vmem:[#allocation2 + $0x68] sm:$0xff] }
 0x392   : > { %v1677_v25 = vpop.permute.xlu0 %1676 }
 0x393   : > { %1764 = vst.msk [vmem:[#allocation2 + $0x81] sm:$0xff] %vm1754_vm14, %v1677_v25  ;;  %v1798_v25 = vld [vmem:[#allocation2 + $0x58] sm:$0x3] }
 0x394   : > { %v1805_v29 = vld [vmem:[#allocation2 + $0x90] sm:$0xff] }
 0x396   : > { %v1806_v56 = vld [vmem:[#allocation2 + $0x98] sm:$0xff]  ;;  %v1807_v44 = vld [vmem:[#allocation2 + $0xa0] sm:$0x3] }
 0x397   : > { %v4975_v5 = vpop.f32.mrb[24].mxu0  ;;  %v6622_v21 = vpack.c.bf16 %v1806_v56, %v1805_v29  ;;  %v1854_v4 = vpack.c.bf16 %v1807_v44, %v1807_v44 }
 0x398   : > { %v1620_v13 = vmax.f32 %v4975_v5, 0.0  ;;  %v1563_v9 = vpop.f32.mrb[25].mxu0  ;;  %v1801_v5 = vld [vmem:[#allocation2 + $0x70] sm:$0x3]  ;;  %v1802_v36 = vld [vmem:[#allocation2 + $0x78] sm:$0xff] }
 0x399   : > { %v1618_v40 = vmax.f32 %v1563_v9, 0.0  ;;  %v4976_v7 = vpop.f32.mrb[26].mxu0  ;;  %v1799_v9 = vld [vmem:[#allocation2 + $0x60] sm:$0xff]  ;;  %v1952_v35 = vshll.u32 %v6622_v21, 16  ;;  %v2151_v61 = vrot.slane %v6622_v21, 1  ;;  %v1957_v60 = vshll.u32 %v1854_v4, 16 }
 0x39a   : > { %1710 = vrot.lane.b32.xlu1 %v1620_v13, %s5423_s9  ;;  %v1566_v28 = vpop.f32.mrb[27].mxu0  ;;  %v1621_v2 = vmax.f32 %v4976_v7, 0.0  ;;  %v1848_v7 = vpack.c.bf16 %v1798_v25, %v1798_v25  ;;  %v1803_v27 = vld [vmem:[#allocation2 + $0x80] sm:$0xff]  ;;  %v1804_v17 = vld [vmem:[#allocation2 + $0x88] sm:$0x3] }
 0x39b   : > { %v1619_v43 = vmax.f32 %v1566_v28, 0.0  ;;  %1706 = vrot.lane.b32.xlu0 %v1618_v40, %s5423_s9  ;;  %v6578_v40 = vpack.c.bf16 %v1800_v39, %v1799_v9  ;;  %v1850_v28 = vpack.c.bf16 %v1801_v5, %v1801_v5  ;;  %v1852_v55 = vpack.c.bf16 %v1804_v17, %v1804_v17 }
 0x39c   : > { %v1959_v25 = vrot.slane %v1957_v60, 1 }
 0x39d   : > { %v1928_v3 = vshll.u32 %v6578_v40, 16  ;;  %v2145_v1 = vrot.slane %v6578_v40, 1  ;;  %v1926_v49 = vshrl.u32 %v6578_v40, 16  ;;  %v2149_v33 = vrot.slane %v1852_v55, 1 }
 0x39e   : > { %1708 = vrot.lane.b32.xlu1 %v1619_v43, %s5423_s9 }
 0x39f   : > { %1712 = vrot.lane.b32.xlu0 %v1621_v2, %s5423_s9  ;;  %v2143_v2 = vrot.slane %v1848_v7, 1 }
 0x3ac   : > { %v1687_v30 = vpop.permute.xlu1 %1686 }
 0x3ad   : > { %1769 = vst.msk [vmem:[#allocation2 + $0xc1] sm:$0xff] %vm1754_vm14, %v1687_v30  ;;  %v2146_v30 = vrot.slane %v1850_v28, 1 }
 0x3ae   : > { %v1689_v41 = vpop.permute.xlu0 %1688 }
 0x3af   : > { %1770 = vst.msk [vmem:[#allocation2 + $0xc9] sm:$0xff] %vm1754_vm14, %v1689_v41 }
 0x3b0   : > { %v1683_v11 = vpop.permute.xlu1 %1682 }
 0x3b1   : > { %1767 = vst.msk [vmem:[#allocation2 + $0xa9] sm:$0xff] %vm1754_vm14, %v1683_v11  ;;  %v1930_v11 = vrot.slane %v1928_v3, 1 }
 0x3b2   : > { %v1685_v42 = vpop.permute.xlu0 %1684 }
 0x3b3   : > { %1768 = vst.msk [vmem:[#allocation2 + $0xb1] sm:$0xff] %vm1754_vm14, %v1685_v42  ;;  %v6598_v42 = vsel %vm791_vm3, %v2145_v1, %v2146_v30 }
 0x3b6   : > { %v1813_v30 = vld [vmem:[#allocation2 + $0xd0] sm:$0x3] }
 0x3b7   : > { %v4979_v20 = vpop.f32.mrb[28].mxu0 }
 0x3b8   : > { %v1624_v46 = vmax.f32 %v4979_v20, 0.0  ;;  %v1579_v62 = vpop.f32.mrb[29].mxu0  ;;  %v1933_v20 = vshll.u32 %v1850_v28, 16  ;;  %v1808_v1 = vld [vmem:[#allocation2 + $0xa8] sm:$0xff] }
 0x3b9   : > { %v1622_v45 = vmax.f32 %v1579_v62, 0.0  ;;  %v4980_v51 = vpop.f32.mrb[30].mxu0  ;;  %v1921_v62 = vshll.u32 %v1848_v7, 16 }
 0x3ba   : > { %1718 = vrot.lane.b32.xlu1 %v1624_v46, %s5423_s9  ;;  %v1582_v32 = vpop.f32.mrb[31].mxu0  ;;  %v1625_v31 = vmax.f32 %v4980_v51, 0.0  ;;  %v1810_v3 = vld [vmem:[#allocation2 + $0xb8] sm:$0x3] }
 0x3bb   : > { %v1623_v18 = vmax.f32 %v1582_v32, 0.0  ;;  %1714 = vrot.lane.b32.xlu0 %v1622_v45, %s5423_s9  ;;  %v1931_v45 = vor.u32 %v1930_v11, %v1926_v49  ;;  %v1935_v32 = vrot.slane %v1933_v20, 1  ;;  %v1923_v63 = vrot.slane %v1921_v62, 1 }
 0x3bc   : > { %v1858_v62 = vpack.c.bf16 %v1813_v30, %v1813_v30 }
 0x3bd   : > { %v1936_v0 = vsel %vm534_vm4, %v1931_v45, %v1935_v32 }
 0x3be   : > { %1716 = vrot.lane.b32.xlu1 %v1623_v18, %s5423_s9  ;;  %v1981_v56 = vshll.u32 %v1858_v62, 16 }
 0x3bf   : > { %1720 = vrot.lane.b32.xlu0 %v1625_v31, %s5423_s9  ;;  %s296_s9 = scalar_lea.vmem [#allocation12], %s4828_s6 }
 0x3c2   : > { %2214 = vrot.lane.b32.xlu1 %v6538_v54, %s5427_s16 }
 0x3c3   : > { %2327 = vrot.lane.b32.xlu0 %v6490_v47, %s5431_s10 }
 0x3c6   : > { %2294 = vrot.lane.b32.xlu1 %v2138_v16, %s5432_s17 }
 0x3c7   : > { %2216 = vrot.lane.b32.xlu0 %v6490_v47, %s5427_s16 }
 0x3ca   : > { %2183 = vrot.lane.b32.xlu1 %v2138_v16, %s5426_s15  ;;  %v6620_v16 = vpack.c.bf16 %v1803_v27, %v1802_v36 }
 0x3cb   : > { %2296 = vrot.lane.b32.xlu0 %v6497_v8, %s5432_s17 }
 0x3cc   : > { %v1695_v15 = vpop.permute.xlu1 %1694  ;;  %v2148_v48 = vrot.slane %v6620_v16, 1  ;;  %v1940_v19 = vshll.u32 %v6620_v16, 16 }
 0x3cd   : > { %1773 = vst.msk [vmem:[#allocation2 + $0xf1] sm:$0xff] %vm1754_vm14, %v1695_v15  ;;  %v2152_v15 = vrot.slane %v1854_v4, 1 }
 0x3ce   : > { %2371 = vrot.lane.b32.xlu1 %v1912_v12, %s5433_s22  ;;  %v1697_v38 = vpop.permute.xlu0 %1696  ;;  %v6637_v34 = vsel %vm791_vm3, %v2148_v48, %v2149_v33  ;;  %v1942_v14 = vrot.slane %v1940_v19, 1 }
 0x3cf   : > { %1774 = vst.msk [vmem:[#allocation2 + $0xf9] sm:$0xff] %vm1754_vm14, %v1697_v38  ;;  %2185 = vrot.lane.b32.xlu0 %v6497_v8, %s5426_s15  ;;  %v1796_v8 = vld [vmem:[#allocation2 + $0x48] sm:$0xff]  ;;  %v6642_v38 = vsel %vm791_vm3, %v2151_v61, %v2152_v15 }
 0x3d0   : > { %v1691_v24 = vpop.permute.xlu1 %1690  ;;  %v6576_v13 = vpack.c.bf16 %v1797_v23, %v1796_v8 }
 0x3d1   : > { %1771 = vst.msk [vmem:[#allocation2 + $0xd9] sm:$0xff] %vm1754_vm14, %v1691_v24  ;;  %v1950_v24 = vshrl.u32 %v6622_v21, 16 }
 0x3d2   : > { %2260 = vrot.lane.b32.xlu1 %v1912_v12, %s5428_s8  ;;  %v1693_v52 = vpop.permute.xlu0 %1692  ;;  %v2142_v43 = vrot.slane %v6576_v13, 1  ;;  %v1916_v41 = vshll.u32 %v6576_v13, 16  ;;  %v1914_v46 = vshrl.u32 %v6576_v13, 16 }
 0x3d3   : > { %1772 = vst.msk [vmem:[#allocation2 + $0xe1] sm:$0xff] %vm1754_vm14, %v1693_v52  ;;  %2258 = vrot.lane.b32.xlu0 %v1900_v6, %s5428_s8  ;;  %v1938_v52 = vshrl.u32 %v6620_v16, 16 }
 0x3d4   : > { %v6593_v26 = vsel %vm791_vm3, %v2142_v43, %v2143_v2  ;;  %v1918_v58 = vrot.slane %v1916_v41, 1  ;;  %v1809_v43 = vld [vmem:[#allocation2 + $0xb0] sm:$0xff]  ;;  %v1812_v2 = vld [vmem:[#allocation2 + $0xc8] sm:$0xff] }
 0x3d5   : > { %v1943_v39 = vor.u32 %v1942_v14, %v1938_v52  ;;  %v6662_v11 = vpack.c.bf16 %v1809_v43, %v1808_v1  ;;  %v1817_v60 = vld [vmem:[#allocation2 + $0xf0] sm:$0xff] }
 0x3d6   : > { %2073 = vrot.lane.b32.xlu1 %v1912_v12, %s5422_s25  ;;  %v1919_v51 = vor.u32 %v1918_v58, %v1914_v46  ;;  %v1954_v12 = vrot.slane %v1952_v35, 1  ;;  %v1811_v58 = vld [vmem:[#allocation2 + $0xc0] sm:$0xff]  ;;  %v1856_v46 = vpack.c.bf16 %v1810_v3, %v1810_v3  ;;  %v1818_v61 = vld [vmem:[#allocation2 + $0xf8] sm:$0xff] }
 0x3d7   : > { %2071 = vrot.lane.b32.xlu0 %v1900_v6, %s5422_s25  ;;  %v1945_v6 = vshll.u32 %v1852_v55, 16  ;;  %v6665_v20 = vpack.c.bf16 %v1812_v2, %v1811_v58  ;;  %v2154_v45 = vrot.slane %v6662_v11, 1  ;;  %v1962_v17 = vshrl.u32 %v6662_v11, 16 }
 0x3d8   : > { %v1924_v18 = vsel %vm534_vm4, %v1919_v51, %v1923_v63  ;;  %v1955_v23 = vor.u32 %v1954_v12, %v1950_v24  ;;  %v2155_v51 = vrot.slane %v1856_v46, 1  ;;  %v1969_v36 = vshll.u32 %v1856_v46, 16  ;;  %v1814_v19 = vld [vmem:[#allocation2 + $0xd8] sm:$0xff]  ;;  %v1819_v12 = vld [vmem:[#allocation2 + $0x100] sm:$0x3] }
 0x3d9   : > { %v1947_v8 = vrot.slane %v1945_v6, 1  ;;  %v1976_v32 = vshll.u32 %v6665_v20, 16  ;;  %v2157_v63 = vrot.slane %v6665_v20, 1  ;;  %v1974_v27 = vshrl.u32 %v6665_v20, 16 }
 0x3da   : > { %2329 = vrot.lane.b32.xlu1 %v6576_v13, %s5431_s10  ;;  %v1960_v5 = vsel %vm534_vm4, %v1955_v23, %v1959_v25  ;;  %v1983_v55 = vrot.slane %v1981_v56, 1  ;;  %v1971_v4 = vrot.slane %v1969_v36, 1  ;;  %v1815_v35 = vld [vmem:[#allocation2 + $0xe0] sm:$0xff]  ;;  %v1816_v15 = vld [vmem:[#allocation2 + $0xe8] sm:$0x3]  ;;  %v6707_v6 = vpack.c.bf16 %v1818_v61, %v1817_v60 }
 0x3db   : > { %2331 = vrot.lane.b32.xlu0 %v6578_v40, %s5431_s10  ;;  %v1948_v9 = vsel %vm534_vm4, %v1943_v39, %v1947_v8  ;;  %v6704_v24 = vpack.c.bf16 %v1815_v35, %v1814_v19  ;;  %v1860_v23 = vpack.c.bf16 %v1816_v15, %v1816_v15  ;;  %v1862_v39 = vpack.c.bf16 %v1819_v12, %v1819_v12 }
 0x3dc   : > { %v1998_v46 = vshrl.u32 %v6707_v6, 16 }
 0x3dd   : > { %v2164_v43 = vrot.slane %v1862_v39, 1  ;;  %v1988_v2 = vshll.u32 %v6704_v24, 16 }
 0x3de   : > { %2218 = vrot.lane.b32.xlu1 %v6576_v13, %s5427_s16 }
 0x3df   : > { %2220 = vrot.lane.b32.xlu0 %v6578_v40, %s5427_s16 }
 0x3e2   : > { %2298 = vrot.lane.b32.xlu1 %v6593_v26, %s5432_s17 }
 0x3e3   : > { %2300 = vrot.lane.b32.xlu0 %v6598_v42, %s5432_s17 }
 0x3e6   : > { %2187 = vrot.lane.b32.xlu1 %v6593_v26, %s5426_s15 }
 0x3e7   : > { %2189 = vrot.lane.b32.xlu0 %v6598_v42, %s5426_s15 }
 0x3ea   : > { %2375 = vrot.lane.b32.xlu1 %v1936_v0, %s5433_s22 }
 0x3eb   : > { %2373 = vrot.lane.b32.xlu0 %v1924_v18, %s5433_s22 }
 0x3ec   : > { %v1703_v57 = vpop.permute.xlu1 %1702 }
 0x3ed   : > { %1777 = vst.msk [vmem:[#allocation2 + $0x121] sm:$0xff] %vm1754_vm14, %v1703_v57  ;;  %v1699_v53 = vpop.permute.xlu0 %1698  ;;  %v6681_v57 = vsel %vm791_vm3, %v2154_v45, %v2155_v51  ;;  %v1986_v51 = vshrl.u32 %v6704_v24, 16 }
 0x3ee   : > { %1775 = vst.msk [vmem:[#allocation2 + $0x109] sm:$0xff] %vm1754_vm14, %v1699_v53  ;;  %2264 = vrot.lane.b32.xlu1 %v1936_v0, %s5428_s8  ;;  %v1978_v53 = vrot.slane %v1976_v32, 1  ;;  %v1993_v32 = vshll.u32 %v1860_v23, 16 }
 0x3ef   : > { %2262 = vrot.lane.b32.xlu0 %v1924_v18, %s5428_s8 }
 0x3f0   : > { %v1701_v31 = vpop.permute.xlu1 %1700  ;;  %v1979_v44 = vor.u32 %v1978_v53, %v1974_v27  ;;  %v1995_v27 = vrot.slane %v1993_v32, 1 }
 0x3f1   : > { %1776 = vst.msk [vmem:[#allocation2 + $0x111] sm:$0xff] %vm1754_vm14, %v1701_v31  ;;  %v1705_v22 = vpop.permute.xlu0 %1704 }
 0x3f2   : > { %1778 = vst.msk [vmem:[#allocation2 + $0x129] sm:$0xff] %vm1754_vm14, %v1705_v22  ;;  %2077 = vrot.lane.b32.xlu1 %v1936_v0, %s5422_s25  ;;  %v2158_v0 = vrot.slane %v1858_v62, 1  ;;  %v1984_v48 = vsel %vm534_vm4, %v1979_v44, %v1983_v55  ;;  %v2005_v62 = vshll.u32 %v1862_v39, 16 }
 0x3f3   : > { %2075 = vrot.lane.b32.xlu0 %v1924_v18, %s5422_s25  ;;  %v1964_v18 = vshll.u32 %v6662_v11, 16 }
 0x3f4   : > { %v6686_v31 = vsel %vm791_vm3, %v2157_v63, %v2158_v0  ;;  %v2007_v53 = vrot.slane %v2005_v62, 1 }
 0x3f5   : > { %v1966_v22 = vrot.slane %v1964_v18, 1  ;;  %v1820_v12 = vld [vmem:[#allocation2 + $0x108] sm:$0xff] }
 0x3f6   : > { %2333 = vrot.lane.b32.xlu1 %v6620_v16, %s5431_s10 }
 0x3f7   : > { %2335 = vrot.lane.b32.xlu0 %v6622_v21, %s5431_s10  ;;  %v1967_v29 = vor.u32 %v1966_v22, %v1962_v17 }
 0x3f8   : > { %v1821_v61 = vld [vmem:[#allocation2 + $0x110] sm:$0xff] }
 0x3f9   : > { %v1972_v33 = vsel %vm534_vm4, %v1967_v29, %v1971_v4  ;;  %v2408_v29 = vsel %vm1130_vm7, %v6259_v50, %v6479_v10  ;;  %v1824_v50 = vld [vmem:[#allocation2 + $0x128] sm:$0xff]  ;;  %v1822_v10 = vld [vmem:[#allocation2 + $0x118] sm:$0x3]  ;;  %v6762_v60 = vpack.c.bf16 %v1821_v61, %v1820_v12 }
 0x3fa   : > { %2222 = vrot.lane.b32.xlu1 %v6620_v16, %s5427_s16  ;;  %v2440_v4 = vsel %vm300_vm0, %v2408_v29, %v6482_v37  ;;  %v1825_v37 = vld [vmem:[#allocation2 + $0x130] sm:$0x3] }
 0x3fb   : > { %2224 = vrot.lane.b32.xlu0 %v6622_v21, %s5427_s16 }
 0x3fe   : > { %2302 = vrot.lane.b32.xlu1 %v6637_v34, %s5432_s17 }
 0x3ff   : > { %2304 = vrot.lane.b32.xlu0 %v6642_v38, %s5432_s17 }
 0x402   : > { %2191 = vrot.lane.b32.xlu1 %v6637_v34, %s5426_s15 }
 0x403   : > { %2193 = vrot.lane.b32.xlu0 %v6642_v38, %s5426_s15 }
 0x406   : > { %2379 = vrot.lane.b32.xlu1 %v1960_v5, %s5433_s22 }
 0x407   : > { %2377 = vrot.lane.b32.xlu0 %v1948_v9, %s5433_s22 }
 0x40a   : > { %2268 = vrot.lane.b32.xlu1 %v1960_v5, %s5428_s8 }
 0x40b   : > { %2266 = vrot.lane.b32.xlu0 %v1948_v9, %s5428_s8 }
 0x40c   : > { %v1711_v7 = vpop.permute.xlu1 %1710 }
 0x40d   : > { %1781 = vst.msk [vmem:[#allocation2 + $0x151] sm:$0xff] %vm1754_vm14, %v1711_v7  ;;  %v1707_v28 = vpop.permute.xlu0 %1706  ;;  %v2000_v7 = vshll.u32 %v6707_v6, 16 }
 0x40e   : > { %1779 = vst.msk [vmem:[#allocation2 + $0x139] sm:$0xff] %vm1754_vm14, %v1707_v28  ;;  %2081 = vrot.lane.b32.xlu1 %v1960_v5, %s5422_s25  ;;  %v2160_v5 = vrot.slane %v6704_v24, 1  ;;  %v2163_v28 = vrot.slane %v6707_v6, 1 }
 0x40f   : > { %2079 = vrot.lane.b32.xlu0 %v1948_v9, %s5422_s25  ;;  %v2161_v9 = vrot.slane %v1860_v23, 1  ;;  %v1823_v23 = vld [vmem:[#allocation2 + $0x120] sm:$0xff] }
 0x410   : > { %v1709_v41 = vpop.permute.xlu1 %1708  ;;  %v6730_v58 = vsel %vm791_vm3, %v2163_v28, %v2164_v43  ;;  %v2166_v43 = vrot.slane %v6762_v60, 1 }
 0x411   : > { %1780 = vst.msk [vmem:[#allocation2 + $0x141] sm:$0xff] %vm1754_vm14, %v1709_v41  ;;  %v1713_v49 = vpop.permute.xlu0 %1712  ;;  %v6725_v30 = vsel %vm791_vm3, %v2160_v5, %v2161_v9  ;;  %v2002_v41 = vrot.slane %v2000_v7, 1  ;;  %v1864_v5 = vpack.c.bf16 %v1822_v10, %v1822_v10  ;;  %v1866_v9 = vpack.c.bf16 %v1825_v37, %v1825_v37 }
 0x412   : > { %1782 = vst.msk [vmem:[#allocation2 + $0x159] sm:$0xff] %vm1754_vm14, %v1713_v49  ;;  %2337 = vrot.lane.b32.xlu1 %v6662_v11, %s5431_s10  ;;  %v1990_v49 = vrot.slane %v1988_v2, 1 }
 0x413   : > { %2339 = vrot.lane.b32.xlu0 %v6665_v20, %s5431_s10  ;;  %v2003_v0 = vor.u32 %v2002_v41, %v1998_v46  ;;  %v2167_v2 = vrot.slane %v1864_v5, 1  ;;  %v2012_v46 = vshll.u32 %v6762_v60, 16 }
 0x414   : > { %v1991_v18 = vor.u32 %v1990_v49, %v1986_v51  ;;  %v2170_v49 = vrot.slane %v1866_v9, 1 }
 0x415   : > { %v2008_v17 = vsel %vm534_vm4, %v2003_v0, %v2007_v53  ;;  %v6790_v51 = vsel %vm791_vm3, %v2166_v43, %v2167_v2  ;;  %v2014_v0 = vrot.slane %v2012_v46, 1  ;;  %v2029_v53 = vshll.u32 %v1866_v9, 16  ;;  %v1826_v2 = vld [vmem:[#allocation2 + $0x138] sm:$0xff] }
 0x416   : > { %2226 = vrot.lane.b32.xlu1 %v6662_v11, %s5427_s16  ;;  %v1996_v36 = vsel %vm534_vm4, %v1991_v18, %v1995_v27 }
 0x417   : > { %2228 = vrot.lane.b32.xlu0 %v6665_v20, %s5427_s16 }
 0x419   : > { %v1830_v9 = vld [vmem:[#allocation2 + $0x158] sm:$0xff] }
 0x41a   : > { %2306 = vrot.lane.b32.xlu1 %v6681_v57, %s5432_s17 }
 0x41b   : > { %2308 = vrot.lane.b32.xlu0 %v6686_v31, %s5432_s17 }
 0x41e   : > { %2195 = vrot.lane.b32.xlu1 %v6681_v57, %s5426_s15 }
 0x41f   : > { %2197 = vrot.lane.b32.xlu0 %v6686_v31, %s5426_s15 }
 0x422   : > { %2383 = vrot.lane.b32.xlu1 %v1984_v48, %s5433_s22 }
 0x423   : > { %2381 = vrot.lane.b32.xlu0 %v1972_v33, %s5433_s22 }
 0x426   : > { %2272 = vrot.lane.b32.xlu1 %v1984_v48, %s5428_s8 }
 0x427   : > { %2270 = vrot.lane.b32.xlu0 %v1972_v33, %s5428_s8 }
 0x42a   : > { %2085 = vrot.lane.b32.xlu1 %v1984_v48, %s5422_s25 }
 0x42b   : > { %2083 = vrot.lane.b32.xlu0 %v1972_v33, %s5422_s25 }
 0x42c   : > { %v1719_v14 = vpop.permute.xlu1 %1718 }
 0x42d   : > { %1785 = vst.msk [vmem:[#allocation2 + $0x181] sm:$0xff] %vm1754_vm14, %v1719_v14  ;;  %v1715_v52 = vpop.permute.xlu0 %1714 }
 0x42e   : > { %1783 = vst.msk [vmem:[#allocation2 + $0x169] sm:$0xff] %vm1754_vm14, %v1715_v52  ;;  %2341 = vrot.lane.b32.xlu1 %v6704_v24, %s5431_s10 }
 0x42f   : > { %2343 = vrot.lane.b32.xlu0 %v6707_v6, %s5431_s10 }
 0x430   : > { %v1717_v25 = vpop.permute.xlu1 %1716 }
 0x431   : > { %1784 = vst.msk [vmem:[#allocation2 + $0x171] sm:$0xff] %vm1754_vm14, %v1717_v25  ;;  %v1721_v8 = vpop.permute.xlu0 %1720 }
 0x432   : > { %1786 = vst.msk [vmem:[#allocation2 + $0x189] sm:$0xff] %vm1754_vm14, %v1721_v8  ;;  %2230 = vrot.lane.b32.xlu1 %v6704_v24, %s5427_s16  ;;  %v6766_v8 = vpack.c.bf16 %v1824_v50, %v1823_v23 }
 0x433   : > { %2232 = vrot.lane.b32.xlu0 %v6707_v6, %s5427_s16 }
 0x434   : > { %v2215_v3 = vpop.permute.xlu1 %2214  ;;  %v2169_v41 = vrot.slane %v6766_v8, 1  ;;  %v2022_v18 = vshrl.u32 %v6766_v8, 16 }
 0x435   : > { %v2328_v1 = vpop.permute.xlu0 %2327  ;;  %v2472_v33 = vsel %vm1261_vm10, %v2440_v4, %v2215_v3  ;;  %v2024_v3 = vshll.u32 %v6766_v8, 16 }
 0x436   : > { %2310 = vrot.lane.b32.xlu1 %v6725_v30, %s5432_s17  ;;  %v6795_v32 = vsel %vm791_vm3, %v2169_v41, %v2170_v49 }
 0x437   : > { %2312 = vrot.lane.b32.xlu0 %v6730_v58, %s5432_s17 }
 0x438   : > { %v2295_v45 = vpop.permute.xlu1 %2294 }
 0x439   : > { %v6736_v63 = vpop.permute.xlu0 %2216 }
 0x43a   : > { %2199 = vrot.lane.b32.xlu1 %v6725_v30, %s5426_s15 }
 0x43b   : > { %2201 = vrot.lane.b32.xlu0 %v6730_v58, %s5426_s15 }
 0x43c   : > { %v2184_v22 = vpop.permute.xlu1 %2183 }
 0x43d   : > { %v6742_v56 = vpop.permute.xlu0 %2296 }
 0x43e   : > { %2387 = vrot.lane.b32.xlu1 %v2008_v17, %s5433_s22 }
 0x43f   : > { %2385 = vrot.lane.b32.xlu0 %v1996_v36, %s5433_s22 }
 0x440   : > { %v2372_v44 = vpop.permute.xlu1 %2371 }
 0x441   : > { %v6751_v55 = vpop.permute.xlu0 %2185 }
 0x442   : > { %2276 = vrot.lane.b32.xlu1 %v2008_v17, %s5428_s8 }
 0x443   : > { %2274 = vrot.lane.b32.xlu0 %v1996_v36, %s5428_s8 }
 0x444   : > { %v2261_v48 = vpop.permute.xlu1 %2260 }
 0x445   : > { %v2259_v35 = vpop.permute.xlu0 %2258 }
 0x446   : > { %v2504_v15 = vsel %vm1327_vm12, %v2472_v33, %v2259_v35  ;;  %2089 = vrot.lane.b32.xlu1 %v2008_v17, %s5422_s25  ;;  %v2010_v17 = vshrl.u32 %v6762_v60, 16  ;;  %v2031_v35 = vrot.slane %v2029_v53, 1 }
 0x447   : > { %v2537_v19 = vsel %vm2535_vm15, %v2504_v15, %v2295_v45  ;;  %2087 = vrot.lane.b32.xlu0 %v1996_v36, %s5422_s25  ;;  %v2017_v36 = vshll.u32 %v1864_v5, 16 }
 0x448   : > { %v2074_v14 = vpop.permute.xlu1 %2073  ;;  %v2570_v52 = vsel %vm2568_vm1, %v2537_v19, %v2328_v1  ;;  %v2015_v4 = vor.u32 %v2014_v0, %v2010_v17 }
 0x449   : > { %v2072_v39 = vpop.permute.xlu0 %2071  ;;  %v2603_v25 = vsel %vm2601_vm2, %v2570_v52, %v2372_v44  ;;  %v2019_v15 = vrot.slane %v2017_v36, 1  ;;  %v2412_v12 = vsel %vm1130_vm7, %v6490_v47, %v2074_v14  ;;  %v1827_v14 = vld [vmem:[#allocation2 + $0x140] sm:$0xff] }
 0x44a   : > { %2345 = vrot.lane.b32.xlu1 %v6762_v60, %s5431_s10  ;;  %2803 = vmatmul.mubr.bf16.vlgmr.msra.gmra.mrb[0].mxu1 %v2603_v25  ;;  %v2410_v1 = vsel %vm1130_vm7, %v6538_v54, %v2072_v39  ;;  %v2026_v54 = vrot.slane %v2024_v3, 1 }
 0x44b   : > { %2347 = vrot.lane.b32.xlu0 %v6766_v8, %s5431_s10  ;;  %4865 = vmatprep.mubr.msk.bf16.mxu1 %vm1130_vm7, %v6593_v26  ;;  %v2442_v62 = vsel %vm300_vm0, %v2410_v1, %v2184_v22  ;;  %v2020_v19 = vsel %vm534_vm4, %v2015_v4, %v2019_v15  ;;  %v6833_v1 = vpack.c.bf16 %v1827_v14, %v1826_v2 }
 0x44c   : > { %v2330_v7 = vpop.permute.xlu1 %2329  ;;  %v2474_v22 = vsel %vm1261_vm10, %v2442_v62, %v6736_v63  ;;  %v2027_v29 = vor.u32 %v2026_v54, %v2022_v18 }
 0x44d   : > { %v6774_v28 = vpop.permute.xlu0 %2331  ;;  %v2506_v33 = vsel %vm1327_vm12, %v2474_v22, %v2261_v48 }
 0x44e   : > { %2234 = vrot.lane.b32.xlu1 %v6762_v60, %s5427_s16  ;;  %v2032_v50 = vsel %vm534_vm4, %v2027_v29, %v2031_v35  ;;  %v2539_v10 = vsel %vm2535_vm15, %v2506_v33, %v6742_v56  ;;  %v2444_v56 = vsel %vm300_vm0, %v2412_v12, %v6751_v55  ;;  %v1831_v55 = vld [vmem:[#allocation2 + $0x160] sm:$0x3]  ;;  %v2036_v29 = vshll.u32 %v6833_v1, 16 }
 0x44f   : > { %2236 = vrot.lane.b32.xlu0 %v6766_v8, %s5427_s16  ;;  %v2572_v37 = vsel %vm2568_vm1, %v2539_v10, %v2330_v7  ;;  %v1828_v7 = vld [vmem:[#allocation2 + $0x148] sm:$0x3]  ;;  %v1870_v54 = vpack.c.bf16 %v1831_v55, %v1831_v55  ;;  %v2034_v12 = vshrl.u32 %v6833_v1, 16 }
 0x450   : > { %v2219_v26 = vpop.permute.xlu1 %2218  ;;  %v1868_v62 = vpack.c.bf16 %v1828_v7, %v1828_v7 }
 0x451   : > { %v6787_v45 = vpop.permute.xlu0 %2220  ;;  %v2476_v25 = vsel %vm1261_vm10, %v2444_v56, %v2219_v26  ;;  %v2176_v36 = vrot.slane %v1870_v54, 1 }
 0x452   : > { %2314 = vrot.lane.b32.xlu1 %v6790_v51, %s5432_s17  ;;  %v2173_v53 = vrot.slane %v1868_v62, 1 }
 0x453   : > { %2316 = vrot.lane.b32.xlu0 %v6795_v32, %s5432_s17 }
 0x454   : > { %v2299_v27 = vpop.permute.xlu1 %2298 }
 0x455   : > { %v6803_v44 = vpop.permute.xlu0 %2300 }
 0x456   : > { %2203 = vrot.lane.b32.xlu1 %v6790_v51, %s5426_s15 }
 0x457   : > { %2205 = vrot.lane.b32.xlu0 %v6795_v32, %s5426_s15 }
 0x458   : > { %v2188_v61 = vpop.permute.xlu1 %2187 }
 0x459   : > { %v6810_v63 = vpop.permute.xlu0 %2189 }
 0x45a   : > { %2391 = vrot.lane.b32.xlu1 %v2032_v50, %s5433_s22 }
 0x45b   : > { %2389 = vrot.lane.b32.xlu0 %v2020_v19, %s5433_s22 }
 0x45c   : > { %v2376_v48 = vpop.permute.xlu1 %2375 }
 0x45d   : > { %v2374_v52 = vpop.permute.xlu0 %2373 }
 0x45e   : > { %2280 = vrot.lane.b32.xlu1 %v2032_v50, %s5428_s8  ;;  %v2606_v23 = vsel %vm2601_vm2, %v2572_v37, %v2374_v52  ;;  %v2041_v37 = vshll.u32 %v1868_v62, 16 }
 0x45f   : > { %2278 = vrot.lane.b32.xlu0 %v2020_v19, %s5428_s8  ;;  %2811 = vmatmul.mubr.bf16.gmra.mrb[4].mxu1 %v2606_v23 }
 0x460   : > { %v2265_v39 = vpop.permute.xlu1 %2264  ;;  %4866 = vmatprep.mubr.msk.bf16.mxu1 %vm1130_vm7, %v6598_v42  ;;  %v1829_v42 = vld [vmem:[#allocation2 + $0x150] sm:$0xff] }
 0x461   : > { %v2263_v47 = vpop.permute.xlu0 %2262  ;;  %v6837_v46 = vpack.c.bf16 %v1830_v9, %v1829_v42 }
 0x462   : > { %v2508_v5 = vsel %vm1327_vm12, %v2476_v25, %v2263_v47  ;;  %2093 = vrot.lane.b32.xlu1 %v2032_v50, %s5422_s25  ;;  %v2038_v50 = vrot.slane %v2036_v29, 1 }
 0x463   : > { %v2541_v43 = vsel %vm2535_vm15, %v2508_v5, %v2299_v27  ;;  %2091 = vrot.lane.b32.xlu0 %v2020_v19, %s5422_s25  ;;  %v2048_v22 = vshll.u32 %v6837_v46, 16  ;;  %v2175_v17 = vrot.slane %v6837_v46, 1  ;;  %v2046_v10 = vshrl.u32 %v6837_v46, 16 }
 0x464   : > { %v2078_v3 = vpop.permute.xlu1 %2077  ;;  %v2574_v41 = vsel %vm2568_vm1, %v2541_v43, %v6774_v28  ;;  %v2172_v28 = vrot.slane %v6833_v1, 1  ;;  %v2053_v19 = vshll.u32 %v1870_v54, 16  ;;  %v2039_v56 = vor.u32 %v2038_v50, %v2034_v12 }
 0x465   : > { %v2076_v49 = vpop.permute.xlu0 %2075  ;;  %v2609_v26 = vsel %vm2601_vm2, %v2574_v41, %v2376_v48  ;;  %v6867_v15 = vsel %vm791_vm3, %v2175_v17, %v2176_v36  ;;  %v2043_v5 = vrot.slane %v2041_v37, 1  ;;  %v2416_v55 = vsel %vm1130_vm7, %v6578_v40, %v2078_v3  ;;  %v1835_v17 = vld [vmem:[#allocation2 + $0x180] sm:$0xff] }
 0x466   : > { %2349 = vrot.lane.b32.xlu1 %v6833_v1, %s5431_s10  ;;  %v2414_v27 = vsel %vm1130_vm7, %v6576_v13, %v2076_v49  ;;  %v6862_v35 = vsel %vm791_vm3, %v2172_v28, %v2173_v53  ;;  %v2050_v13 = vrot.slane %v2048_v22, 1  ;;  %v2055_v47 = vrot.slane %v2053_v19, 1  ;;  %v1832_v49 = vld [vmem:[#allocation2 + $0x168] sm:$0xff]  ;;  %v1837_v19 = vld [vmem:[#allocation2 + $0x190] sm:$0x3] }
 0x467   : > { %2351 = vrot.lane.b32.xlu0 %v6837_v46, %s5431_s10  ;;  %2819 = vmatmul.mubr.bf16.gmra.mrb[8].mxu1 %v2609_v26  ;;  %v2446_v4 = vsel %vm300_vm0, %v2414_v27, %v2188_v61  ;;  %v2044_v43 = vsel %vm534_vm4, %v2039_v56, %v2043_v5  ;;  %v2448_v62 = vsel %vm300_vm0, %v2416_v55, %v6810_v63  ;;  %v1836_v53 = vld [vmem:[#allocation2 + $0x188] sm:$0xff]  ;;  %v1839_v56 = vld [vmem:[#allocation2 + $0x1a0] sm:$0xff] }
 0x468   : > { %v2334_v0 = vpop.permute.xlu1 %2333  ;;  %4867 = vmatprep.mubr.msk.bf16.mxu1 %vm1130_vm7, %v6637_v34  ;;  %v2478_v61 = vsel %vm1261_vm10, %v2446_v4, %v6787_v45  ;;  %v2051_v23 = vor.u32 %v2050_v13, %v2046_v10  ;;  %v1840_v55 = vld [vmem:[#allocation2 + $0x1a8] sm:$0x3] }
 0x469   : > { %v6846_v18 = vpop.permute.xlu0 %2335  ;;  %v2510_v25 = vsel %vm1327_vm12, %v2478_v61, %v2265_v39  ;;  %v1833_v39 = vld [vmem:[#allocation2 + $0x170] sm:$0xff] }
 0x46a   : > { %2238 = vrot.lane.b32.xlu1 %v6833_v1, %s5427_s16  ;;  %v2056_v9 = vsel %vm534_vm4, %v2051_v23, %v2055_v47  ;;  %v2543_v7 = vsel %vm2535_vm15, %v2510_v25, %v6803_v44  ;;  %v6895_v44 = vpack.c.bf16 %v1833_v39, %v1832_v49  ;;  %v1838_v23 = vld [vmem:[#allocation2 + $0x198] sm:$0xff]  ;;  %v1874_v47 = vpack.c.bf16 %v1837_v19, %v1837_v19 }
 0x46b   : > { %2240 = vrot.lane.b32.xlu0 %v6837_v46, %s5427_s16  ;;  %v2576_v42 = vsel %vm2568_vm1, %v2543_v7, %v2334_v0  ;;  %v1834_v0 = vld [vmem:[#allocation2 + $0x178] sm:$0x3]  ;;  %v6934_v7 = vpack.c.bf16 %v1839_v56, %v1838_v23 }
 0x46c   : > { %v2223_v34 = vpop.permute.xlu1 %2222  ;;  %v2060_v22 = vshll.u32 %v6895_v44, 16  ;;  %v1872_v36 = vpack.c.bf16 %v1834_v0, %v1834_v0  ;;  %v2254_v49 = vshll.u32 %v1874_v47, 16 }
 0x46d   : > { %v6859_v33 = vpop.permute.xlu0 %2224  ;;  %v2480_v40 = vsel %vm1261_vm10, %v2448_v62, %v2223_v34  ;;  %v6912_v34 = vpack.c.bf16 %v1836_v53, %v1835_v17  ;;  %v6949_v62 = vpack.c.bf16 %v1840_v55, %v1840_v55  ;;  %v3126_v17 = vld [vmem:[#allocation2 + $0x10] sm:$0x3] }
 0x46e   : > { %2318 = vrot.lane.b32.xlu1 %v6862_v35, %s5432_s17  ;;  %v2062_v13 = vrot.slane %v2060_v22, 1  ;;  %v2065_v10 = vshll.u32 %v1872_v36, 16  ;;  %v2179_v12 = vrot.slane %v1872_v36, 1  ;;  %v2256_v53 = vrot.slane %v2254_v49, 1 }
 0x46f   : > { %2320 = vrot.lane.b32.xlu0 %v6867_v15, %s5432_s17  ;;  %v2249_v37 = vshll.u32 %v6912_v34, 16  ;;  %v2360_v22 = vshrl.u32 %v6934_v7, 16  ;;  %v2291_v19 = vrot.slane %v6912_v34, 1 }
 0x470   : > { %v2303_v48 = vpop.permute.xlu1 %2302 }
 0x471   : > { %v6875_v52 = vpop.permute.xlu0 %2304 }
 0x472   : > { %2207 = vrot.lane.b32.xlu1 %v6862_v35, %s5426_s15 }
 0x473   : > { %2209 = vrot.lane.b32.xlu0 %v6867_v15, %s5426_s15 }
 0x474   : > { %v2192_v14 = vpop.permute.xlu1 %2191 }
 0x475   : > { %v6882_v45 = vpop.permute.xlu0 %2193 }
 0x476   : > { %2395 = vrot.lane.b32.xlu1 %v2056_v9, %s5433_s22 }
 0x477   : > { %2393 = vrot.lane.b32.xlu0 %v2044_v43, %s5433_s22 }
 0x478   : > { %v2380_v2 = vpop.permute.xlu1 %2379 }
 0x479   : > { %v2378_v41 = vpop.permute.xlu0 %2377 }
 0x47a   : > { %2284 = vrot.lane.b32.xlu1 %v2056_v9, %s5428_s8  ;;  %v2612_v26 = vsel %vm2601_vm2, %v2576_v42, %v2378_v41  ;;  %v2247_v41 = vshrl.u32 %v6912_v34, 16 }
 0x47b   : > { %2282 = vrot.lane.b32.xlu0 %v2044_v43, %s5428_s8  ;;  %2827 = vmatmul.mubr.bf16.gmra.mrb[12].mxu1 %v2612_v26 }
 0x47c   : > { %v2269_v54 = vpop.permute.xlu1 %2268  ;;  %4868 = vmatprep.mubr.msk.bf16.mxu1 %vm1130_vm7, %v6642_v38 }
 0x47d   : > { %v2267_v3 = vpop.permute.xlu0 %2266 }
 0x47e   : > { %v2512_v28 = vsel %vm1327_vm12, %v2480_v40, %v2267_v3  ;;  %2097 = vrot.lane.b32.xlu1 %v2056_v9, %s5422_s25  ;;  %v2067_v9 = vrot.slane %v2065_v10, 1  ;;  %v2362_v40 = vshll.u32 %v6934_v7, 16 }
 0x47f   : > { %v2545_v27 = vsel %vm2535_vm15, %v2512_v28, %v2303_v48  ;;  %2095 = vrot.lane.b32.xlu0 %v2044_v43, %s5422_s25  ;;  %v2178_v48 = vrot.slane %v6895_v44, 1 }
 0x480   : > { %v6908_v63 = vpop.permute.xlu1 %2081  ;;  %v2578_v38 = vsel %vm2568_vm1, %v2545_v27, %v6846_v18  ;;  %v2058_v18 = vshrl.u32 %v6895_v44, 16  ;;  %v3124_v27 = vld [vmem:[#allocation2] sm:$0xff]  ;;  %v2364_v36 = vrot.slane %v2362_v40, 1 }
 0x481   : > { %v2080_v29 = vpop.permute.xlu0 %2079  ;;  %v2615_v4 = vsel %vm2601_vm2, %v2578_v38, %v2380_v2  ;;  %v6940_v2 = vsel %vm791_vm3, %v2178_v48, %v2179_v12  ;;  %v2292_v48 = vrot.slane %v1874_v47, 1 }
 0x482   : > { %2353 = vrot.lane.b32.xlu1 %v6895_v44, %s5431_s10  ;;  %v2418_v25 = vsel %vm1130_vm7, %v6620_v16, %v2080_v29  ;;  %v2251_v16 = vrot.slane %v2249_v37, 1  ;;  %v2367_v29 = vshll.u32 %v6949_v62, 16 }
 0x483   : > { %2355 = vrot.lane.b32.xlu0 %v6912_v34, %s5431_s10  ;;  %2835 = vmatmul.mubr.bf16.gmra.mrb[16].mxu1 %v2615_v4  ;;  %v2450_v43 = vsel %vm300_vm0, %v2418_v25, %v2192_v14  ;;  %v2365_v25 = vor.u32 %v2364_v36, %v2360_v22  ;;  %v6979_v47 = vsel %vm791_vm3, %v2291_v19, %v2292_v48 }
 0x484   : > { %v6919_v50 = vpop.permute.xlu1 %2337  ;;  %4869 = vmatprep.mubr.msk.bf16.mxu1 %vm1130_vm7, %v6681_v57  ;;  %v2063_v57 = vor.u32 %v2062_v13, %v2058_v18  ;;  %v2482_v14 = vsel %vm1261_vm10, %v2450_v43, %v6859_v33  ;;  %v2252_v0 = vor.u32 %v2251_v16, %v2247_v41  ;;  %v3125_v33 = vld [vmem:[#allocation2 + $0x8] sm:$0xff]  ;;  %v3179_v13 = vpack.c.bf16 %v3126_v17, %v3126_v17 }
 0x485   : > { %v6924_v61 = vpop.permute.xlu0 %2339  ;;  %v2514_v28 = vsel %vm1327_vm12, %v2482_v14, %v2269_v54  ;;  %v6960_v4 = vpack.c.bf16 %v3125_v33, %v3124_v27 }
 0x486   : > { %2242 = vrot.lane.b32.xlu1 %v6895_v44, %s5427_s16  ;;  %v2068_v42 = vsel %vm534_vm4, %v2063_v57, %v2067_v9  ;;  %v2257_v10 = vsel %vm534_vm4, %v2252_v0, %v2256_v53  ;;  %v2547_v54 = vsel %vm2535_vm15, %v2514_v28, %v6875_v52  ;;  %v3222_v23 = vshll.u32 %v3179_v13, 16 }
 0x487   : > { %2244 = vrot.lane.b32.xlu0 %v6912_v34, %s5427_s16  ;;  %v3217_v12 = vshll.u32 %v6960_v4, 16  ;;  %v3215_v37 = vshrl.u32 %v6960_v4, 16  ;;  %v2369_v57 = vrot.slane %v2367_v29, 1  ;;  %v2420_v52 = vsel %vm1130_vm7, %v6622_v21, %v6908_v63 }
 0x488   : > { %v2227_v5 = vpop.permute.xlu1 %2226  ;;  %v2580_v43 = vsel %vm2568_vm1, %v2547_v54, %v6919_v50  ;;  %v2452_v21 = vsel %vm300_vm0, %v2420_v52, %v6882_v45  ;;  %v3471_v22 = vrot.slane %v3179_v13, 1 }
 0x489   : > { %v6937_v39 = vpop.permute.xlu0 %2228  ;;  %v3219_v9 = vrot.slane %v3217_v12, 1  ;;  %v2370_v50 = vsel %vm534_vm4, %v2365_v25, %v2369_v57  ;;  %v2484_v41 = vsel %vm1261_vm10, %v2452_v21, %v2227_v5  ;;  %v3470_v5 = vrot.slane %v6960_v4, 1 }
 0x48a   : > { %2322 = vrot.lane.b32.xlu1 %v6940_v2, %s5432_s17 }
 0x48b   : > { %2397 = vrot.lane.b32.xlu0 %v2068_v42, %s5433_s22  ;;  %v3220_v55 = vor.u32 %v3219_v9, %v3215_v37 }
 0x48c   : > { %v2307_v26 = vpop.permute.xlu1 %2306 }
 0x48d   : > { %v6952_v3 = vpop.permute.xlu0 %2308 }
 0x48e   : > { %2211 = vrot.lane.b32.xlu1 %v6940_v2, %s5426_s15 }
 0x48f   : > { %2286 = vrot.lane.b32.xlu0 %v2068_v42, %s5428_s8 }
 0x490   : > { %v2196_v38 = vpop.permute.xlu1 %2195 }
 0x491   : > { %v6962_v18 = vpop.permute.xlu0 %2197 }
 0x492   : > { %2399 = vrot.lane.b32.xlu1 %v2257_v10, %s5433_s22 }
 0x493   : > { %2099 = vrot.lane.b32.xlu0 %v2068_v42, %s5422_s25  ;;  %v3224_v42 = vrot.slane %v3222_v23, 1 }
 0x494   : > { %v2384_v56 = vpop.permute.xlu1 %2383 }
 0x495   : > { %v2382_v34 = vpop.permute.xlu0 %2381  ;;  %v3225_v45 = vsel %vm534_vm4, %v3220_v55, %v3224_v42 }
 0x496   : > { %2288 = vrot.lane.b32.xlu1 %v2257_v10, %s5428_s8  ;;  %v2618_v16 = vsel %vm2601_vm2, %v2580_v43, %v2382_v34 }
 0x497   : > { %2324 = vrot.lane.b32.xlu0 %v6979_v47, %s5432_s17  ;;  %2843 = vmatmul.mubr.bf16.gmra.mrb[20].mxu1 %v2618_v16 }
 0x498   : > { %v2273_v63 = vpop.permute.xlu1 %2272  ;;  %4870 = vmatprep.mubr.msk.bf16.mxu1 %vm1130_vm7, %v6686_v31 }
 0x499   : > { %v2271_v49 = vpop.permute.xlu0 %2270 }
 0x49a   : > { %v2516_v14 = vsel %vm1327_vm12, %v2484_v41, %v2271_v49  ;;  %2357 = vrot.lane.b32.xlu1 %v6934_v7, %s5431_s10 }
 0x49b   : > { %v2549_v40 = vsel %vm2535_vm15, %v2516_v14, %v2307_v26  ;;  %2401 = vrot.lane.b32.xlu0 %v2370_v50, %s5433_s22  ;;  %v3472_v26 = vsel %vm791_vm3, %v3470_v5, %v3471_v22 }
 0x49c   : > { %v2086_v0 = vpop.permute.xlu1 %2085  ;;  %v2582_v31 = vsel %vm2568_vm1, %v2549_v40, %v6924_v61 }
 0x49d   : > { %v2084_v28 = vpop.permute.xlu0 %2083  ;;  %v2621_v53 = vsel %vm2601_vm2, %v2582_v31, %v2384_v56 }
 0x49e   : > { %3406 = vrot.lane.b32.xlu1 %v3225_v45, %s5424_s26  ;;  %v2422_v61 = vsel %vm1130_vm7, %v6662_v11, %v2084_v28  ;;  %v2424_v11 = vsel %vm1130_vm7, %v6665_v20, %v2086_v0 }
 0x49f   : > { %2851 = vmatmul.mubr.bf16.gmra.mrb[24].mxu1 %v2621_v53  ;;  %3518 = vrot.lane.b32.xlu0 %v3472_v26, %s5427_s16  ;;  %v2454_v36 = vsel %vm300_vm0, %v2422_v61, %v2196_v38 }
 0x4a0   : > { %v2342_v27 = vpop.permute.xlu1 %2341  ;;  %4871 = vmatprep.mubr.msk.bf16.mxu1 %vm1130_vm7, %v6725_v30  ;;  %v2486_v13 = vsel %vm1261_vm10, %v2454_v36, %v6937_v39  ;;  %v2456_v39 = vsel %vm300_vm0, %v2424_v11, %v6962_v18 }
 0x4a1   : > { %v2344_v33 = vpop.permute.xlu0 %2343  ;;  %v2518_v19 = vsel %vm1327_vm12, %v2486_v13, %v2273_v63 }
 0x4a2   : > { %v2551_v12 = vsel %vm2535_vm15, %v2518_v19, %v6952_v3 }
 0x4a3   : > { %v2584_v23 = vsel %vm2568_vm1, %v2551_v12, %v2342_v27 }
 0x4a4   : > { %v2231_v17 = vpop.permute.xlu1 %2230 }
 0x4a5   : > { %v2233_v29 = vpop.permute.xlu0 %2232  ;;  %v2488_v57 = vsel %vm1261_vm10, %v2456_v39, %v2231_v17 }
 0x4a8   : > { %v2311_v10 = vpop.permute.xlu1 %2310 }
 0x4a9   : > { %v2313_v54 = vpop.permute.xlu0 %2312 }
 0x4ac   : > { %v2200_v30 = vpop.permute.xlu1 %2199 }
 0x4ad   : > { %v2202_v48 = vpop.permute.xlu0 %2201 }
 0x4b0   : > { %v2388_v37 = vpop.permute.xlu1 %2387 }
 0x4b1   : > { %v2386_v38 = vpop.permute.xlu0 %2385 }
 0x4b2   : > { %v2624_v56 = vsel %vm2601_vm2, %v2584_v23, %v2386_v38 }
 0x4b3   : > { %2859 = vmatmul.mubr.bf16.gmra.mrb[28].mxu1 %v2624_v56 }
 0x4b4   : > { %v2277_v25 = vpop.permute.xlu1 %2276  ;;  %4872 = vmatprep.mubr.msk.bf16.mxu1 %vm1130_vm7, %v6730_v58 }
 0x4b5   : > { %v2275_v3 = vpop.permute.xlu0 %2274 }
 0x4b6   : > { %v2520_v9 = vsel %vm1327_vm12, %v2488_v57, %v2275_v3 }
 0x4b7   : > { %v2553_v20 = vsel %vm2535_vm15, %v2520_v9, %v2311_v10 }
 0x4b8   : > { %v2090_v52 = vpop.permute.xlu1 %2089  ;;  %v2586_v43 = vsel %vm2568_vm1, %v2553_v20, %v2344_v33 }
 0x4b9   : > { %v2088_v34 = vpop.permute.xlu0 %2087  ;;  %v2627_v16 = vsel %vm2601_vm2, %v2586_v43, %v2388_v37 }
 0x4ba   : > { %v2426_v58 = vsel %vm1130_vm7, %v6704_v24, %v2088_v34 }
 0x4bb   : > { %2867 = vmatmul.mubr.bf16.gmra.mrb[32].mxu1 %v2627_v16  ;;  %v2458_v21 = vsel %vm300_vm0, %v2426_v58, %v2200_v30 }
 0x4bc   : > { %v2346_v55 = vpop.permute.xlu1 %2345  ;;  %4873 = vmatprep.mubr.msk.bf16.mxu1 %vm1130_vm7, %v6790_v51  ;;  %v2490_v50 = vsel %vm1261_vm10, %v2458_v21, %v2233_v29  ;;  %v2428_v51 = vsel %vm1130_vm7, %v6707_v6, %v2090_v52 }
 0x4bd   : > { %v2348_v18 = vpop.permute.xlu0 %2347  ;;  %v2522_v14 = vsel %vm1327_vm12, %v2490_v50, %v2277_v25  ;;  %v2460_v5 = vsel %vm300_vm0, %v2428_v51, %v2202_v48 }
 0x4be   : > { %v2555_v0 = vsel %vm2535_vm15, %v2522_v14, %v2313_v54 }
 0x4bf   : > { %v2588_v24 = vsel %vm2568_vm1, %v2555_v0, %v2346_v55 }
 0x4c0   : > { %v2235_v42 = vpop.permute.xlu1 %2234 }
 0x4c1   : > { %v2237_v63 = vpop.permute.xlu0 %2236  ;;  %v2492_v27 = vsel %vm1261_vm10, %v2460_v5, %v2235_v42  ;;  %v2405_v5 = vrot.slane %v6949_v62, 1 }
 0x4c4   : > { %v2315_v41 = vpop.permute.xlu1 %2314 }
 0x4c5   : > { %v2317_v49 = vpop.permute.xlu0 %2316 }
 0x4c8   : > { %v2204_v40 = vpop.permute.xlu1 %2203 }
 0x4c9   : > { %v2206_v45 = vpop.permute.xlu0 %2205 }
 0x4cc   : > { %v2392_v31 = vpop.permute.xlu1 %2391 }
 0x4cd   : > { %v2390_v28 = vpop.permute.xlu0 %2389 }
 0x4ce   : > { %v2630_v53 = vsel %vm2601_vm2, %v2588_v24, %v2390_v28 }
 0x4cf   : > { %2875 = vmatmul.mubr.bf16.gmra.mrb[36].mxu1 %v2630_v53  ;;  %v2404_v53 = vrot.slane %v6934_v7, 1 }
 0x4d0   : > { %v2281_v22 = vpop.permute.xlu1 %2280  ;;  %4874 = vmatprep.mubr.msk.bf16.mxu1 %vm1130_vm7, %v6795_v32 }
 0x4d1   : > { %v2279_v26 = vpop.permute.xlu0 %2278 }
 0x4d2   : > { %v2524_v33 = vsel %vm1327_vm12, %v2492_v27, %v2279_v26 }
 0x4d3   : > { %v2557_v61 = vsel %vm2535_vm15, %v2524_v33, %v2315_v41 }
 0x4d4   : > { %v2094_v6 = vpop.permute.xlu1 %2093  ;;  %v2590_v17 = vsel %vm2568_vm1, %v2557_v61, %v2348_v18 }
 0x4d5   : > { %v2092_v36 = vpop.permute.xlu0 %2091  ;;  %v2633_v29 = vsel %vm2601_vm2, %v2590_v17, %v2392_v31 }
 0x4d6   : > { %v2430_v32 = vsel %vm1130_vm7, %v6762_v60, %v2092_v36 }
 0x4d7   : > { %2883 = vmatmul.mubr.bf16.gmra.mrb[40].mxu1 %v2633_v29  ;;  %v2462_v19 = vsel %vm300_vm0, %v2430_v32, %v2204_v40 }
 0x4d8   : > { %v2350_v13 = vpop.permute.xlu1 %2349  ;;  %4875 = vmatprep.mubr.msk.bf16.mxu1 %vm1130_vm7, %v6862_v35  ;;  %v2494_v48 = vsel %vm1261_vm10, %v2462_v19, %v2237_v63  ;;  %v2432_v35 = vsel %vm1130_vm7, %v6766_v8, %v2094_v6  ;;  %v2406_v6 = vsel %vm791_vm3, %v2404_v53, %v2405_v5 }
 0x4d9   : > { %v2352_v10 = vpop.permute.xlu0 %2351  ;;  %v2526_v11 = vsel %vm1327_vm12, %v2494_v48, %v2281_v22  ;;  %v2464_v3 = vsel %vm300_vm0, %v2432_v35, %v2206_v45 }
 0x4da   : > { %v2559_v56 = vsel %vm2535_vm15, %v2526_v11, %v2317_v49 }
 0x4db   : > { %v2592_v60 = vsel %vm2568_vm1, %v2559_v56, %v2350_v13 }
 0x4dc   : > { %v2239_v54 = vpop.permute.xlu1 %2238 }
 0x4dd   : > { %v2241_v30 = vpop.permute.xlu0 %2240  ;;  %v2496_v20 = vsel %vm1261_vm10, %v2464_v3, %v2239_v54 }
 0x4e0   : > { %v2319_v12 = vpop.permute.xlu1 %2318 }
 0x4e1   : > { %v2321_v37 = vpop.permute.xlu0 %2320 }
 0x4e4   : > { %v2208_v23 = vpop.permute.xlu1 %2207 }
 0x4e5   : > { %v2210_v38 = vpop.permute.xlu0 %2209 }
 0x4e8   : > { %v2396_v39 = vpop.permute.xlu1 %2395 }
 0x4e9   : > { %v2394_v25 = vpop.permute.xlu0 %2393 }
 0x4ea   : > { %v2636_v57 = vsel %vm2601_vm2, %v2592_v60, %v2394_v25 }
 0x4eb   : > { %2891 = vmatmul.mubr.bf16.gmra.mrb[44].mxu1 %v2636_v57 }
 0x4ec   : > { %v2285_v9 = vpop.permute.xlu1 %2284  ;;  %4876 = vmatprep.mubr.msk.bf16.mxu1 %vm1130_vm7, %v6867_v15 }
 0x4ed   : > { %v2283_v52 = vpop.permute.xlu0 %2282 }
 0x4ee   : > { %v2528_v43 = vsel %vm1327_vm12, %v2496_v20, %v2283_v52 }
 0x4ef   : > { %v2561_v34 = vsel %vm2535_vm15, %v2528_v43, %v2319_v12 }
 0x4f0   : > { %v2098_v8 = vpop.permute.xlu1 %2097  ;;  %v2594_v16 = vsel %vm2568_vm1, %v2561_v34, %v2352_v10 }
 0x4f1   : > { %v2096_v55 = vpop.permute.xlu0 %2095  ;;  %v2639_v18 = vsel %vm2601_vm2, %v2594_v16, %v2396_v39 }
 0x4f2   : > { %v2434_v58 = vsel %vm1130_vm7, %v6833_v1, %v2096_v55  ;;  %v2436_v1 = vsel %vm1130_vm7, %v6837_v46, %v2098_v8 }
 0x4f3   : > { %v2466_v42 = vsel %vm300_vm0, %v2434_v58, %v2208_v23  ;;  %2899 = vmatmul.mubr.bf16.gmra.mrb[48].mxu1 %v2639_v18  ;;  %v2468_v51 = vsel %vm300_vm0, %v2436_v1, %v2210_v38 }
 0x4f4   : > { %v2498_v15 = vsel %vm1261_vm10, %v2466_v42, %v2241_v30  ;;  %v2354_v21 = vpop.permute.xlu1 %2353  ;;  %4877 = vmatprep.mubr.msk.bf16.mxu1 %vm1130_vm7, %v6940_v2 }
 0x4f5   : > { %v2356_v63 = vpop.permute.xlu0 %2355  ;;  %v2530_v50 = vsel %vm1327_vm12, %v2498_v15, %v2285_v9 }
 0x4f6   : > { %v2563_v14 = vsel %vm2535_vm15, %v2530_v50, %v2321_v37 }
 0x4f7   : > { %v2596_v45 = vsel %vm2568_vm1, %v2563_v14, %v2354_v21 }
 0x4f8   : > { %v2243_v41 = vpop.permute.xlu1 %2242 }
 0x4f9   : > { %v2245_v49 = vpop.permute.xlu0 %2244  ;;  %v2500_v24 = vsel %vm1261_vm10, %v2468_v51, %v2243_v41 }
 0x4fc   : > { %v2323_v40 = vpop.permute.xlu1 %2322 }
 0x4fd   : > { %v2398_v0 = vpop.permute.xlu0 %2397 }
 0x4fe   : > { %v2642_v31 = vsel %vm2601_vm2, %v2596_v45, %v2398_v0 }
 0x4ff   : > { %2907 = vmatmul.mubr.bf16.gmra.mrb[52].mxu1 %v2642_v31 }
 0x500   : > { %v2212_v2 = vpop.permute.xlu1 %2211  ;;  %4878 = vmatprep.mubr.msk.bf16.mxu1 %vm1130_vm7, %v6979_v47 }
 0x501   : > { %v2287_v28 = vpop.permute.xlu0 %2286 }
 0x502   : > { %v2532_v46 = vsel %vm1327_vm12, %v2500_v24, %v2287_v28 }
 0x503   : > { %v2565_v22 = vsel %vm2535_vm15, %v2532_v46, %v2323_v40 }
 0x504   : > { %v2400_v27 = vpop.permute.xlu1 %2399  ;;  %v2598_v26 = vsel %vm2568_vm1, %v2565_v22, %v2356_v63 }
 0x505   : > { %v2100_v33 = vpop.permute.xlu0 %2099  ;;  %v2645_v61 = vsel %vm2601_vm2, %v2598_v26, %v2400_v27 }
 0x506   : > { %v2438_v47 = vsel %vm1130_vm7, %v6895_v44, %v2100_v33 }
 0x507   : > { %v2470_v17 = vsel %vm300_vm0, %v2438_v47, %v2212_v2  ;;  %2915 = vmatmul.mubr.bf16.gmra.mrb[56].mxu1 %v2645_v61 }
 0x508   : > { %v2289_v7 = vpop.permute.xlu1 %2288  ;;  %v2502_v62 = vsel %vm1261_vm10, %v2470_v17, %v2245_v49  ;;  %4879 = vmatprep.mubr.msk.bf16.mxu1 %vm1130_vm7, %v2406_v6 }
 0x509   : > { %v2534_v36 = vsel %vm1327_vm12, %v2502_v62, %v2289_v7  ;;  %v2325_v29 = vpop.permute.xlu0 %2324 }
 0x50a   : > { %v2567_v13 = vsel %vm2535_vm15, %v2534_v36, %v2325_v29 }
 0x50c   : > { %v2358_v10 = vpop.permute.xlu1 %2357 }
 0x50d   : > { %v2600_v32 = vsel %vm2568_vm1, %v2567_v13, %v2358_v10  ;;  %v2402_v54 = vpop.permute.xlu0 %2401 }
 0x50e   : > { %v2648_v19 = vsel %vm2601_vm2, %v2600_v32, %v2402_v54 }
 0x50f   : > { %2923 = vmatmul.mubr.bf16.gmra.mrb[60].mxu1 %v2648_v19 }
 0x510   : > { %v7114_v33 = vpop.permute.xlu1 %3406 }
 0x511   : > { %v7116_v6 = vpop.permute.xlu0 %3518 }
 0x51d   : > { %v2804_v44 = vpop.f32.mrb[0].mxu1 }
 0x51e   : > { %v2931_v30 = vmax.f32 %v2804_v44, 0.0  ;;  %v2806_v48 = vpop.f32.mrb[1].mxu1 }
 0x51f   : > { %v2807_v12 = vpop.f32.mrb[2].mxu1 }
 0x520   : > { %v2932_v37 = vmax.f32 %v2807_v12, 0.0  ;;  %2995 = vrot.lane.b32.xlu1 %v2931_v30, %s5422_s25  ;;  %v2809_v11 = vpop.f32.mrb[3].mxu1 }
 0x522   : > { %2997 = vrot.lane.b32.xlu0 %v2932_v37, %s5422_s25 }
 0x532   : > { %v2812_v23 = vpop.f32.mrb[4].mxu1 }
 0x533   : > { %v2933_v38 = vmax.f32 %v2812_v23, 0.0  ;;  %v2814_v56 = vpop.f32.mrb[5].mxu1 }
 0x534   : > { %v2815_v39 = vpop.f32.mrb[6].mxu1 }
 0x535   : > { %v2934_v35 = vmax.f32 %v2815_v39, 0.0  ;;  %2999 = vrot.lane.b32.xlu1 %v2933_v38, %s5422_s25  ;;  %v2817_v60 = vpop.f32.mrb[7].mxu1 }
 0x537   : > { %3001 = vrot.lane.b32.xlu0 %v2934_v35, %s5422_s25 }
 0x53a   : > { %v2820_v25 = vpop.f32.mrb[8].mxu1 }
 0x53b   : > { %v2935_v57 = vmax.f32 %v2820_v25, 0.0  ;;  %v2822_v3 = vpop.f32.mrb[9].mxu1  ;;  %v5180_v25 = vld [vmem:[#allocation9] sm:$0xff]  }
 0x53c   : > { %v2823_v9 = vpop.f32.mrb[10].mxu1  ;;  %4194 = vmatpush1.bf16.msra.mxu0 %v5180_v25  ;;  %4995 = vmatpush1.bf16.msra.mxu1 %v5180_v25  ;;  %v5181_v3 = vld [vmem:[#allocation9 + $0x8] sm:$0xff]  }
 0x53d   : > { %v2936_v20 = vmax.f32 %v2823_v9, 0.0  ;;  %3003 = vrot.lane.b32.xlu1 %v2935_v57, %s5422_s25  ;;  %v2825_v52 = vpop.f32.mrb[11].mxu1  ;;  %4195 = vmatprep.subr.bf16.mxu0 %v5430_v59 }
 0x53e   : > { %4982 = vmatprep.subr.bf16.mxu1 %v5430_v59 }
 0x53f   : > { %3005 = vrot.lane.b32.xlu0 %v2936_v20, %s5422_s25 }
 0x540   : > { %4196 = vmatpush1.bf16.msra.mxu0 %v5181_v3  ;;  %4996 = vmatpush1.bf16.msra.mxu1 %v5181_v3 }
 0x541   : > { %4197 = vmatprep.subr.bf16.mxu0 %v5430_v59  ;;  %4983 = vmatprep.subr.bf16.mxu1 %v5430_v59 }
 0x54e   : > { %v2828_v43 = vpop.f32.mrb[12].mxu1 }
 0x54f   : > { %v2937_v34 = vmax.f32 %v2828_v43, 0.0  ;;  %v2830_v8 = vpop.f32.mrb[13].mxu1 }
 0x550   : > { %v2831_v16 = vpop.f32.mrb[14].mxu1  ;;  %v5182_v8 = vld [vmem:[#allocation9 + $0x10] sm:$0xff]  }
 0x551   : > { %v2938_v55 = vmax.f32 %v2831_v16, 0.0  ;;  %3007 = vrot.lane.b32.xlu1 %v2937_v34, %s5422_s25  ;;  %v2833_v18 = vpop.f32.mrb[15].mxu1  ;;  %4198 = vmatpush1.bf16.msra.mxu0 %v5182_v8 }
 0x552   : > { %4997 = vmatpush1.bf16.msra.mxu1 %v5182_v8  ;;  %4199 = vmatprep.subr.bf16.mxu0 %v5430_v59  ;;  %v5183_v18 = vld [vmem:[#allocation9 + $0x18] sm:$0xff]  }
 0x553   : > { %3009 = vrot.lane.b32.xlu0 %v2938_v55, %s5422_s25  ;;  %4984 = vmatprep.subr.bf16.mxu1 %v5430_v59 }
 0x555   : > { %4200 = vmatpush1.bf16.msra.mxu0 %v5183_v18 }
 0x556   : > { %v2836_v58 = vpop.f32.mrb[16].mxu1  ;;  %4998 = vmatpush1.bf16.msra.mxu1 %v5183_v18  ;;  %4201 = vmatprep.subr.bf16.mxu0 %v5430_v59 }
 0x557   : > { %v2939_v42 = vmax.f32 %v2836_v58, 0.0  ;;  %v2838_v15 = vpop.f32.mrb[17].mxu1  ;;  %4985 = vmatprep.subr.bf16.mxu1 %v5430_v59 }
 0x558   : > { %v2839_v21 = vpop.f32.mrb[18].mxu1 }
 0x559   : > { %v2940_v63 = vmax.f32 %v2839_v21, 0.0  ;;  %3011 = vrot.lane.b32.xlu1 %v2939_v42, %s5422_s25  ;;  %v2841_v50 = vpop.f32.mrb[19].mxu1 }
 0x55b   : > { %3013 = vrot.lane.b32.xlu0 %v2940_v63, %s5422_s25 }
 0x56a   : > { %v2844_v41 = vpop.f32.mrb[20].mxu1 }
 0x56b   : > { %v2941_v49 = vmax.f32 %v2844_v41, 0.0  ;;  %v2846_v14 = vpop.f32.mrb[21].mxu1  ;;  %v5184_v41 = vld [vmem:[#allocation9 + $0x20] sm:$0xff]  }
 0x56c   : > { %v2847_v40 = vpop.f32.mrb[22].mxu1  ;;  %4202 = vmatpush1.bf16.msra.mxu0 %v5184_v41  ;;  %4999 = vmatpush1.bf16.msra.mxu1 %v5184_v41 }
 0x56d   : > { %v2942_v1 = vmax.f32 %v2847_v40, 0.0  ;;  %3015 = vrot.lane.b32.xlu1 %v2941_v49, %s5422_s25  ;;  %v2849_v45 = vpop.f32.mrb[23].mxu1  ;;  %4203 = vmatprep.subr.bf16.mxu0 %v5430_v59  ;;  %v5185_v40 = vld [vmem:[#allocation9 + $0x28] sm:$0xff]  }
 0x56e   : > { %4986 = vmatprep.subr.bf16.mxu1 %v5430_v59  ;;  %v5186_v45 = vld [vmem:[#allocation9 + $0x30] sm:$0xff]  }
 0x56f   : > { %3017 = vrot.lane.b32.xlu0 %v2942_v1, %s5422_s25 }
 0x570   : > { %4204 = vmatpush1.bf16.msra.mxu0 %v5185_v40  ;;  %5000 = vmatpush1.bf16.msra.mxu1 %v5185_v40 }
 0x571   : > { %4205 = vmatprep.subr.bf16.mxu0 %v5430_v59  ;;  %4987 = vmatprep.subr.bf16.mxu1 %v5430_v59 }
 0x572   : > { %v2852_v0 = vpop.f32.mrb[24].mxu1 }
 0x573   : > { %v2943_v31 = vmax.f32 %v2852_v0, 0.0  ;;  %v2854_v51 = vpop.f32.mrb[25].mxu1 }
 0x574   : > { %v2855_v2 = vpop.f32.mrb[26].mxu1  ;;  %4206 = vmatpush1.bf16.msra.mxu0 %v5186_v45  ;;  %5001 = vmatpush1.bf16.msra.mxu1 %v5186_v45 }
 0x575   : > { %v2944_v24 = vmax.f32 %v2855_v2, 0.0  ;;  %3019 = vrot.lane.b32.xlu1 %v2943_v31, %s5422_s25  ;;  %v2857_v28 = vpop.f32.mrb[27].mxu1  ;;  %4207 = vmatprep.subr.bf16.mxu0 %v5430_v59 }
 0x576   : > { %v5187_v28 = vld [vmem:[#allocation9 + $0x38] sm:$0xff]   ;;  %4988 = vmatprep.subr.bf16.mxu1 %v5430_v59 }
 0x577   : > { %3021 = vrot.lane.b32.xlu0 %v2944_v24, %s5422_s25 }
 0x578   : > { %4208 = vmatpush1.bf16.msra.mxu0 %v5187_v28  ;;  %5002 = vmatpush1.bf16.msra.mxu1 %v5187_v28 }
 0x579   : > { %4209 = vmatprep.subr.bf16.mxu0 %v5430_v59  ;;  %4989 = vmatprep.subr.bf16.mxu1 %v5430_v59 }
 0x586   : > { %v2860_v53 = vpop.f32.mrb[28].mxu1 }
 0x587   : > { %v2945_v5 = vmax.f32 %v2860_v53, 0.0  ;;  %v2862_v46 = vpop.f32.mrb[29].mxu1 }
 0x588   : > { %v2863_v22 = vpop.f32.mrb[30].mxu1 }
 0x589   : > { %v2946_v27 = vmax.f32 %v2863_v22, 0.0  ;;  %3023 = vrot.lane.b32.xlu1 %v2945_v5, %s5422_s25  ;;  %v2865_v26 = vpop.f32.mrb[31].mxu1  ;;  %v5188_v5 = vld [vmem:[#allocation9 + $0x40] sm:$0xff]  }
 0x58a   : > { %4210 = vmatpush1.bf16.msra.mxu0 %v5188_v5  ;;  %5003 = vmatpush1.bf16.msra.mxu1 %v5188_v5 }
 0x58b   : > { %3025 = vrot.lane.b32.xlu0 %v2946_v27, %s5422_s25  ;;  %4211 = vmatprep.subr.bf16.mxu0 %v5430_v59 }
 0x58c   : > { %4990 = vmatprep.subr.bf16.mxu1 %v5430_v59 }
 0x58e   : > { %v2868_v61 = vpop.f32.mrb[32].mxu1 }
 0x58f   : > { %v2947_v47 = vmax.f32 %v2868_v61, 0.0  ;;  %v2870_v17 = vpop.f32.mrb[33].mxu1 }
 0x590   : > { %v2871_v7 = vpop.f32.mrb[34].mxu1  ;;  %v5189_v17 = vld [vmem:[#allocation9 + $0x48] sm:$0xff]  }
 0x591   : > { %v2948_v62 = vmax.f32 %v2871_v7, 0.0  ;;  %3027 = vrot.lane.b32.xlu1 %v2947_v47, %s5422_s25  ;;  %v2873_v36 = vpop.f32.mrb[35].mxu1  ;;  %4212 = vmatpush1.bf16.msra.mxu0 %v5189_v17 }
 0x592   : > { %v2996_v29 = vpop.permute.xlu1 %2995  ;;  %5004 = vmatpush1.bf16.msra.mxu1 %v5189_v17  ;;  %4213 = vmatprep.subr.bf16.mxu0 %v5430_v59 }
 0x593   : > { %3092 = vst.msk [vmem:[#allocation2 + $0x19] sm:$0xff] %vm3091_vm5, %v2996_v29  ;;  %3029 = vrot.lane.b32.xlu0 %v2948_v62, %s5422_s25  ;;  %4991 = vmatprep.subr.bf16.mxu1 %v5430_v59 }
 0x594   : > { %v2998_v13 = vpop.permute.xlu0 %2997 }
 0x595   : > { %3093 = vst.msk [vmem:[#allocation2 + $0x21] sm:$0xff] %vm3091_vm5, %v2998_v13 }
 0x59a   : > { %v3127_v62 = vld [vmem:[#allocation2 + $0x18] sm:$0xff] }
 0x59c   : > { %v3128_v47 = vld [vmem:[#allocation2 + $0x20] sm:$0xff]  ;;  %v3129_v36 = vld [vmem:[#allocation2 + $0x28] sm:$0x3] }
 0x59d   : > { %v7161_v29 = vpack.c.bf16 %v3128_v47, %v3127_v62 }
 0x59f   : > { %v3227_v3 = vshrl.u32 %v7161_v29, 16 }
 0x5a2   : > { %v2876_v10 = vpop.f32.mrb[36].mxu1 }
 0x5a3   : > { %v2949_v32 = vmax.f32 %v2876_v10, 0.0  ;;  %v2878_v54 = vpop.f32.mrb[37].mxu1 }
 0x5a4   : > { %v2879_v19 = vpop.f32.mrb[38].mxu1  ;;  %v5190_v54 = vld [vmem:[#allocation9 + $0x50] sm:$0xff]  }
 0x5a5   : > { %v2950_v44 = vmax.f32 %v2879_v19, 0.0  ;;  %3031 = vrot.lane.b32.xlu1 %v2949_v32, %s5422_s25  ;;  %v2881_v30 = vpop.f32.mrb[39].mxu1  ;;  %v3181_v32 = vpack.c.bf16 %v3129_v36, %v3129_v36  ;;  %4214 = vmatpush1.bf16.msra.mxu0 %v5190_v54 }
 0x5a6   : > { %5005 = vmatpush1.bf16.msra.mxu1 %v5190_v54  ;;  %4215 = vmatprep.subr.bf16.mxu0 %v5430_v59 }
 0x5a7   : > { %v3000_v48 = vpop.permute.xlu1 %2999  ;;  %3033 = vrot.lane.b32.xlu0 %v2950_v44, %s5422_s25  ;;  %4992 = vmatprep.subr.bf16.mxu1 %v5430_v59 }
 0x5a8   : > { %3094 = vst.msk [vmem:[#allocation2 + $0x31] sm:$0xff] %vm3091_vm5, %v3000_v48  ;;  %v3229_v48 = vshll.u32 %v7161_v29, 16 }
 0x5a9   : > { %v3002_v12 = vpop.permute.xlu0 %3001 }
 0x5aa   : > { %3095 = vst.msk [vmem:[#allocation2 + $0x39] sm:$0xff] %vm3091_vm5, %v3002_v12  ;;  %v2884_v37 = vpop.f32.mrb[40].mxu1 }
 0x5ab   : > { %v2951_v11 = vmax.f32 %v2884_v37, 0.0  ;;  %v2886_v23 = vpop.f32.mrb[41].mxu1 }
 0x5ac   : > { %v2887_v38 = vpop.f32.mrb[42].mxu1  ;;  %v3473_v23 = vrot.slane %v7161_v29, 1 }
 0x5ad   : > { %v2952_v56 = vmax.f32 %v2887_v38, 0.0  ;;  %3035 = vrot.lane.b32.xlu1 %v2951_v11, %s5422_s25  ;;  %v2889_v39 = vpop.f32.mrb[43].mxu1  ;;  %v5191_v11 = vld [vmem:[#allocation9 + $0x58] sm:$0xff]   ;;  %v3474_v38 = vrot.slane %v3181_v32, 1 }
 0x5ae   : > { %4216 = vmatpush1.bf16.msra.mxu0 %v5191_v11  ;;  %5006 = vmatpush1.bf16.msra.mxu1 %v5191_v11 }
 0x5af   : > { %v3004_v35 = vpop.permute.xlu1 %3003  ;;  %3037 = vrot.lane.b32.xlu0 %v2952_v56, %s5422_s25  ;;  %4217 = vmatprep.subr.bf16.mxu0 %v5430_v59 }
 0x5b0   : > { %3096 = vst.msk [vmem:[#allocation2 + $0x49] sm:$0xff] %vm3091_vm5, %v3004_v35  ;;  %4993 = vmatprep.subr.bf16.mxu1 %v5430_v59 }
 0x5b1   : > { %v3006_v60 = vpop.permute.xlu0 %3005  ;;  %v3131_v39 = vld [vmem:[#allocation2 + $0x38] sm:$0xff]  ;;  %v3132_v35 = vld [vmem:[#allocation2 + $0x40] sm:$0x3] }
 0x5b2   : > { %3097 = vst.msk [vmem:[#allocation2 + $0x51] sm:$0xff] %vm3091_vm5, %v3006_v60  ;;  %v3231_v60 = vrot.slane %v3229_v48, 1 }
 0x5b4   : > { %v3232_v8 = vor.u32 %v3231_v60, %v3227_v3 }
 0x5b9   : > { %v3134_v40 = vld [vmem:[#allocation2 + $0x50] sm:$0xff] }
 0x5be   : > { %v2892_v57 = vpop.f32.mrb[44].mxu1 }
 0x5bf   : > { %v2953_v9 = vmax.f32 %v2892_v57, 0.0  ;;  %v2894_v20 = vpop.f32.mrb[45].mxu1  ;;  %v3130_v57 = vld [vmem:[#allocation2 + $0x30] sm:$0xff] }
 0x5c0   : > { %v2895_v52 = vpop.f32.mrb[46].mxu1  ;;  %v3475_v20 = vsel %vm791_vm3, %v3473_v23, %v3474_v38 }
 0x5c1   : > { %v2954_v43 = vmax.f32 %v2895_v52, 0.0  ;;  %3039 = vrot.lane.b32.xlu1 %v2953_v9, %s5422_s25  ;;  %v2897_v34 = vpop.f32.mrb[47].mxu1  ;;  %v5192_v9 = vld [vmem:[#allocation9 + $0x60] sm:$0xff]   ;;  %v7179_v52 = vpack.c.bf16 %v3131_v39, %v3130_v57 }
 0x5c2   : > { %v3183_v34 = vpack.c.bf16 %v3132_v35, %v3132_v35  ;;  %4218 = vmatpush1.bf16.msra.mxu0 %v5192_v9  ;;  %5007 = vmatpush1.bf16.msra.mxu1 %v5192_v9 }
 0x5c3   : > { %v3008_v16 = vpop.permute.xlu1 %3007  ;;  %3041 = vrot.lane.b32.xlu0 %v2954_v43, %s5422_s25  ;;  %v3234_v43 = vshll.u32 %v3181_v32, 16  ;;  %4219 = vmatprep.subr.bf16.mxu0 %v5430_v59  ;;  %v3239_v41 = vshrl.u32 %v7179_v52, 16 }
 0x5c4   : > { %3098 = vst.msk [vmem:[#allocation2 + $0x61] sm:$0xff] %vm3091_vm5, %v3008_v16  ;;  %v3477_v18 = vrot.slane %v3183_v34, 1  ;;  %4994 = vmatprep.subr.bf16.mxu1 %v5430_v59 }
 0x5c5   : > { %v3010_v55 = vpop.permute.xlu0 %3009  ;;  %v3236_v16 = vrot.slane %v3234_v43, 1 }
 0x5c6   : > { %3099 = vst.msk [vmem:[#allocation2 + $0x69] sm:$0xff] %vm3091_vm5, %v3010_v55  ;;  %v2900_v58 = vpop.f32.mrb[48].mxu1  ;;  %v3476_v55 = vrot.slane %v7179_v52, 1 }
 0x5c7   : > { %v2955_v42 = vmax.f32 %v2900_v58, 0.0  ;;  %v2902_v15 = vpop.f32.mrb[49].mxu1  ;;  %v3241_v58 = vshll.u32 %v7179_v52, 16 }
 0x5c8   : > { %v2903_v21 = vpop.f32.mrb[50].mxu1  ;;  %v3237_v15 = vsel %vm534_vm4, %v3232_v8, %v3236_v16 }
 0x5c9   : > { %v2956_v63 = vmax.f32 %v2903_v21, 0.0  ;;  %3043 = vrot.lane.b32.xlu1 %v2955_v42, %s5422_s25  ;;  %v2905_v50 = vpop.f32.mrb[51].mxu1  ;;  %v5193_v42 = vld [vmem:[#allocation9 + $0x68] ss:$0 sps:$4 sm:$0xff]  }
 0x5ca   : > { %v4191_v21 = vsel %vm1429_vm6, %v5193_v42, 0  ;;  %v3243_v50 = vrot.slane %v3241_v58, 1  ;;  %vm3904_vm6 = vcmask 982016  }
 0x5cb   : > { %v3012_v49 = vpop.permute.xlu1 %3011  ;;  %3045 = vrot.lane.b32.xlu0 %v2956_v63, %s5422_s25  ;;  %4220 = vmatpush1.bf16.msra.mxu0 %v4191_v21  ;;  %v3478_v63 = vsel %vm791_vm3, %v3476_v55, %v3477_v18 }
 0x5cc   : > { %3100 = vst.msk [vmem:[#allocation2 + $0x79] sm:$0xff] %vm3091_vm5, %v3012_v49  ;;  %5008 = vmatpush1.bf16.msra.mxu1 %v4191_v21  ;;  %v3246_v49 = vshll.u32 %v3183_v34, 16 }
 0x5cd   : > { %v3014_v14 = vpop.permute.xlu0 %3013  ;;  %v3137_v62 = vld [vmem:[#allocation2 + $0x68] sm:$0xff]  ;;  %v3138_v36 = vld [vmem:[#allocation2 + $0x70] sm:$0x3] }
 0x5ce   : > { %3101 = vst.msk [vmem:[#allocation2 + $0x81] sm:$0xff] %vm3091_vm5, %v3014_v14  ;;  %v3244_v14 = vor.u32 %v3243_v50, %v3239_v41  ;;  %v3248_v45 = vrot.slane %v3246_v49, 1 }
 0x5d2   : > { %v2908_v1 = vpop.f32.mrb[52].mxu1 }
 0x5d3   : > { %v2957_v0 = vmax.f32 %v2908_v1, 0.0  ;;  %v2910_v31 = vpop.f32.mrb[53].mxu1  ;;  %v3135_v1 = vld [vmem:[#allocation2 + $0x58] sm:$0x3] }
 0x5d4   : > { %v2911_v51 = vpop.f32.mrb[54].mxu1  ;;  %v3249_v31 = vsel %vm534_vm4, %v3244_v14, %v3248_v45  ;;  %v3139_v57 = vld [vmem:[#allocation2 + $0x78] sm:$0xff] }
 0x5d5   : > { %v2958_v2 = vmax.f32 %v2911_v51, 0.0  ;;  %3047 = vrot.lane.b32.xlu1 %v2957_v0, %s5422_s25  ;;  %v2913_v24 = vpop.f32.mrb[55].mxu1  ;;  %v3133_v0 = vld [vmem:[#allocation2 + $0x48] sm:$0xff]  ;;  %v3140_v39 = vld [vmem:[#allocation2 + $0x80] sm:$0xff] }
 0x5d6   : > { %v7201_v51 = vpack.c.bf16 %v3134_v40, %v3133_v0  ;;  %v3141_v35 = vld [vmem:[#allocation2 + $0x88] sm:$0x3]  ;;  %v7241_v9 = vpack.c.bf16 %v3140_v39, %v3139_v57 }
 0x5d7   : > { %3049 = vrot.lane.b32.xlu0 %v2958_v2, %s5422_s25  ;;  %v3185_v2 = vpack.c.bf16 %v3135_v1, %v3135_v1 }
 0x5d8   : > { %v3485_v43 = vrot.slane %v7241_v9, 1  ;;  %v3277_v8 = vshll.u32 %v7241_v9, 16  ;;  %v3275_v42 = vshrl.u32 %v7241_v9, 16 }
 0x5d9   : > { %v3480_v5 = vrot.slane %v3185_v2, 1  ;;  %v3258_v47 = vshll.u32 %v3185_v2, 16 }
 0x5da   : > { %v2916_v53 = vpop.f32.mrb[56].mxu1  ;;  %v3279_v58 = vrot.slane %v3277_v8, 1 }
 0x5db   : > { %v2959_v46 = vmax.f32 %v2916_v53, 0.0  ;;  %v2918_v22 = vpop.f32.mrb[57].mxu1  ;;  %v3479_v53 = vrot.slane %v7201_v51, 1 }
 0x5dc   : > { %v2919_v27 = vpop.f32.mrb[58].mxu1  ;;  %v3280_v21 = vor.u32 %v3279_v58, %v3275_v42 }
 0x5dd   : > { %v2960_v26 = vmax.f32 %v2919_v27, 0.0  ;;  %3051 = vrot.lane.b32.xlu1 %v2959_v46, %s5422_s25  ;;  %v2921_v61 = vpop.f32.mrb[59].mxu1  ;;  %v3253_v46 = vshll.u32 %v7201_v51, 16  ;;  %v3481_v22 = vsel %vm791_vm3, %v3479_v53, %v3480_v5 }
 0x5de   : > { %v3251_v61 = vshrl.u32 %v7201_v51, 16 }
 0x5df   : > { %v3016_v7 = vpop.permute.xlu1 %3015  ;;  %3053 = vrot.lane.b32.xlu0 %v2960_v26, %s5422_s25  ;;  %v3255_v27 = vrot.slane %v3253_v46, 1 }
 0x5e0   : > { %3102 = vst.msk [vmem:[#allocation2 + $0x91] sm:$0xff] %vm3091_vm5, %v3016_v7 }
 0x5e1   : > { %v3018_v13 = vpop.permute.xlu0 %3017  ;;  %v3256_v7 = vor.u32 %v3255_v27, %v3251_v61 }
 0x5e2   : > { %3103 = vst.msk [vmem:[#allocation2 + $0x99] sm:$0xff] %vm3091_vm5, %v3018_v13  ;;  %v2924_v10 = vpop.f32.mrb[60].mxu1  ;;  %v3260_v13 = vrot.slane %v3258_v47, 1 }
 0x5e3   : > { %v2961_v19 = vmax.f32 %v2924_v10, 0.0  ;;  %v2926_v44 = vpop.f32.mrb[61].mxu1  ;;  %v3136_v10 = vld [vmem:[#allocation2 + $0x60] sm:$0xff] }
 0x5e4   : > { %v2927_v30 = vpop.f32.mrb[62].mxu1  ;;  %v3261_v32 = vsel %vm534_vm4, %v3256_v7, %v3260_v13  ;;  %v7222_v54 = vpack.c.bf16 %v3137_v62, %v3136_v10 }
 0x5e5   : > { %v2962_v12 = vmax.f32 %v2927_v30, 0.0  ;;  %3055 = vrot.lane.b32.xlu1 %v2961_v19, %s5422_s25  ;;  %v2929_v37 = vpop.f32.mrb[63].mxu1  ;;  %v3187_v19 = vpack.c.bf16 %v3138_v36, %v3138_v36 }
 0x5e6   : > { %v3482_v44 = vrot.slane %v7222_v54, 1  ;;  %v3265_v48 = vshll.u32 %v7222_v54, 16  ;;  %v3263_v11 = vshrl.u32 %v7222_v54, 16 }
 0x5e7   : > { %v3020_v56 = vpop.permute.xlu1 %3019  ;;  %3057 = vrot.lane.b32.xlu0 %v2962_v12, %s5422_s25  ;;  %v3483_v30 = vrot.slane %v3187_v19, 1  ;;  %v3270_v23 = vshll.u32 %v3187_v19, 16  ;;  %v3142_v49 = vld [vmem:[#allocation2 + $0x90] sm:$0xff] }
 0x5e8   : > { %3104 = vst.msk [vmem:[#allocation2 + $0xa9] sm:$0xff] %vm3091_vm5, %v3020_v56  ;;  %v3267_v37 = vrot.slane %v3265_v48, 1 }
 0x5e9   : > { %3551 = vrot.lane.b32.xlu1 %v7161_v29, %s5434_s29  ;;  %v3022_v25 = vpop.permute.xlu0 %3021  ;;  %v3484_v12 = vsel %vm791_vm3, %v3482_v44, %v3483_v30  ;;  %v3272_v60 = vrot.slane %v3270_v23, 1  ;;  %v3144_v50 = vld [vmem:[#allocation2 + $0xa0] sm:$0x3] }
 0x5ea   : > { %3105 = vst.msk [vmem:[#allocation2 + $0xb1] sm:$0xff] %vm3091_vm5, %v3022_v25  ;;  %v3268_v38 = vor.u32 %v3267_v37, %v3263_v11  ;;  %v3191_v1 = vpack.c.bf16 %v3144_v50, %v3144_v50 }
 0x5eb   : > { %3520 = vrot.lane.b32.xlu0 %v3475_v20, %s5427_s16 }
 0x5ec   : > { %v3273_v3 = vsel %vm534_vm4, %v3268_v38, %v3272_v60  ;;  %v3489_v0 = vrot.slane %v3191_v1, 1  ;;  %v3294_v5 = vshll.u32 %v3191_v1, 16 }
 0x5ed   : > { %3631 = vrot.lane.b32.xlu1 %v3475_v20, %s5435_s7  ;;  %v3189_v20 = vpack.c.bf16 %v3141_v35, %v3141_v35 }
 0x5ee   : > { %v3296_v61 = vrot.slane %v3294_v5, 1 }
 0x5ef   : > { %3664 = vrot.lane.b32.xlu0 %v7179_v52, %s5422_s25  ;;  %v3486_v34 = vrot.slane %v3189_v20, 1  ;;  %v3145_v47 = vld [vmem:[#allocation2 + $0xa8] sm:$0xff] }
 0x5f1   : > { %3595 = vrot.lane.b32.xlu1 %v3237_v15, %s5431_s10  ;;  %v3487_v18 = vsel %vm791_vm3, %v3485_v43, %v3486_v34  ;;  %v3146_v27 = vld [vmem:[#allocation2 + $0xb0] sm:$0xff] }
 0x5f2   : > { %v7279_v7 = vpack.c.bf16 %v3146_v27, %v3145_v47 }
 0x5f3   : > { %3744 = vrot.lane.b32.xlu0 %v3478_v63, %s5428_s8 }
 0x5f4   : > { %v3491_v10 = vrot.slane %v7279_v7, 1  ;;  %v3301_v19 = vshll.u32 %v7279_v7, 16  ;;  %v3299_v48 = vshrl.u32 %v7279_v7, 16 }
 0x5f5   : > { %3408 = vrot.lane.b32.xlu1 %v3237_v15, %s5424_s26  ;;  %v3282_v15 = vshll.u32 %v3189_v20, 16 }
 0x5f6   : > { %v3303_v30 = vrot.slane %v3301_v19, 1 }
 0x5f7   : > { %3522 = vrot.lane.b32.xlu0 %v3478_v63, %s5427_s16  ;;  %v3284_v41 = vrot.slane %v3282_v15, 1 }
 0x5f8   : > { %v3304_v37 = vor.u32 %v3303_v30, %v3299_v48 }
 0x5f9   : > { %3553 = vrot.lane.b32.xlu1 %v7179_v52, %s5434_s29  ;;  %v3285_v14 = vsel %vm534_vm4, %v3280_v21, %v3284_v41 }
 0x5fb   : > { %v3024_v24 = vpop.permute.xlu1 %3023  ;;  %3708 = vrot.lane.b32.xlu0 %v3249_v31, %s5425_s30 }
 0x5fc   : > { %3106 = vst.msk [vmem:[#allocation2 + $0xc1] sm:$0xff] %vm3091_vm5, %v3024_v24 }
 0x5fd   : > { %3633 = vrot.lane.b32.xlu1 %v3478_v63, %s5435_s7  ;;  %v3026_v28 = vpop.permute.xlu0 %3025  ;;  %v3143_v63 = vld [vmem:[#allocation2 + $0x98] sm:$0xff] }
 0x5fe   : > { %3107 = vst.msk [vmem:[#allocation2 + $0xc9] sm:$0xff] %vm3091_vm5, %v3026_v28  ;;  %v7260_v40 = vpack.c.bf16 %v3143_v63, %v3142_v49 }
 0x5ff   : > { %3666 = vrot.lane.b32.xlu0 %v7201_v51, %s5422_s25 }
 0x600   : > { %v3488_v45 = vrot.slane %v7260_v40, 1  ;;  %v3287_v53 = vshrl.u32 %v7260_v40, 16 }
 0x601   : > { %3597 = vrot.lane.b32.xlu1 %v3249_v31, %s5431_s10 }
 0x602   : > { %v3490_v2 = vsel %vm791_vm3, %v3488_v45, %v3489_v0 }
 0x603   : > { %v3028_v26 = vpop.permute.xlu1 %3027  ;;  %3746 = vrot.lane.b32.xlu0 %v3481_v22, %s5428_s8  ;;  %v3148_v35 = vld [vmem:[#allocation2 + $0xc0] sm:$0xff] }
 0x604   : > { %3108 = vst.msk [vmem:[#allocation2 + $0xd9] sm:$0xff] %vm3091_vm5, %v3028_v26  ;;  %v3147_v26 = vld [vmem:[#allocation2 + $0xb8] sm:$0x3] }
 0x605   : > { %3410 = vrot.lane.b32.xlu1 %v3249_v31, %s5424_s26  ;;  %v3030_v17 = vpop.permute.xlu0 %3029  ;;  %v3289_v31 = vshll.u32 %v7260_v40, 16  ;;  %v3193_v62 = vpack.c.bf16 %v3147_v26, %v3147_v26  ;;  %v3149_v23 = vld [vmem:[#allocation2 + $0xc8] sm:$0xff]  ;;  %v3150_v38 = vld [vmem:[#allocation2 + $0xd0] sm:$0x3] }
 0x606   : > { %3109 = vst.msk [vmem:[#allocation2 + $0xe1] sm:$0xff] %vm3091_vm5, %v3030_v17  ;;  %v3195_v57 = vpack.c.bf16 %v3150_v38, %v3150_v38 }
 0x607   : > { %3524 = vrot.lane.b32.xlu0 %v3481_v22, %s5427_s16  ;;  %v3291_v24 = vrot.slane %v3289_v31, 1 }
 0x608   : > { %v3495_v20 = vrot.slane %v3195_v57, 1  ;;  %v3318_v58 = vshll.u32 %v3195_v57, 16 }
 0x609   : > { %3555 = vrot.lane.b32.xlu1 %v7201_v51, %s5434_s29 }
 0x60a   : > { %v3320_v50 = vrot.slane %v3318_v58, 1 }
 0x60b   : > { %3710 = vrot.lane.b32.xlu0 %v3261_v32, %s5425_s30  ;;  %v3151_v49 = vld [vmem:[#allocation2 + $0xd8] sm:$0xff] }
 0x60d   : > { %3635 = vrot.lane.b32.xlu1 %v3481_v22, %s5435_s7  ;;  %v3292_v22 = vor.u32 %v3291_v24, %v3287_v53  ;;  %v3152_v21 = vld [vmem:[#allocation2 + $0xe0] sm:$0xff]  ;;  %v3153_v63 = vld [vmem:[#allocation2 + $0xe8] sm:$0x3] }
 0x60e   : > { %v7321_v1 = vpack.c.bf16 %v3152_v21, %v3151_v49  ;;  %v3197_v45 = vpack.c.bf16 %v3153_v63, %v3153_v63 }
 0x60f   : > { %3668 = vrot.lane.b32.xlu0 %v7222_v54, %s5422_s25  ;;  %v3297_v17 = vsel %vm534_vm4, %v3292_v22, %v3296_v61 }
 0x610   : > { %v3498_v24 = vrot.slane %v3197_v45, 1  ;;  %v3323_v26 = vshrl.u32 %v7321_v1, 16  ;;  %v3330_v61 = vshll.u32 %v3197_v45, 16 }
 0x611   : > { %3599 = vrot.lane.b32.xlu1 %v3261_v32, %s5431_s10 }
 0x613   : > { %3748 = vrot.lane.b32.xlu0 %v3484_v12, %s5428_s8 }
 0x615   : > { %3412 = vrot.lane.b32.xlu1 %v3261_v32, %s5424_s26  ;;  %v3492_v32 = vrot.slane %v3193_v62, 1 }
 0x617   : > { %v3032_v56 = vpop.permute.xlu1 %3031  ;;  %3526 = vrot.lane.b32.xlu0 %v3484_v12, %s5427_s16  ;;  %v3493_v44 = vsel %vm791_vm3, %v3491_v10, %v3492_v32  ;;  %v3777_v10 = vsel %vm1163_vm8, %v6960_v4, %v7114_v33  ;;  %v3332_v32 = vrot.slane %v3330_v61, 1 }
 0x618   : > { %3110 = vst.msk [vmem:[#allocation2 + $0xf1] sm:$0xff] %vm3091_vm5, %v3032_v56 }
 0x619   : > { %3557 = vrot.lane.b32.xlu1 %v7222_v54, %s5434_s29  ;;  %v3034_v25 = vpop.permute.xlu0 %3033 }
 0x61a   : > { %3111 = vst.msk [vmem:[#allocation2 + $0xf9] sm:$0xff] %vm3091_vm5, %v3034_v25  ;;  %v7300_v25 = vpack.c.bf16 %v3149_v23, %v3148_v35 }
 0x61b   : > { %3712 = vrot.lane.b32.xlu0 %v3273_v3, %s5425_s30 }
 0x61c   : > { %v3313_v43 = vshll.u32 %v7300_v25, 16 }
 0x61d   : > { %3637 = vrot.lane.b32.xlu1 %v3484_v12, %s5435_s7  ;;  %v3306_v12 = vshll.u32 %v3193_v62, 16 }
 0x61f   : > { %v3036_v16 = vpop.permute.xlu1 %3035  ;;  %3670 = vrot.lane.b32.xlu0 %v7241_v9, %s5422_s25  ;;  %v3308_v56 = vrot.slane %v3306_v12, 1 }
 0x620   : > { %3112 = vst.msk [vmem:[#allocation2 + $0x109] sm:$0xff] %vm3091_vm5, %v3036_v16 }
 0x621   : > { %3601 = vrot.lane.b32.xlu1 %v3273_v3, %s5431_s10  ;;  %v3038_v55 = vpop.permute.xlu0 %3037  ;;  %v3309_v60 = vsel %vm534_vm4, %v3304_v37, %v3308_v56  ;;  %v3809_v37 = vsel %vm1261_vm10, %v3777_v10, %v7116_v6 }
 0x622   : > { %3113 = vst.msk [vmem:[#allocation2 + $0x111] sm:$0xff] %vm3091_vm5, %v3038_v55  ;;  %v3315_v55 = vrot.slane %v3313_v43, 1 }
 0x623   : > { %3750 = vrot.lane.b32.xlu0 %v3487_v18, %s5428_s8 }
 0x625   : > { %3414 = vrot.lane.b32.xlu1 %v3273_v3, %s5424_s26  ;;  %v3494_v3 = vrot.slane %v7300_v25, 1 }
 0x627   : > { %3528 = vrot.lane.b32.xlu0 %v3487_v18, %s5427_s16  ;;  %v3496_v16 = vsel %vm791_vm3, %v3494_v3, %v3495_v20  ;;  %v3157_v49 = vld [vmem:[#allocation2 + $0x108] sm:$0xff] }
 0x629   : > { %3559 = vrot.lane.b32.xlu1 %v7241_v9, %s5434_s29  ;;  %v3159_v21 = vld [vmem:[#allocation2 + $0x118] sm:$0x3] }
 0x62b   : > { %3714 = vrot.lane.b32.xlu0 %v3285_v14, %s5425_s30 }
 0x62d   : > { %3639 = vrot.lane.b32.xlu1 %v3487_v18, %s5435_s7  ;;  %v3311_v18 = vshrl.u32 %v7300_v25, 16 }
 0x62f   : > { %3672 = vrot.lane.b32.xlu0 %v7260_v40, %s5422_s25  ;;  %v3316_v42 = vor.u32 %v3315_v55, %v3311_v18 }
 0x631   : > { %3603 = vrot.lane.b32.xlu1 %v3285_v14, %s5431_s10 }
 0x633   : > { %v3040_v28 = vpop.permute.xlu1 %3039  ;;  %3752 = vrot.lane.b32.xlu0 %v3490_v2, %s5428_s8 }
 0x634   : > { %3114 = vst.msk [vmem:[#allocation2 + $0x121] sm:$0xff] %vm3091_vm5, %v3040_v28  ;;  %v3325_v28 = vshll.u32 %v7321_v1, 16 }
 0x635   : > { %3416 = vrot.lane.b32.xlu1 %v3285_v14, %s5424_s26  ;;  %v3042_v46 = vpop.permute.xlu0 %3041  ;;  %v3321_v14 = vsel %vm534_vm4, %v3316_v42, %v3320_v50 }
 0x636   : > { %3115 = vst.msk [vmem:[#allocation2 + $0x129] sm:$0xff] %vm3091_vm5, %v3042_v46  ;;  %v3327_v22 = vrot.slane %v3325_v28, 1 }
 0x637   : > { %3530 = vrot.lane.b32.xlu0 %v3490_v2, %s5427_s16 }
 0x639   : > { %3561 = vrot.lane.b32.xlu1 %v7260_v40, %s5434_s29 }
 0x63b   : > { %v3044_v36 = vpop.permute.xlu1 %3043  ;;  %3716 = vrot.lane.b32.xlu0 %v3297_v17, %s5425_s30 }
 0x63c   : > { %3116 = vst.msk [vmem:[#allocation2 + $0x139] sm:$0xff] %vm3091_vm5, %v3044_v36  ;;  %v3155_v36 = vld [vmem:[#allocation2 + $0xf8] sm:$0xff] }
 0x63d   : > { %3641 = vrot.lane.b32.xlu1 %v3490_v2, %s5435_s7  ;;  %v3046_v13 = vpop.permute.xlu0 %3045  ;;  %v3497_v2 = vrot.slane %v7321_v1, 1 }
 0x63e   : > { %3117 = vst.msk [vmem:[#allocation2 + $0x141] sm:$0xff] %vm3091_vm5, %v3046_v13  ;;  %v3156_v13 = vld [vmem:[#allocation2 + $0x100] sm:$0x3] }
 0x63f   : > { %3674 = vrot.lane.b32.xlu0 %v7279_v7, %s5422_s25  ;;  %v3499_v46 = vsel %vm791_vm3, %v3497_v2, %v3498_v24  ;;  %v3199_v12 = vpack.c.bf16 %v3156_v13, %v3156_v13 }
 0x641   : > { %3605 = vrot.lane.b32.xlu1 %v3297_v17, %s5431_s10  ;;  %v3501_v35 = vrot.slane %v3199_v12, 1  ;;  %v3342_v55 = vshll.u32 %v3199_v12, 16 }
 0x643   : > { %3754 = vrot.lane.b32.xlu0 %v3493_v44, %s5428_s8  ;;  %v3344_v50 = vrot.slane %v3342_v55, 1 }
 0x645   : > { %3418 = vrot.lane.b32.xlu1 %v3297_v17, %s5424_s26  ;;  %v3328_v17 = vor.u32 %v3327_v22, %v3323_v26 }
 0x647   : > { %v3048_v11 = vpop.permute.xlu1 %3047  ;;  %3532 = vrot.lane.b32.xlu0 %v3493_v44, %s5427_s16  ;;  %v3333_v30 = vsel %vm534_vm4, %v3328_v17, %v3332_v32 }
 0x648   : > { %3118 = vst.msk [vmem:[#allocation2 + $0x151] sm:$0xff] %vm3091_vm5, %v3048_v11 }
 0x649   : > { %3563 = vrot.lane.b32.xlu1 %v7279_v7, %s5434_s29  ;;  %v3050_v39 = vpop.permute.xlu0 %3049 }
 0x64a   : > { %3119 = vst.msk [vmem:[#allocation2 + $0x159] sm:$0xff] %vm3091_vm5, %v3050_v39 }
 0x64b   : > { %3718 = vrot.lane.b32.xlu0 %v3309_v60, %s5425_s30 }
 0x64d   : > { %3643 = vrot.lane.b32.xlu1 %v3493_v44, %s5435_s7  ;;  %v3154_v44 = vld [vmem:[#allocation2 + $0xf0] sm:$0xff] }
 0x64e   : > { %v7345_v48 = vpack.c.bf16 %v3155_v36, %v3154_v44 }
 0x64f   : > { %v3052_v34 = vpop.permute.xlu1 %3051  ;;  %3676 = vrot.lane.b32.xlu0 %v7300_v25, %s5422_s25 }
 0x650   : > { %3120 = vst.msk [vmem:[#allocation2 + $0x169] sm:$0xff] %vm3091_vm5, %v3052_v34  ;;  %v3500_v39 = vrot.slane %v7345_v48, 1  ;;  %v3337_v6 = vshll.u32 %v7345_v48, 16 }
 0x651   : > { %3607 = vrot.lane.b32.xlu1 %v3309_v60, %s5431_s10  ;;  %v3054_v8 = vpop.permute.xlu0 %3053 }
 0x652   : > { %3121 = vst.msk [vmem:[#allocation2 + $0x171] sm:$0xff] %vm3091_vm5, %v3054_v8  ;;  %v3502_v43 = vsel %vm791_vm3, %v3500_v39, %v3501_v35  ;;  %v3339_v34 = vrot.slane %v3337_v6, 1 }
 0x653   : > { %3756 = vrot.lane.b32.xlu0 %v3496_v16, %s5428_s8 }
 0x655   : > { %3420 = vrot.lane.b32.xlu1 %v3309_v60, %s5424_s26 }
 0x657   : > { %v3056_v15 = vpop.permute.xlu1 %3055  ;;  %3534 = vrot.lane.b32.xlu0 %v3496_v16, %s5427_s16 }
 0x658   : > { %3122 = vst.msk [vmem:[#allocation2 + $0x181] sm:$0xff] %vm3091_vm5, %v3056_v15  ;;  %v3158_v15 = vld [vmem:[#allocation2 + $0x110] sm:$0xff] }
 0x659   : > { %3565 = vrot.lane.b32.xlu1 %v7300_v25, %s5434_s29  ;;  %v3058_v41 = vpop.permute.xlu0 %3057  ;;  %v7375_v45 = vpack.c.bf16 %v3158_v15, %v3157_v49 }
 0x65a   : > { %3123 = vst.msk [vmem:[#allocation2 + $0x189] sm:$0xff] %vm3091_vm5, %v3058_v41 }
 0x65b   : > { %v3552_v0 = vpop.permute.xlu1 %3551  ;;  %3720 = vrot.lane.b32.xlu0 %v3321_v14, %s5425_s30  ;;  %v3503_v22 = vrot.slane %v7375_v45, 1  ;;  %v3349_v26 = vshll.u32 %v7375_v45, 16  ;;  %v3347_v10 = vshrl.u32 %v7375_v45, 16 }
 0x65c   : > { %v3841_v4 = vsel %vm1396_vm13, %v3809_v37, %v3552_v0  ;;  %v3201_v0 = vpack.c.bf16 %v3159_v21, %v3159_v21  ;;  %v3161_v37 = vld [vmem:[#allocation2 + $0x128] sm:$0xff] }
 0x65d   : > { %3645 = vrot.lane.b32.xlu1 %v3496_v16, %s5435_s7  ;;  %v7325_v31 = vpop.permute.xlu0 %3520  ;;  %v3335_v16 = vshrl.u32 %v7345_v48, 16  ;;  %v3351_v36 = vrot.slane %v3349_v26, 1 }
 0x65e   : > { %v3354_v32 = vshll.u32 %v3201_v0, 16 }
 0x65f   : > { %v3632_v53 = vpop.permute.xlu1 %3631  ;;  %3678 = vrot.lane.b32.xlu0 %v7321_v1, %s5422_s25  ;;  %v3340_v58 = vor.u32 %v3339_v34, %v3335_v16 }
 0x661   : > { %3609 = vrot.lane.b32.xlu1 %v3321_v14, %s5431_s10  ;;  %v3665_v5 = vpop.permute.xlu0 %3664 }
 0x662   : > { %v3954_v33 = vsel %vm1130_vm7, %v3632_v53, %v3665_v5 }
 0x663   : > { %v3596_v27 = vpop.permute.xlu1 %3595  ;;  %3758 = vrot.lane.b32.xlu0 %v3499_v46, %s5428_s8 }
 0x664   : > { %v3873_v23 = vsel %vm2568_vm1, %v3841_v4, %v3596_v27  ;;  %v3504_v27 = vrot.slane %v3201_v0, 1  ;;  %v3163_v0 = vld [vmem:[#allocation2 + $0x138] sm:$0xff] }
 0x665   : > { %3422 = vrot.lane.b32.xlu1 %v3321_v14, %s5424_s26  ;;  %v3745_v47 = vpop.permute.xlu0 %3744  ;;  %v3906_v3 = vsel %vm3904_vm6, %v3873_v23, %v3632_v53  ;;  %v3345_v14 = vsel %vm534_vm4, %v3340_v58, %v3344_v50 }
 0x667   : > { %v3409_v62 = vpop.permute.xlu1 %3408  ;;  %3536 = vrot.lane.b32.xlu0 %v3499_v46, %s5427_s16 }
 0x668   : > { %v3779_v63 = vsel %vm1163_vm8, %v7161_v29, %v3409_v62  ;;  %v3505_v62 = vsel %vm791_vm3, %v3503_v22, %v3504_v27 }
 0x669   : > { %3567 = vrot.lane.b32.xlu1 %v7321_v1, %s5434_s29  ;;  %v7342_v19 = vpop.permute.xlu0 %3522  ;;  %v3811_v2 = vsel %vm1261_vm10, %v3779_v63, %v7325_v31  ;;  %v3164_v63 = vld [vmem:[#allocation2 + $0x140] sm:$0xff] }
 0x66b   : > { %v3554_v11 = vpop.permute.xlu1 %3553  ;;  %3722 = vrot.lane.b32.xlu0 %v3333_v30, %s5425_s30 }
 0x66c   : > { %v3843_v29 = vsel %vm1396_vm13, %v3811_v2, %v3554_v11  ;;  %v3162_v11 = vld [vmem:[#allocation2 + $0x130] sm:$0x3] }
 0x66d   : > { %3647 = vrot.lane.b32.xlu1 %v3499_v46, %s5435_s7  ;;  %v3709_v38 = vpop.permute.xlu0 %3708  ;;  %v3203_v35 = vpack.c.bf16 %v3162_v11, %v3162_v11 }
 0x66e   : > { %v3986_v56 = vsel %vm1228_vm9, %v3954_v33, %v3709_v38  ;;  %v3356_v33 = vrot.slane %v3354_v32, 1  ;;  %v3160_v38 = vld [vmem:[#allocation2 + $0x120] sm:$0xff] }
 0x66f   : > { %v3634_v60 = vpop.permute.xlu1 %3633  ;;  %3680 = vrot.lane.b32.xlu0 %v7345_v48, %s5422_s25  ;;  %v4018_v57 = vsel %vm1327_vm12, %v3986_v56, %v3745_v47  ;;  %v7405_v39 = vpack.c.bf16 %v3161_v37, %v3160_v38  ;;  %v3366_v49 = vshll.u32 %v3203_v35, 16 }
 0x670   : > { %4894 = vmatprep.mubr.msk.bf16.mxu0 %vm4157_vm11, %v4018_v57 }
 0x671   : > { %3611 = vrot.lane.b32.xlu1 %v3333_v30, %s5431_s10  ;;  %4226 = vmatmul.mubr.bf16.vlgmr.msra.gmra.mrb[32].mxu0 %v3906_v3  ;;  %v3667_v20 = vpop.permute.xlu0 %3666  ;;  %v3506_v34 = vrot.slane %v7405_v39, 1  ;;  %v3361_v16 = vshll.u32 %v7405_v39, 16  ;;  %v3359_v50 = vshrl.u32 %v7405_v39, 16 }
 0x672   : > { %v3956_v28 = vsel %vm1130_vm7, %v3634_v60, %v3667_v20 }
 0x673   : > { %v3598_v8 = vpop.permute.xlu1 %3597  ;;  %3760 = vrot.lane.b32.xlu0 %v3502_v43, %s5428_s8  ;;  %v3363_v15 = vrot.slane %v3361_v16, 1 }
 0x674   : > { %v3875_v53 = vsel %vm2568_vm1, %v3843_v29, %v3598_v8  ;;  %v3507_v8 = vrot.slane %v3203_v35, 1  ;;  %v3168_v35 = vld [vmem:[#allocation2 + $0x160] sm:$0x3] }
 0x675   : > { %3424 = vrot.lane.b32.xlu1 %v3333_v30, %s5424_s26  ;;  %v3747_v18 = vpop.permute.xlu0 %3746  ;;  %v3909_v47 = vsel %vm3904_vm6, %v3875_v53, %v3634_v60  ;;  %v3352_v30 = vor.u32 %v3351_v36, %v3347_v10  ;;  %v3364_v2 = vor.u32 %v3363_v15, %v3359_v50 }
 0x677   : > { %v3411_v42 = vpop.permute.xlu1 %3410  ;;  %3538 = vrot.lane.b32.xlu0 %v3502_v43, %s5427_s16  ;;  %v3357_v56 = vsel %vm534_vm4, %v3352_v30, %v3356_v33 }
 0x678   : > { %v3781_v4 = vsel %vm1163_vm8, %v7179_v52, %v3411_v42  ;;  %v3508_v42 = vsel %vm791_vm3, %v3506_v34, %v3507_v8 }
 0x679   : > { %3569 = vrot.lane.b32.xlu1 %v7345_v48, %s5434_s29  ;;  %v7372_v41 = vpop.permute.xlu0 %3524  ;;  %v3813_v6 = vsel %vm1261_vm10, %v3781_v4, %v7342_v19 }
 0x67b   : > { %v3556_v24 = vpop.permute.xlu1 %3555  ;;  %3724 = vrot.lane.b32.xlu0 %v3345_v14, %s5425_s30 }
 0x67c   : > { %v3845_v52 = vsel %vm1396_vm13, %v3813_v6, %v3556_v24  ;;  %v7427_v24 = vpack.c.bf16 %v3164_v63, %v3163_v0 }
 0x67d   : > { %3649 = vrot.lane.b32.xlu1 %v3502_v43, %s5435_s7  ;;  %v3711_v5 = vpop.permute.xlu0 %3710 }
 0x67e   : > { %v3988_v46 = vsel %vm1228_vm9, %v3956_v28, %v3711_v5  ;;  %v3165_v28 = vld [vmem:[#allocation2 + $0x148] sm:$0x3]  ;;  %v3368_v5 = vrot.slane %v3366_v49, 1  ;;  %v3373_v26 = vshll.u32 %v7427_v24, 16 }
 0x67f   : > { %v3636_v31 = vpop.permute.xlu1 %3635  ;;  %3682 = vrot.lane.b32.xlu0 %v7375_v45, %s5422_s25  ;;  %v4020_v61 = vsel %vm1327_vm12, %v3988_v46, %v3747_v18  ;;  %v3205_v27 = vpack.c.bf16 %v3165_v28, %v3165_v28 }
 0x680   : > { %4895 = vmatprep.mubr.msk.bf16.mxu0 %vm4157_vm11, %v4020_v61  ;;  %v3369_v22 = vsel %vm534_vm4, %v3364_v2, %v3368_v5  ;;  %v3375_v32 = vrot.slane %v3373_v26, 1 }
 0x681   : > { %3613 = vrot.lane.b32.xlu1 %v3345_v14, %s5431_s10  ;;  %4234 = vmatmul.mubr.bf16.gmra.mrb[36].mxu0 %v3909_v47  ;;  %v3669_v17 = vpop.permute.xlu0 %3668  ;;  %v3510_v10 = vrot.slane %v3205_v27, 1  ;;  %v3378_v37 = vshll.u32 %v3205_v27, 16 }
 0x682   : > { %v3958_v57 = vsel %vm1130_vm7, %v3636_v31, %v3669_v17 }
 0x683   : > { %v3600_v13 = vpop.permute.xlu1 %3599  ;;  %3762 = vrot.lane.b32.xlu0 %v3505_v62, %s5428_s8  ;;  %v3380_v6 = vrot.slane %v3378_v37, 1 }
 0x684   : > { %v3877_v3 = vsel %vm2568_vm1, %v3845_v52, %v3600_v13  ;;  %v3509_v13 = vrot.slane %v7427_v24, 1  ;;  %v3166_v52 = vld [vmem:[#allocation2 + $0x150] sm:$0xff] }
 0x685   : > { %3426 = vrot.lane.b32.xlu1 %v3345_v14, %s5424_s26  ;;  %v3749_v44 = vpop.permute.xlu0 %3748  ;;  %v3912_v18 = vsel %vm3904_vm6, %v3877_v3, %v3636_v31 }
 0x686   : > { %v3511_v4 = vsel %vm791_vm3, %v3509_v13, %v3510_v10 }
 0x687   : > { %v3413_v12 = vpop.permute.xlu1 %3412  ;;  %3540 = vrot.lane.b32.xlu0 %v3505_v62, %s5427_s16 }
 0x688   : > { %v3783_v53 = vsel %vm1163_vm8, %v7201_v51, %v3413_v12  ;;  %v3371_v12 = vshrl.u32 %v7427_v24, 16 }
 0x689   : > { %3571 = vrot.lane.b32.xlu1 %v7375_v45, %s5434_s29  ;;  %v7402_v23 = vpop.permute.xlu0 %3526  ;;  %v3815_v31 = vsel %vm1261_vm10, %v3783_v53, %v7372_v41 }
 0x68a   : > { %v3376_v33 = vor.u32 %v3375_v32, %v3371_v12 }
 0x68b   : > { %v3558_v60 = vpop.permute.xlu1 %3557  ;;  %3726 = vrot.lane.b32.xlu0 %v3357_v56, %s5425_s30 }
 0x68c   : > { %v3847_v47 = vsel %vm1396_vm13, %v3815_v31, %v3558_v60 }
 0x68d   : > { %3651 = vrot.lane.b32.xlu1 %v3505_v62, %s5435_s7  ;;  %v3713_v20 = vpop.permute.xlu0 %3712 }
 0x68e   : > { %v3990_v43 = vsel %vm1228_vm9, %v3958_v57, %v3713_v20  ;;  %v3381_v57 = vsel %vm534_vm4, %v3376_v33, %v3380_v6  ;;  %v3207_v20 = vpack.c.bf16 %v3168_v35, %v3168_v35 }
 0x68f   : > { %v3638_v19 = vpop.permute.xlu1 %3637  ;;  %3684 = vrot.lane.b32.xlu0 %v7405_v39, %s5422_s25  ;;  %v4022_v55 = vsel %vm1327_vm12, %v3990_v43, %v3749_v44 }
 0x690   : > { %4896 = vmatprep.mubr.msk.bf16.mxu0 %vm4157_vm11, %v4022_v55 }
 0x691   : > { %3615 = vrot.lane.b32.xlu1 %v3357_v56, %s5431_s10  ;;  %4242 = vmatmul.mubr.bf16.gmra.mrb[40].mxu0 %v3912_v18  ;;  %v3671_v58 = vpop.permute.xlu0 %3670 }
 0x692   : > { %v3960_v51 = vsel %vm1130_vm7, %v3638_v19, %v3671_v58 }
 0x693   : > { %v3602_v21 = vpop.permute.xlu1 %3601  ;;  %3764 = vrot.lane.b32.xlu0 %v3508_v42, %s5428_s8 }
 0x694   : > { %v3879_v17 = vsel %vm2568_vm1, %v3847_v47, %v3602_v21  ;;  %v3171_v47 = vld [vmem:[#allocation2 + $0x178] sm:$0x3] }
 0x695   : > { %3428 = vrot.lane.b32.xlu1 %v3357_v56, %s5424_s26  ;;  %v3751_v14 = vpop.permute.xlu0 %3750  ;;  %v3915_v30 = vsel %vm3904_vm6, %v3879_v17, %v3638_v19  ;;  %v3167_v56 = vld [vmem:[#allocation2 + $0x158] sm:$0xff]  ;;  %v3513_v19 = vrot.slane %v3207_v20, 1  ;;  %v3209_v13 = vpack.c.bf16 %v3171_v47, %v3171_v47 }
 0x696   : > { %v7458_v3 = vpack.c.bf16 %v3167_v56, %v3166_v52  ;;  %v3173_v52 = vld [vmem:[#allocation2 + $0x188] sm:$0xff] }
 0x697   : > { %v3415_v29 = vpop.permute.xlu1 %3414  ;;  %3542 = vrot.lane.b32.xlu0 %v3508_v42, %s5427_s16 }
 0x698   : > { %v3785_v34 = vsel %vm1163_vm8, %v7222_v54, %v3415_v29  ;;  %v3512_v16 = vrot.slane %v7458_v3, 1  ;;  %v3385_v55 = vshll.u32 %v7458_v3, 16  ;;  %v3383_v2 = vshrl.u32 %v7458_v3, 16 }
 0x699   : > { %3573 = vrot.lane.b32.xlu1 %v7405_v39, %s5434_s29  ;;  %v7434_v46 = vpop.permute.xlu0 %3528  ;;  %v3817_v18 = vsel %vm1261_vm10, %v3785_v34, %v7402_v23  ;;  %v3390_v29 = vshll.u32 %v3207_v20, 16  ;;  %v3402_v20 = vshll.u32 %v3209_v13, 16  ;;  %v3172_v34 = vld [vmem:[#allocation2 + $0x180] sm:$0xff] }
 0x69a   : > { %v3514_v50 = vsel %vm791_vm3, %v3512_v16, %v3513_v19  ;;  %v3387_v49 = vrot.slane %v3385_v55, 1  ;;  %v7517_v19 = vpack.c.bf16 %v3173_v52, %v3172_v34 }
 0x69b   : > { %v3560_v61 = vpop.permute.xlu1 %3559  ;;  %3728 = vrot.lane.b32.xlu0 %v3369_v22, %s5425_s30 }
 0x69c   : > { %v3388_v53 = vor.u32 %v3387_v49, %v3383_v2  ;;  %v3586_v49 = vshll.u32 %v7517_v19, 16  ;;  %v3177_v2 = vld [vmem:[#allocation2 + $0x1a8] sm:$0x3] }
 0x69d   : > { %3653 = vrot.lane.b32.xlu1 %v3508_v42, %s5435_s7  ;;  %v3715_v62 = vpop.permute.xlu0 %3714  ;;  %v3849_v42 = vsel %vm1396_vm13, %v3817_v18, %v3560_v61  ;;  %v3170_v61 = vld [vmem:[#allocation2 + $0x170] sm:$0xff] }
 0x69e   : > { %v3992_v36 = vsel %vm1228_vm9, %v3960_v51, %v3715_v62  ;;  %v3169_v62 = vld [vmem:[#allocation2 + $0x168] sm:$0xff]  ;;  %v3174_v18 = vld [vmem:[#allocation2 + $0x190] sm:$0x3] }
 0x69f   : > { %v3640_v44 = vpop.permute.xlu1 %3639  ;;  %3686 = vrot.lane.b32.xlu0 %v7427_v24, %s5422_s25  ;;  %v4024_v41 = vsel %vm1327_vm12, %v3992_v36, %v3751_v14  ;;  %v7494_v36 = vpack.c.bf16 %v3170_v61, %v3169_v62  ;;  %v3213_v61 = vpack.c.bf16 %v3177_v2, %v3177_v2 }
 0x6a0   : > { %4897 = vmatprep.mubr.msk.bf16.mxu0 %vm4157_vm11, %v4024_v41 }
 0x6a1   : > { %3617 = vrot.lane.b32.xlu1 %v3369_v22, %s5431_s10  ;;  %4250 = vmatmul.mubr.bf16.gmra.mrb[44].mxu0 %v3915_v30  ;;  %v3673_v11 = vpop.permute.xlu0 %3672  ;;  %v3515_v37 = vrot.slane %v7494_v36, 1 }
 0x6a2   : > { %v3962_v54 = vsel %vm1130_vm7, %v3640_v44, %v3673_v11  ;;  %v3516_v11 = vrot.slane %v3209_v13, 1 }
 0x6a3   : > { %v3604_v38 = vpop.permute.xlu1 %3603  ;;  %3766 = vrot.lane.b32.xlu0 %v3511_v4, %s5428_s8 }
 0x6a4   : > { %v3881_v15 = vsel %vm2568_vm1, %v3849_v42, %v3604_v38  ;;  %v3517_v35 = vsel %vm791_vm3, %v3515_v37, %v3516_v11  ;;  %v3404_v42 = vrot.slane %v3402_v20, 1  ;;  %v3704_v37 = vshll.u32 %v3213_v61, 16 }
 0x6a5   : > { %3430 = vrot.lane.b32.xlu1 %v3369_v22, %s5424_s26  ;;  %v3753_v60 = vpop.permute.xlu0 %3752  ;;  %v3918_v0 = vsel %vm3904_vm6, %v3881_v15, %v3640_v44  ;;  %v3392_v22 = vrot.slane %v3390_v29, 1  ;;  %v3175_v15 = vld [vmem:[#allocation2 + $0x198] sm:$0xff] }
 0x6a7   : > { %v3417_v43 = vpop.permute.xlu1 %3416  ;;  %3730 = vrot.lane.b32.xlu0 %v3381_v57, %s5425_s30  ;;  %v3393_v26 = vsel %vm534_vm4, %v3388_v53, %v3392_v22  ;;  %v3628_v22 = vrot.slane %v7517_v19, 1 }
 0x6a8   : > { %v3787_v51 = vsel %vm1163_vm8, %v7241_v9, %v3417_v43 }
 0x6a9   : > { %3575 = vrot.lane.b32.xlu1 %v7427_v24, %s5434_s29  ;;  %v7465_v8 = vpop.permute.xlu0 %3530  ;;  %v3819_v10 = vsel %vm1261_vm10, %v3787_v51, %v7434_v46  ;;  %v3397_v46 = vshll.u32 %v7494_v36, 16  ;;  %v3584_v51 = vshrl.u32 %v7517_v19, 16 }
 0x6ab   : > { %v3562_v58 = vpop.permute.xlu1 %3561  ;;  %3688 = vrot.lane.b32.xlu0 %v7458_v3, %s5422_s25  ;;  %v3399_v6 = vrot.slane %v3397_v46, 1 }
 0x6ac   : > { %v3851_v44 = vsel %vm1396_vm13, %v3819_v10, %v3562_v58 }
 0x6ad   : > { %3655 = vrot.lane.b32.xlu1 %v3511_v4, %s5435_s7  ;;  %v3717_v21 = vpop.permute.xlu0 %3716 }
 0x6ae   : > { %v3994_v63 = vsel %vm1228_vm9, %v3962_v54, %v3717_v21  ;;  %v3176_v21 = vld [vmem:[#allocation2 + $0x1a0] sm:$0xff] }
 0x6af   : > { %v3642_v14 = vpop.permute.xlu1 %3641  ;;  %3768 = vrot.lane.b32.xlu0 %v3514_v50, %s5428_s8  ;;  %v4026_v23 = vsel %vm1327_vm12, %v3994_v63, %v3753_v60 }
 0x6b0   : > { %4898 = vmatprep.mubr.msk.bf16.mxu0 %vm4157_vm11, %v4026_v23 }
 0x6b1   : > { %3544 = vrot.lane.b32.xlu1 %v3511_v4, %s5427_s16  ;;  %4258 = vmatmul.mubr.bf16.gmra.mrb[48].mxu0 %v3918_v0  ;;  %v3675_v28 = vpop.permute.xlu0 %3674  ;;  %v3212_v0 = vpack.c.bf16 %v3176_v21, %v3175_v15 }
 0x6b2   : > { %v3964_v41 = vsel %vm1130_vm7, %v3642_v14, %v3675_v28 }
 0x6b3   : > { %v3606_v5 = vpop.permute.xlu1 %3605  ;;  %3546 = vrot.lane.b32.xlu0 %v3514_v50, %s5427_s16  ;;  %v3699_v13 = vshll.u32 %v3212_v0, 16  ;;  %v3741_v20 = vrot.slane %v3212_v0, 1 }
 0x6b4   : > { %v3883_v9 = vsel %vm2568_vm1, %v3851_v44, %v3606_v5 }
 0x6b5   : > { %3619 = vrot.lane.b32.xlu1 %v3381_v57, %s5431_s10  ;;  %v3755_v27 = vpop.permute.xlu0 %3754  ;;  %v3921_v38 = vsel %vm3904_vm6, %v3883_v9, %v3642_v14 }
 0x6b7   : > { %v3419_v31 = vpop.permute.xlu1 %3418  ;;  %3732 = vrot.lane.b32.xlu0 %v3393_v26, %s5425_s30 }
 0x6b8   : > { %v3789_v58 = vsel %vm1163_vm8, %v7260_v40, %v3419_v31 }
 0x6b9   : > { %3432 = vrot.lane.b32.xlu1 %v3381_v57, %s5424_s26  ;;  %v7492_v17 = vpop.permute.xlu0 %3532  ;;  %v3395_v57 = vshrl.u32 %v7494_v36, 16  ;;  %v3821_v14 = vsel %vm1261_vm10, %v3789_v58, %v7465_v8  ;;  %v3588_v8 = vrot.slane %v3586_v49, 1 }
 0x6bb   : > { %v3564_v32 = vpop.permute.xlu1 %3563  ;;  %3434 = vrot.lane.b32.xlu0 %v3393_v26, %s5424_s26  ;;  %v3400_v16 = vor.u32 %v3399_v6, %v3395_v57  ;;  %v3589_v44 = vor.u32 %v3588_v8, %v3584_v51 }
 0x6bc   : > { %v3853_v40 = vsel %vm1396_vm13, %v3821_v14, %v3564_v32 }
 0x6bd   : > { %3577 = vrot.lane.b32.xlu1 %v7458_v3, %s5434_s29  ;;  %v3719_v30 = vpop.permute.xlu0 %3718  ;;  %v3405_v63 = vsel %vm534_vm4, %v3400_v16, %v3404_v42 }
 0x6be   : > { %v3996_v12 = vsel %vm1228_vm9, %v3964_v41, %v3719_v30  ;;  %v3697_v30 = vshrl.u32 %v3212_v0, 16 }
 0x6bf   : > { %v3644_v4 = vpop.permute.xlu1 %3643  ;;  %3579 = vrot.lane.b32.xlu0 %v7494_v36, %s5434_s29  ;;  %v4028_v33 = vsel %vm1327_vm12, %v3996_v12, %v3755_v27  ;;  %v3701_v12 = vrot.slane %v3699_v13, 1 }
 0x6c0   : > { %4899 = vmatprep.mubr.msk.bf16.mxu0 %vm4157_vm11, %v4028_v33 }
 0x6c1   : > { %3657 = vrot.lane.b32.xlu1 %v3514_v50, %s5435_s7  ;;  %4266 = vmatmul.mubr.bf16.gmra.mrb[52].mxu0 %v3921_v38  ;;  %v3677_v56 = vpop.permute.xlu0 %3676  ;;  %v3211_v50 = vpack.c.bf16 %v3174_v18, %v3174_v18  ;;  %v3702_v38 = vor.u32 %v3701_v12, %v3697_v30 }
 0x6c2   : > { %v3966_v29 = vsel %vm1130_vm7, %v3644_v4, %v3677_v56  ;;  %v3706_v56 = vrot.slane %v3704_v37, 1 }
 0x6c3   : > { %v3608_v60 = vpop.permute.xlu1 %3607  ;;  %3659 = vrot.lane.b32.xlu0 %v3517_v35, %s5435_s7  ;;  %v3629_v27 = vrot.slane %v3211_v50, 1  ;;  %v3591_v62 = vshll.u32 %v3211_v50, 16 }
 0x6c4   : > { %v3885_v28 = vsel %vm2568_vm1, %v3853_v40, %v3608_v60  ;;  %v3707_v57 = vsel %vm534_vm4, %v3702_v38, %v3706_v56 }
 0x6c5   : > { %3621 = vrot.lane.b32.xlu1 %v3393_v26, %s5431_s10  ;;  %v3757_v43 = vpop.permute.xlu0 %3756  ;;  %v3924_v47 = vsel %vm3904_vm6, %v3885_v28, %v3644_v4  ;;  %v3630_v32 = vsel %vm791_vm3, %v3628_v22, %v3629_v27  ;;  %v3593_v9 = vrot.slane %v3591_v62, 1 }
 0x6c7   : > { %v3421_v55 = vpop.permute.xlu1 %3420  ;;  %3548 = vrot.lane.b32.xlu0 %v3517_v35, %s5427_s16  ;;  %v3594_v46 = vsel %vm534_vm4, %v3589_v44, %v3593_v9 }
 0x6c8   : > { %v3791_v33 = vsel %vm1163_vm8, %v7279_v7, %v3421_v55 }
 0x6c9   : > { %3690 = vrot.lane.b32.xlu1 %v7494_v36, %s5422_s25  ;;  %v7524_v54 = vpop.permute.xlu0 %3534  ;;  %v3823_v6 = vsel %vm1261_vm10, %v3791_v33, %v7492_v17 }
 0x6cb   : > { %v3566_v23 = vpop.permute.xlu1 %3565  ;;  %3623 = vrot.lane.b32.xlu0 %v3405_v63, %s5431_s10 }
 0x6cc   : > { %v3855_v52 = vsel %vm1396_vm13, %v3823_v6, %v3566_v23 }
 0x6cd   : > { %3770 = vrot.lane.b32.xlu1 %v3517_v35, %s5428_s8  ;;  %v3721_v53 = vpop.permute.xlu0 %3720 }
 0x6ce   : > { %v3998_v5 = vsel %vm1228_vm9, %v3966_v29, %v3721_v53 }
 0x6cf   : > { %v3646_v26 = vpop.permute.xlu1 %3645  ;;  %3692 = vrot.lane.b32.xlu0 %v7517_v19, %s5422_s25  ;;  %v4030_v31 = vsel %vm1327_vm12, %v3998_v5, %v3757_v43  ;;  %v3742_v43 = vrot.slane %v3213_v61, 1 }
 0x6d0   : > { %4900 = vmatprep.mubr.msk.bf16.mxu0 %vm4157_vm11, %v4030_v31 }
 0x6d1   : > { %3734 = vrot.lane.b32.xlu1 %v3405_v63, %s5425_s30  ;;  %4274 = vmatmul.mubr.bf16.gmra.mrb[56].mxu0 %v3924_v47  ;;  %v3679_v10 = vpop.permute.xlu0 %3678  ;;  %v3743_v42 = vsel %vm791_vm3, %v3741_v20, %v3742_v43  ;;  %vm4514_vm3 = vcmask 261312  }
 0x6d2   : > { %v3968_v34 = vsel %vm1130_vm7, %v3646_v26, %v3679_v10 }
 0x6d3   : > { %v3610_v41 = vpop.permute.xlu1 %3609  ;;  %3772 = vrot.lane.b32.xlu0 %v3630_v32, %s5428_s8 }
 0x6d4   : > { %v3887_v7 = vsel %vm2568_vm1, %v3855_v52, %v3610_v41 }
 0x6d5   : > { %3436 = vrot.lane.b32.xlu1 %v3405_v63, %s5424_s26  ;;  %v3759_v11 = vpop.permute.xlu0 %3758  ;;  %v3927_v58 = vsel %vm3904_vm6, %v3887_v7, %v3646_v26 }
 0x6d7   : > { %v3423_v4 = vpop.permute.xlu1 %3422  ;;  %3736 = vrot.lane.b32.xlu0 %v3594_v46, %s5425_s30 }
 0x6d8   : > { %v3793_v50 = vsel %vm1163_vm8, %v7300_v25, %v3423_v4 }
 0x6d9   : > { %3661 = vrot.lane.b32.xlu1 %v3630_v32, %s5435_s7  ;;  %v3537_v35 = vpop.permute.xlu0 %3536  ;;  %v3825_v14 = vsel %vm1261_vm10, %v3793_v50, %v7524_v54 }
 0x6db   : > { %v3568_v60 = vpop.permute.xlu1 %3567  ;;  %3694 = vrot.lane.b32.xlu0 %v3212_v0, %s5422_s25  ;;  %s4917_s25 = sshll.u32 %s5488_s24, 8  ;;  %s4695_s24 = scalar_lea.sflag [#allocation5], %s5692_s11 }
 0x6dc   : > { %v3857_v40 = vsel %vm1396_vm13, %v3825_v14, %v3568_v60  ;;  %s7724_s16 = scalar_lea.hbm %s7773_s5, %s4917_s25 }
 0x6dd   : > { %3581 = vrot.lane.b32.xlu1 %v7517_v19, %s5434_s29  ;;  %v3723_v16 = vpop.permute.xlu0 %3722 }
 0x6de   : > { %v4000_v55 = vsel %vm1228_vm9, %v3968_v34, %v3723_v16 }
 0x6df   : > { %v3648_v17 = vpop.permute.xlu1 %3647  ;;  %3738 = vrot.lane.b32.xlu0 %v3707_v57, %s5425_s30  ;;  %v4032_v18 = vsel %vm1327_vm12, %v4000_v55, %v3759_v11 }
 0x6e0   : > { %4901 = vmatprep.mubr.msk.bf16.mxu0 %vm4157_vm11, %v4032_v18 }
 0x6e1   : > { %3625 = vrot.lane.b32.xlu1 %v3594_v46, %s5431_s10  ;;  %4282 = vmatmul.mubr.bf16.gmra.mrb[60].mxu0 %v3927_v58  ;;  %v3681_v15 = vpop.permute.xlu0 %3680 }
 0x6e2   : > { %v3970_v0 = vsel %vm1130_vm7, %v3648_v17, %v3681_v15 }
 0x6e3   : > { %v3612_v21 = vpop.permute.xlu1 %3611  ;;  %3774 = vrot.lane.b32.xlu0 %v3743_v42, %s5428_s8 }
 0x6e4   : > { %v3889_v2 = vsel %vm2568_vm1, %v3857_v40, %v3612_v21 }
 0x6e5   : > { %v3761_v19 = vpop.permute.xlu0 %3760  ;;  %v3930_v25 = vsel %vm3904_vm6, %v3889_v2, %v3648_v17 }
 0x6e7   : > { %v3425_v63 = vpop.permute.xlu1 %3424 }
 0x6e8   : > { %v3795_v26 = vsel %vm1163_vm8, %v7321_v1, %v3425_v63 }
 0x6e9   : > { %v3539_v49 = vpop.permute.xlu0 %3538  ;;  %v3827_v61 = vsel %vm1261_vm10, %v3795_v26, %v3537_v35 }
 0x6eb   : > { %v3570_v23 = vpop.permute.xlu1 %3569 }
 0x6ec   : > { %v3859_v51 = vsel %vm1396_vm13, %v3827_v61, %v3570_v23 }
 0x6ed   : > { %v3725_v29 = vpop.permute.xlu0 %3724 }
 0x6ee   : > { %v4002_v28 = vsel %vm1228_vm9, %v3970_v0, %v3725_v29 }
 0x6ef   : > { %v3650_v53 = vpop.permute.xlu1 %3649  ;;  %v4034_v5 = vsel %vm1327_vm12, %v4002_v28, %v3761_v19 }
 0x6f0   : > { %4902 = vmatprep.mubr.msk.bf16.mxu0 %vm4157_vm11, %v4034_v5 }
 0x6f1   : > { %4290 = vmatmul.mubr.bf16.gmra.mrb[64].mxu0 %v3930_v25  ;;  %v3683_v22 = vpop.permute.xlu0 %3682 }
 0x6f2   : > { %v3972_v62 = vsel %vm1130_vm7, %v3650_v53, %v3683_v22 }
 0x6f3   : > { %v3614_v54 = vpop.permute.xlu1 %3613 }
 0x6f4   : > { %v3891_v13 = vsel %vm2568_vm1, %v3859_v51, %v3614_v54 }
 0x6f5   : > { %v3763_v27 = vpop.permute.xlu0 %3762  ;;  %v3933_v1 = vsel %vm3904_vm6, %v3891_v13, %v3650_v53 }
 0x6f7   : > { %v3427_v8 = vpop.permute.xlu1 %3426 }
 0x6f8   : > { %v3797_v11 = vsel %vm1163_vm8, %v7345_v48, %v3427_v8 }
 0x6f9   : > { %v3541_v31 = vpop.permute.xlu0 %3540  ;;  %v3829_v4 = vsel %vm1261_vm10, %v3797_v11, %v3539_v49 }
 0x6fb   : > { %v3572_v47 = vpop.permute.xlu1 %3571 }
 0x6fc   : > { %v3861_v38 = vsel %vm1396_vm13, %v3829_v4, %v3572_v47 }
 0x6fd   : > { %v3727_v10 = vpop.permute.xlu0 %3726 }
 0x6fe   : > { %v4004_v32 = vsel %vm1228_vm9, %v3972_v62, %v3727_v10 }
 0x6ff   : > { %v3652_v44 = vpop.permute.xlu1 %3651  ;;  %v4036_v41 = vsel %vm1327_vm12, %v4004_v32, %v3763_v27 }
 0x700   : > { %4903 = vmatprep.mubr.msk.bf16.mxu0 %vm4157_vm11, %v4036_v41 }
 0x701   : > { %4298 = vmatmul.mubr.bf16.gmra.mrb[68].mxu0 %v3933_v1  ;;  %v3685_v9 = vpop.permute.xlu0 %3684 }
 0x702   : > { %v3974_v56 = vsel %vm1130_vm7, %v3652_v44, %v3685_v9 }
 0x703   : > { %v3616_v30 = vpop.permute.xlu1 %3615 }
 0x704   : > { %v3893_v35 = vsel %vm2568_vm1, %v3861_v38, %v3616_v30 }
 0x705   : > { %v3765_v12 = vpop.permute.xlu0 %3764  ;;  %v3936_v48 = vsel %vm3904_vm6, %v3893_v35, %v3652_v44 }
 0x707   : > { %v3429_v37 = vpop.permute.xlu1 %3428 }
 0x708   : > { %v3799_v34 = vsel %vm1163_vm8, %v7375_v45, %v3429_v37 }
 0x709   : > { %v3543_v46 = vpop.permute.xlu0 %3542  ;;  %v3831_v16 = vsel %vm1261_vm10, %v3799_v34, %v3541_v31 }
 0x70b   : > { %v3574_v33 = vpop.permute.xlu1 %3573 }
 0x70c   : > { %v3863_v17 = vsel %vm1396_vm13, %v3831_v16, %v3574_v33 }
 0x70d   : > { %v3729_v6 = vpop.permute.xlu0 %3728 }
 0x70e   : > { %v4006_v60 = vsel %vm1228_vm9, %v3974_v56, %v3729_v6 }
 0x70f   : > { %v3654_v52 = vpop.permute.xlu1 %3653  ;;  %v4038_v57 = vsel %vm1327_vm12, %v4006_v60, %v3765_v12 }
 0x710   : > { %4904 = vmatprep.mubr.msk.bf16.mxu0 %vm4157_vm11, %v4038_v57 }
 0x711   : > { %4306 = vmatmul.mubr.bf16.gmra.mrb[72].mxu0 %v3936_v48  ;;  %v3687_v20 = vpop.permute.xlu0 %3686 }
 0x712   : > { %v3976_v18 = vsel %vm1130_vm7, %v3654_v52, %v3687_v20 }
 0x713   : > { %v3618_v43 = vpop.permute.xlu1 %3617 }
 0x714   : > { %v3895_v58 = vsel %vm2568_vm1, %v3863_v17, %v3618_v43 }
 0x715   : > { %v3767_v7 = vpop.permute.xlu0 %3766  ;;  %v3939_v45 = vsel %vm3904_vm6, %v3895_v58, %v3654_v52 }
 0x717   : > { %v3431_v55 = vpop.permute.xlu1 %3430 }
 0x718   : > { %v3801_v23 = vsel %vm1163_vm8, %v7405_v39, %v3431_v55 }
 0x719   : > { %v3731_v42 = vpop.permute.xlu0 %3730  ;;  %v3833_v0 = vsel %vm1261_vm10, %v3801_v23, %v3543_v46 }
 0x71a   : > { %v4008_v15 = vsel %vm1228_vm9, %v3976_v18, %v3731_v42 }
 0x71b   : > { %v3576_v21 = vpop.permute.xlu1 %3575  ;;  %v4040_v19 = vsel %vm1327_vm12, %v4008_v15, %v3767_v7 }
 0x71c   : > { %4905 = vmatprep.mubr.msk.bf16.mxu0 %vm4157_vm11, %v4040_v19  ;;  %v3865_v29 = vsel %vm1396_vm13, %v3833_v0, %v3576_v21 }
 0x71d   : > { %4314 = vmatmul.mubr.bf16.gmra.mrb[76].mxu0 %v3939_v45  ;;  %v3689_v63 = vpop.permute.xlu0 %3688 }
 0x71f   : > { %v3656_v50 = vpop.permute.xlu1 %3655 }
 0x720   : > { %v3978_v28 = vsel %vm1130_vm7, %v3656_v50, %v3689_v63 }
 0x721   : > { %v3769_v49 = vpop.permute.xlu0 %3768 }
 0x723   : > { %v3545_v14 = vpop.permute.xlu1 %3544 }
 0x725   : > { %v3547_v40 = vpop.permute.xlu0 %3546 }
 0x727   : > { %v3620_v2 = vpop.permute.xlu1 %3619 }
 0x728   : > { %v3897_v53 = vsel %vm2568_vm1, %v3865_v29, %v3620_v2 }
 0x729   : > { %v3733_v5 = vpop.permute.xlu0 %3732  ;;  %v3942_v39 = vsel %vm3904_vm6, %v3897_v53, %v3656_v50 }
 0x72a   : > { %v4010_v25 = vsel %vm1228_vm9, %v3978_v28, %v3733_v5 }
 0x72b   : > { %v3433_v22 = vpop.permute.xlu1 %3432  ;;  %v4042_v54 = vsel %vm1327_vm12, %v4010_v25, %v3769_v49 }
 0x72c   : > { %4906 = vmatprep.mubr.msk.bf16.mxu0 %vm4157_vm11, %v4042_v54  ;;  %v3803_v10 = vsel %vm1163_vm8, %v7427_v24, %v3433_v22 }
 0x72d   : > { %4322 = vmatmul.mubr.bf16.gmra.mrb[80].mxu0 %v3942_v39  ;;  %v3435_v27 = vpop.permute.xlu0 %3434  ;;  %v3835_v44 = vsel %vm1261_vm10, %v3803_v10, %v3545_v14 }
 0x72e   : > { %v3805_v37 = vsel %vm1163_vm8, %v7458_v3, %v3435_v27 }
 0x72f   : > { %v3578_v8 = vpop.permute.xlu1 %3577  ;;  %v3837_v6 = vsel %vm1261_vm10, %v3805_v37, %v3547_v40 }
 0x730   : > { %v3867_v1 = vsel %vm1396_vm13, %v3835_v44, %v3578_v8 }
 0x731   : > { %v3580_v26 = vpop.permute.xlu0 %3579 }
 0x732   : > { %v3869_v3 = vsel %vm1396_vm13, %v3837_v6, %v3580_v26 }
 0x733   : > { %v3658_v31 = vpop.permute.xlu1 %3657 }
 0x735   : > { %v3660_v61 = vpop.permute.xlu0 %3659 }
 0x737   : > { %v3622_v47 = vpop.permute.xlu1 %3621 }
 0x738   : > { %v3899_v9 = vsel %vm2568_vm1, %v3867_v1, %v3622_v47 }
 0x739   : > { %v3549_v51 = vpop.permute.xlu0 %3548  ;;  %v3945_v35 = vsel %vm3904_vm6, %v3899_v9, %v3658_v31 }
 0x73b   : > { %v3691_v62 = vpop.permute.xlu1 %3690 }
 0x73c   : > { %v3980_v30 = vsel %vm1130_vm7, %v3658_v31, %v3691_v62 }
 0x73d   : > { %v3624_v13 = vpop.permute.xlu0 %3623 }
 0x73e   : > { %v3901_v57 = vsel %vm2568_vm1, %v3869_v3, %v3624_v13 }
 0x73f   : > { %v3771_v32 = vpop.permute.xlu1 %3770  ;;  %v3948_v55 = vsel %vm3904_vm6, %v3901_v57, %v3660_v61 }
 0x741   : > { %v3693_v41 = vpop.permute.xlu0 %3692 }
 0x742   : > { %v3982_v48 = vsel %vm1130_vm7, %v3660_v61, %v3693_v41 }
 0x743   : > { %v3735_v12 = vpop.permute.xlu1 %3734 }
 0x744   : > { %v4012_v11 = vsel %vm1228_vm9, %v3980_v30, %v3735_v12  ;;  %v4227_v46 = vpop.f32.mrb[32].mxu0 }
 0x745   : > { %v4354_v4 = vmax.f32 %v4227_v46, 0.0  ;;  %v4229_v33 = vpop.f32.mrb[33].mxu0  ;;  %v3773_v24 = vpop.permute.xlu0 %3772  ;;  %v4044_v38 = vsel %vm1327_vm12, %v4012_v11, %v3771_v32 }
 0x746   : > { %v4230_v56 = vpop.f32.mrb[34].mxu0  ;;  %4907 = vmatprep.mubr.msk.bf16.mxu0 %vm4157_vm11, %v4044_v38 }
 0x747   : > { %v3437_v60 = vpop.permute.xlu1 %3436  ;;  %v4232_v52 = vpop.f32.mrb[35].mxu0  ;;  %4418 = vrot.lane.b32.xlu0 %v4354_v4, %s5424_s26  ;;  %4330 = vmatmul.mubr.bf16.gmra.mrb[84].mxu0 %v3945_v35  ;;  %v4355_v20 = vmax.f32 %v4230_v56, 0.0 }
 0x748   : > { %v3807_v18 = vsel %vm1163_vm8, %v7494_v36, %v3437_v60 }
 0x749   : > { %v3737_v43 = vpop.permute.xlu0 %3736  ;;  %v3839_v15 = vsel %vm1261_vm10, %v3807_v18, %v3549_v51 }
 0x74a   : > { %v4014_v34 = vsel %vm1228_vm9, %v3982_v48, %v3737_v43 }
 0x74b   : > { %v3662_v7 = vpop.permute.xlu1 %3661  ;;  %4420 = vrot.lane.b32.xlu0 %v4355_v20, %s5424_s26  ;;  %v4046_v16 = vsel %vm1327_vm12, %v4014_v34, %v3773_v24 }
 0x74c   : > { %4908 = vmatprep.mubr.msk.bf16.mxu1 %vm4157_vm11, %v4046_v16 }
 0x74d   : > { %4338 = vmatmul.mubr.bf16.vlgmr.msra.gmra.mrb[64].mxu1 %v3948_v55  ;;  %v3695_v17 = vpop.permute.xlu0 %3694 }
 0x74e   : > { %v3984_v45 = vsel %vm1130_vm7, %v3662_v7, %v3695_v17 }
 0x74f   : > { %v3582_v58 = vpop.permute.xlu1 %3581 }
 0x750   : > { %v3871_v21 = vsel %vm1396_vm13, %v3839_v15, %v3582_v58 }
 0x751   : > { %v3739_v42 = vpop.permute.xlu0 %3738 }
 0x752   : > { %v4016_v49 = vsel %vm1228_vm9, %v3984_v45, %v3739_v42 }
 0x753   : > { %v3626_v19 = vpop.permute.xlu1 %3625 }
 0x754   : > { %v3903_v63 = vsel %vm2568_vm1, %v3871_v21, %v3626_v19  ;;  %v4235_v50 = vpop.f32.mrb[36].mxu0 }
 0x755   : > { %v4356_v14 = vmax.f32 %v4235_v50, 0.0  ;;  %v4237_v23 = vpop.f32.mrb[37].mxu0  ;;  %v3775_v40 = vpop.permute.xlu0 %3774  ;;  %v3951_v29 = vsel %vm3904_vm6, %v3903_v63, %v3662_v7 }
 0x756   : > { %v4048_v0 = vsel %vm1327_vm12, %v4016_v49, %v3775_v40  ;;  %v4238_v36 = vpop.f32.mrb[38].mxu0 }
 0x757   : > { %v4240_v2 = vpop.f32.mrb[39].mxu0  ;;  %4422 = vrot.lane.b32.xlu0 %v4356_v14, %s5424_s26  ;;  %4909 = vmatprep.mubr.msk.bf16.mxu1 %vm4157_vm11, %v4048_v0  ;;  %v4357_v28 = vmax.f32 %v4238_v36, 0.0 }
 0x758   : > { %4346 = vmatmul.mubr.bf16.gmra.mrb[68].mxu1 %v3951_v29 }
 0x759   : > { %4683 = vmatprep.mubr.bf16.mxu1 %v5430_v59 }
 0x75b   : > { %4424 = vrot.lane.b32.xlu0 %v4357_v28, %s5424_s26 }
 0x764   : > { %v4243_v53 = vpop.f32.mrb[40].mxu0 }
 0x765   : > { %v4358_v5 = vmax.f32 %v4243_v53, 0.0  ;;  %v4245_v25 = vpop.f32.mrb[41].mxu0 }
 0x766   : > { %v4246_v22 = vpop.f32.mrb[42].mxu0 }
 0x767   : > { %v4248_v54 = vpop.f32.mrb[43].mxu0  ;;  %4426 = vrot.lane.b32.xlu0 %v4358_v5, %s5424_s26  ;;  %v4359_v39 = vmax.f32 %v4246_v22, 0.0 }
 0x76b   : > { %4428 = vrot.lane.b32.xlu0 %v4359_v39, %s5424_s26 }
 0x774   : > { %v4251_v27 = vpop.f32.mrb[44].mxu0 }
 0x775   : > { %v4360_v8 = vmax.f32 %v4251_v27, 0.0  ;;  %v4253_v26 = vpop.f32.mrb[45].mxu0 }
 0x776   : > { %v4254_v31 = vpop.f32.mrb[46].mxu0 }
 0x777   : > { %v4256_v61 = vpop.f32.mrb[47].mxu0  ;;  %4430 = vrot.lane.b32.xlu0 %v4360_v8, %s5424_s26  ;;  %v4361_v59 = vmax.f32 %v4254_v31, 0.0 }
 0x77b   : > { %4432 = vrot.lane.b32.xlu0 %v4361_v59, %s5424_s26 }
 0x784   : > { %v4259_v47 = vpop.f32.mrb[48].mxu0 }
 0x785   : > { %v4362_v51 = vmax.f32 %v4259_v47, 0.0  ;;  %v4261_v62 = vpop.f32.mrb[49].mxu0 }
 0x786   : > { %v4262_v13 = vpop.f32.mrb[50].mxu0 }
 0x787   : > { %v4264_v10 = vpop.f32.mrb[51].mxu0  ;;  %4434 = vrot.lane.b32.xlu0 %v4362_v51, %s5424_s26  ;;  %v4363_v32 = vmax.f32 %v4262_v13, 0.0 }
 0x78b   : > { %4436 = vrot.lane.b32.xlu0 %v4363_v32, %s5424_s26 }
 0x794   : > { %v4267_v44 = vpop.f32.mrb[52].mxu0 }
 0x795   : > { %v4364_v41 = vmax.f32 %v4267_v44, 0.0  ;;  %v4269_v1 = vpop.f32.mrb[53].mxu0 }
 0x796   : > { %v4270_v9 = vpop.f32.mrb[54].mxu0 }
 0x797   : > { %4438 = vrot.lane.b32.xlu0 %v4364_v41, %s5424_s26  ;;  %v4272_v30 = vpop.f32.mrb[55].mxu0  ;;  %v4365_v12 = vmax.f32 %v4270_v9, 0.0 }
 0x79b   : > { %4440 = vrot.lane.b32.xlu0 %v4365_v12, %s5424_s26 }
 0x7a4   : > { %v4275_v37 = vpop.f32.mrb[56].mxu0 }
 0x7a5   : > { %v4366_v11 = vmax.f32 %v4275_v37, 0.0  ;;  %v4277_v46 = vpop.f32.mrb[57].mxu0 }
 0x7a6   : > { %v4278_v4 = vpop.f32.mrb[58].mxu0 }
 0x7a7   : > { %4442 = vrot.lane.b32.xlu0 %v4366_v11, %s5424_s26  ;;  %v4280_v33 = vpop.f32.mrb[59].mxu0  ;;  %v4367_v24 = vmax.f32 %v4278_v4, 0.0 }
 0x7ab   : > { %4444 = vrot.lane.b32.xlu0 %v4367_v24, %s5424_s26 }
 0x7b4   : > { %v4283_v38 = vpop.f32.mrb[60].mxu0 }
 0x7b5   : > { %v4368_v56 = vmax.f32 %v4283_v38, 0.0  ;;  %v4285_v35 = vpop.f32.mrb[61].mxu0 }
 0x7b6   : > { %v4286_v6 = vpop.f32.mrb[62].mxu0 }
 0x7b7   : > { %4446 = vrot.lane.b32.xlu0 %v4368_v56, %s5424_s26  ;;  %v4288_v60 = vpop.f32.mrb[63].mxu0  ;;  %v4369_v52 = vmax.f32 %v4286_v6, 0.0 }
 0x7b9   : > { %v4419_v3 = vpop.permute.xlu0 %4418 }
 0x7ba   : > { %4515 = vst.msk [vmem:[#allocation2 + $0x19] sm:$0xff] %vm4514_vm3, %v4419_v3 }
 0x7bb   : > { %4448 = vrot.lane.b32.xlu0 %v4369_v52, %s5424_s26 }
 0x7bd   : > { %v4421_v57 = vpop.permute.xlu0 %4420 }
 0x7be   : > { %4516 = vst.msk [vmem:[#allocation2 + $0x21] sm:$0xff] %vm4514_vm3, %v4421_v57 }
 0x7c4   : > { %v4291_v48 = vpop.f32.mrb[64].mxu0 }
 0x7c5   : > { %v4370_v20 = vmax.f32 %v4291_v48, 0.0  ;;  %v4293_v43 = vpop.f32.mrb[65].mxu0 }
 0x7c6   : > { %v4294_v34 = vpop.f32.mrb[66].mxu0 }
 0x7c7   : > { %4450 = vrot.lane.b32.xlu1 %v4370_v20, %s5424_s26  ;;  %v4296_v7 = vpop.f32.mrb[67].mxu0  ;;  %v4371_v16 = vmax.f32 %v4294_v34, 0.0  ;;  %v4547_v34 = vld [vmem:[#allocation2 + $0x19] sm:$0xff] }
 0x7c9   : > { %v4423_v55 = vpop.permute.xlu0 %4422 }
 0x7ca   : > { %4517 = vst.msk [vmem:[#allocation2 + $0x31] sm:$0xff] %vm4514_vm3, %v4423_v55 }
 0x7cb   : > { %4452 = vrot.lane.b32.xlu1 %v4371_v16, %s5424_s26 }
 0x7cd   : > { %v4425_v17 = vpop.permute.xlu0 %4424 }
 0x7ce   : > { %4518 = vst.msk [vmem:[#allocation2 + $0x39] sm:$0xff] %vm4514_vm3, %v4425_v17  ;;  %v4548_v17 = vld [vmem:[#allocation2 + $0x21] sm:$0xff] }
 0x7d4   : > { %v4299_v18 = vpop.f32.mrb[68].mxu0 }
 0x7d5   : > { %v4372_v58 = vmax.f32 %v4299_v18, 0.0  ;;  %v4301_v42 = vpop.f32.mrb[69].mxu0 }
 0x7d6   : > { %v4302_v15 = vpop.f32.mrb[70].mxu0 }
 0x7d7   : > { %4454 = vrot.lane.b32.xlu1 %v4372_v58, %s5424_s26  ;;  %v4304_v21 = vpop.f32.mrb[71].mxu0  ;;  %v4373_v19 = vmax.f32 %v4302_v15, 0.0  ;;  %v4549_v15 = vld [vmem:[#allocation2 + $0x31] sm:$0xff] }
 0x7d9   : > { %v4427_v45 = vpop.permute.xlu0 %4426 }
 0x7da   : > { %4519 = vst.msk [vmem:[#allocation2 + $0x49] sm:$0xff] %vm4514_vm3, %v4427_v45  ;;  %v4550_v45 = vld [vmem:[#allocation2 + $0x39] sm:$0xff] }
 0x7db   : > { %4456 = vrot.lane.b32.xlu1 %v4373_v19, %s5424_s26 }
 0x7dd   : > { %v4429_v63 = vpop.permute.xlu0 %4428 }
 0x7de   : > { %4520 = vst.msk [vmem:[#allocation2 + $0x51] sm:$0xff] %vm4514_vm3, %v4429_v63 }
 0x7e4   : > { %v4307_v50 = vpop.f32.mrb[72].mxu0 }
 0x7e5   : > { %v4374_v49 = vmax.f32 %v4307_v50, 0.0  ;;  %v4309_v14 = vpop.f32.mrb[73].mxu0 }
 0x7e6   : > { %v4310_v23 = vpop.f32.mrb[74].mxu0  ;;  %v4551_v14 = vld [vmem:[#allocation2 + $0x49] sm:$0xff] }
 0x7e7   : > { %4458 = vrot.lane.b32.xlu1 %v4374_v49, %s5424_s26  ;;  %v4312_v40 = vpop.f32.mrb[75].mxu0  ;;  %v4375_v0 = vmax.f32 %v4310_v23, 0.0 }
 0x7e9   : > { %v4431_v36 = vpop.permute.xlu0 %4430 }
 0x7ea   : > { %4521 = vst.msk [vmem:[#allocation2 + $0x61] sm:$0xff] %vm4514_vm3, %v4431_v36  ;;  %v4552_v36 = vld [vmem:[#allocation2 + $0x51] sm:$0xff] }
 0x7eb   : > { %4460 = vrot.lane.b32.xlu1 %v4375_v0, %s5424_s26 }
 0x7ed   : > { %v4433_v2 = vpop.permute.xlu0 %4432 }
 0x7ee   : > { %4522 = vst.msk [vmem:[#allocation2 + $0x69] sm:$0xff] %vm4514_vm3, %v4433_v2 }
 0x7f0   : > { %v4315_v29 = vpop.f32.mrb[76].mxu0 }
 0x7f1   : > { %v4376_v28 = vmax.f32 %v4315_v29, 0.0  ;;  %v4317_v53 = vpop.f32.mrb[77].mxu0 }
 0x7f2   : > { %v4318_v5 = vpop.f32.mrb[78].mxu0 }
 0x7f3   : > { %4462 = vrot.lane.b32.xlu1 %v4376_v28, %s5424_s26  ;;  %v4320_v25 = vpop.f32.mrb[79].mxu0  ;;  %v4377_v22 = vmax.f32 %v4318_v5, 0.0  ;;  %v4553_v28 = vld [vmem:[#allocation2 + $0x61] sm:$0xff] }
 0x7f5   : > { %v4554_v25 = vld [vmem:[#allocation2 + $0x69] sm:$0xff] }
 0x7f7   : > { %4464 = vrot.lane.b32.xlu1 %v4377_v22, %s5424_s26 }
 0x7f9   : > { %v4435_v54 = vpop.permute.xlu0 %4434 }
 0x7fa   : > { %4523 = vst.msk [vmem:[#allocation2 + $0x79] sm:$0xff] %vm4514_vm3, %v4435_v54 }
 0x7fd   : > { %v4437_v39 = vpop.permute.xlu0 %4436 }
 0x7fe   : > { %4524 = vst.msk [vmem:[#allocation2 + $0x81] sm:$0xff] %vm4514_vm3, %v4437_v39 }
 0x800   : > { %v4323_v27 = vpop.f32.mrb[80].mxu0 }
 0x801   : > { %v4378_v8 = vmax.f32 %v4323_v27, 0.0  ;;  %v4325_v26 = vpop.f32.mrb[81].mxu0  ;;  %v4555_v27 = vld [vmem:[#allocation2 + $0x79] sm:$0xff] }
 0x802   : > { %v4326_v31 = vpop.f32.mrb[82].mxu0 }
 0x803   : > { %4466 = vrot.lane.b32.xlu1 %v4378_v8, %s5424_s26  ;;  %v4328_v61 = vpop.f32.mrb[83].mxu0  ;;  %v4379_v59 = vmax.f32 %v4326_v31, 0.0 }
 0x805   : > { %v4556_v31 = vld [vmem:[#allocation2 + $0x81] sm:$0xff] }
 0x807   : > { %4468 = vrot.lane.b32.xlu1 %v4379_v59, %s5424_s26 }
 0x809   : > { %v4439_v47 = vpop.permute.xlu0 %4438 }
 0x80a   : > { %4525 = vst.msk [vmem:[#allocation2 + $0x91] sm:$0xff] %vm4514_vm3, %v4439_v47 }
 0x80d   : > { %v4441_v51 = vpop.permute.xlu0 %4440 }
 0x80e   : > { %4526 = vst.msk [vmem:[#allocation2 + $0x99] sm:$0xff] %vm4514_vm3, %v4441_v51 }
 0x819   : > { %v4443_v62 = vpop.permute.xlu0 %4442 }
 0x81a   : > { %4527 = vst.msk [vmem:[#allocation2 + $0xa9] sm:$0xff] %vm4514_vm3, %v4443_v62  ;;  %v4331_v13 = vpop.f32.mrb[84].mxu0 }
 0x81b   : > { %v4380_v10 = vmax.f32 %v4331_v13, 0.0  ;;  %v4333_v32 = vpop.f32.mrb[85].mxu0  ;;  %v4557_v13 = vld [vmem:[#allocation2 + $0x91] sm:$0xff] }
 0x81c   : > { %v4334_v44 = vpop.f32.mrb[86].mxu0 }
 0x81d   : > { %4470 = vrot.lane.b32.xlu1 %v4380_v10, %s5424_s26  ;;  %v4336_v41 = vpop.f32.mrb[87].mxu0  ;;  %v4445_v1 = vpop.permute.xlu0 %4444  ;;  %v4381_v9 = vmax.f32 %v4334_v44, 0.0 }
 0x81e   : > { %4528 = vst.msk [vmem:[#allocation2 + $0xb1] sm:$0xff] %vm4514_vm3, %v4445_v1  ;;  %v4558_v41 = vld [vmem:[#allocation2 + $0x99] sm:$0xff] }
 0x820   : > { %v4339_v30 = vpop.f32.mrb[64].mxu1 }
 0x821   : > { %4472 = vrot.lane.b32.xlu1 %v4381_v9, %s5424_s26  ;;  %v4341_v12 = vpop.f32.mrb[65].mxu1  ;;  %v4382_v11 = vmax.f32 %v4339_v30, 0.0  ;;  %v4559_v30 = vld [vmem:[#allocation2 + $0xa9] sm:$0xff] }
 0x822   : > { %v4342_v37 = vpop.f32.mrb[66].mxu1 }
 0x823   : > { %v4344_v46 = vpop.f32.mrb[67].mxu1  ;;  %v4383_v4 = vmax.f32 %v4342_v37, 0.0 }
 0x825   : > { %4474 = vrot.lane.b32.xlu1 %v4382_v11, %s5424_s26  ;;  %v4560_v46 = vld [vmem:[#allocation2 + $0xb1] sm:$0xff] }
 0x829   : > { %4476 = vrot.lane.b32.xlu1 %v4383_v4, %s5424_s26  ;;  %v4447_v33 = vpop.permute.xlu0 %4446 }
 0x82a   : > { %4529 = vst.msk [vmem:[#allocation2 + $0xc1] sm:$0xff] %vm4514_vm3, %v4447_v33 }
 0x82b   : > { %v4347_v24 = vpop.f32.mrb[68].mxu1 }
 0x82c   : > { %v4384_v38 = vmax.f32 %v4347_v24, 0.0  ;;  %v4349_v56 = vpop.f32.mrb[69].mxu1 }
 0x82d   : > { %v4350_v35 = vpop.f32.mrb[70].mxu1  ;;  %v4449_v6 = vpop.permute.xlu0 %4448 }
 0x82e   : > { %4530 = vst.msk [vmem:[#allocation2 + $0xc9] sm:$0xff] %vm4514_vm3, %v4449_v6  ;;  %4478 = vrot.lane.b32.xlu1 %v4384_v38, %s5424_s26  ;;  %v4352_v60 = vpop.f32.mrb[71].mxu1  ;;  %v4385_v52 = vmax.f32 %v4350_v35, 0.0 }
 0x831   : > { %v4561_v38 = vld [vmem:[#allocation2 + $0xc1] sm:$0xff] }
 0x832   : > { %4480 = vrot.lane.b32.xlu1 %v4385_v52, %s5424_s26  ;;  %s4709_s26 = sshll.u32 %s296_s9, 4  ;;  %s7726_s26 = int_to_ptr.vmem [resolvable:$true] %s4709_s26 }
 0x833   : > { %s5338_s6 = scalar_lea.vmem %s7726_s26, 256 }
 0x834   : > { %p5339_p6 = scmp.ne.s32.totalorder %s7726_s26, %s5338_s6 }
 0x835   : > { %v4562_v6 = vld [vmem:[#allocation2 + $0xc9] sm:$0xff] }
 0x836   : > { %p5340_p7 = pnand %p5339_p6, %p7791_p5 }
 0x838   : > { %p5341_p9 = pneg %p5340_p7 }
 0x839   : > { %v4451_v3 = vpop.permute.xlu1 %4450 }
 0x83a   : > { %4531 = vst.msk [vmem:[#allocation2 + $0xd9] sm:$0xff] %vm4514_vm3, %v4451_v3 }
 0x83d   : > { %v4453_v57 = vpop.permute.xlu1 %4452 }
 0x83e   : > { %4532 = vst.msk [vmem:[#allocation2 + $0xe1] sm:$0xff] %vm4514_vm3, %v4453_v57 }
 0x841   : > { %v4563_v43 = vld [vmem:[#allocation2 + $0xd9] sm:$0xff] }
 0x842   : > { %v5114_v16 = vpack.i.bf16 %v4547_v34, %v4563_v43 }
 0x845   : > { %v4564_v55 = vld [vmem:[#allocation2 + $0xe1] sm:$0xff] }
 0x846   : > { %v5116_v58 = vpack.i.bf16 %v4548_v17, %v4564_v55 }
 0x849   : > { %v4455_v48 = vpop.permute.xlu1 %4454 }
 0x84a   : > { %4533 = vst.msk [vmem:[#allocation2 + $0xf1] sm:$0xff] %vm4514_vm3, %v4455_v48 }
 0x84d   : > { %v4457_v20 = vpop.permute.xlu1 %4456 }
 0x84e   : > { %4534 = vst.msk [vmem:[#allocation2 + $0xf9] sm:$0xff] %vm4514_vm3, %v4457_v20 }
 0x851   : > { %v4565_v42 = vld [vmem:[#allocation2 + $0xf1] sm:$0xff] }
 0x852   : > { %v5118_v21 = vpack.i.bf16 %v4549_v15, %v4565_v42 }
 0x855   : > { %v4566_v19 = vld [vmem:[#allocation2 + $0xf9] sm:$0xff] }
 0x856   : > { %v5120_v50 = vpack.i.bf16 %v4550_v45, %v4566_v19  ;;  %v4647_v45 = vld [vmem:[#allocation11] sm:$0xf] }
 0x859   : > { %v4459_v7 = vpop.permute.xlu1 %4458 }
 0x85a   : > { %4535 = vst.msk [vmem:[#allocation2 + $0x109] sm:$0xff] %vm4514_vm3, %v4459_v7 }
 0x85b   : > { %5115 = vxpose.xlu1.b32.start [1/16] (narrow) %v5114_v16, 32 }
 0x85d   : > { %v4461_v18 = vpop.permute.xlu1 %4460 }
 0x85e   : > { %4536 = vst.msk [vmem:[#allocation2 + $0x111] sm:$0xff] %vm4514_vm3, %v4461_v18 }
 0x85f   : > { %5117 = vxpose.xlu1.b32.cont [2/16] (narrow) %v5116_v58, 32 }
 0x861   : > { %v4567_v49 = vld [vmem:[#allocation2 + $0x109] sm:$0xff] }
 0x862   : > { %v5122_v40 = vpack.i.bf16 %v4551_v14, %v4567_v49 }
 0x863   : > { %5119 = vxpose.xlu1.b32.cont [3/16] (narrow) %v5118_v21, 32 }
 0x865   : > { %v4463_v63 = vpop.permute.xlu1 %4462  ;;  %v4568_v0 = vld [vmem:[#allocation2 + $0x111] sm:$0xff] }
 0x866   : > { %4537 = vst.msk [vmem:[#allocation2 + $0x121] sm:$0xff] %vm4514_vm3, %v4463_v63  ;;  %v5124_v2 = vpack.i.bf16 %v4552_v36, %v4568_v0 }
 0x867   : > { %5121 = vxpose.xlu1.b32.cont [4/16] (narrow) %v5120_v50, 32  ;;  %v5194_v50 = vld [vmem:[%s5698_s13] sm:$0xff] }
 0x869   : > { %v4465_v23 = vpop.permute.xlu1 %4464 }
 0x86a   : > { %4538 = vst.msk [vmem:[#allocation2 + $0x129] sm:$0xff] %vm4514_vm3, %v4465_v23  ;;  %v5195_v23 = vld [vmem:[%s5698_s13 + $0x8] sm:$0xff]  ;;  %s5436_s13 = smov [#allocation12]  }
 0x86b   : > { %5123 = vxpose.xlu1.b32.cont [5/16] (narrow) %v5122_v40, 32  ;;  %s5342_s8 = sshll.u32 %s5436_s13, 4  ;;  %s5343_s8 = int_to_ptr.vmem [resolvable:$false] %s5342_s8 }
 0x86c   : > { %s5344_s14 = scalar_lea.vmem %s5343_s8, 512  ;;  %p5345_p12 = scmp.lt.s32.totalorder %s7726_s26, %s5343_s8 }
 0x86d   : > { %v4569_v29 = vld [vmem:[#allocation2 + $0x121] sm:$0xff]  ;;  %p5346_p3 = scmp.lt.s32.totalorder %s5344_s14, %s5338_s6 }
 0x86e   : > { %v5126_v53 = vpack.i.bf16 %v4553_v28, %v4569_v29 }
 0x86f   : > { %5125 = vxpose.xlu1.b32.cont [6/16] (narrow) %v5124_v2, 32  ;;  %p5347_p13 = por %p5346_p3, %p5345_p12 }
 0x871   : > { %v4570_v5 = vld [vmem:[#allocation2 + $0x129] sm:$0xff]  ;;  %p5348_p0 = pnand %p5347_p13, %p5341_p9 }
 0x872   : > { %v5128_v54 = vpack.i.bf16 %v4554_v25, %v4570_v5 }
 0x873   : > { %5127 = vxpose.xlu1.b32.cont [7/16] (narrow) %v5126_v53, 32 }
 0x875   : > { %v4467_v22 = vpop.permute.xlu1 %4466 }
 0x876   : > { %4539 = vst.msk [vmem:[#allocation2 + $0x139] sm:$0xff] %vm4514_vm3, %v4467_v22 }
 0x877   : > { %5129 = vxpose.xlu1.b32.cont [8/16] (narrow) %v5128_v54, 32 }
 0x879   : > { %v4469_v39 = vpop.permute.xlu1 %4468 }
 0x87a   : > { %4540 = vst.msk [vmem:[#allocation2 + $0x141] sm:$0xff] %vm4514_vm3, %v4469_v39 }
 0x87d   : > { %v4571_v8 = vld [vmem:[#allocation2 + $0x139] sm:$0xff] }
 0x87e   : > { %v5130_v26 = vpack.i.bf16 %v4555_v27, %v4571_v8 }
 0x880   : > { %5131 = vxpose.xlu1.b32.cont [9/16] (narrow) %v5130_v26, 32 }
 0x881   : > { %v4572_v61 = vld [vmem:[#allocation2 + $0x141] sm:$0xff] }
 0x882   : > { %v5132_v59 = vpack.i.bf16 %v4556_v31, %v4572_v61 }
 0x884   : > { %5133 = vxpose.xlu1.b32.cont [10/16] (narrow) %v5132_v59, 32 }
 0x88f   : > { %v4471_v47 = vpop.permute.xlu1 %4470 }
 0x890   : > { %4541 = vst.msk [vmem:[#allocation2 + $0x151] sm:$0xff] %vm4514_vm3, %v4471_v47 }
 0x893   : > { %v4473_v51 = vpop.permute.xlu1 %4472 }
 0x894   : > { %4542 = vst.msk [vmem:[#allocation2 + $0x159] sm:$0xff] %vm4514_vm3, %v4473_v51 }
 0x897   : > { %v4475_v62 = vpop.permute.xlu1 %4474  ;;  %v4573_v10 = vld [vmem:[#allocation2 + $0x151] sm:$0xff] }
 0x898   : > { %4543 = vst.msk [vmem:[#allocation2 + $0x169] sm:$0xff] %vm4514_vm3, %v4475_v62  ;;  %v5134_v32 = vpack.i.bf16 %v4557_v13, %v4573_v10 }
 0x89a   : > { %5135 = vxpose.xlu1.b32.cont [11/16] (narrow) %v5134_v32, 32 }
 0x89b   : > { %v4477_v44 = vpop.permute.xlu1 %4476  ;;  %v4574_v1 = vld [vmem:[#allocation2 + $0x159] sm:$0xff] }
 0x89c   : > { %4544 = vst.msk [vmem:[#allocation2 + $0x171] sm:$0xff] %vm4514_vm3, %v4477_v44  ;;  %v5136_v9 = vpack.i.bf16 %v4558_v41, %v4574_v1 }
 0x89e   : > { %5137 = vxpose.xlu1.b32.cont [12/16] (narrow) %v5136_v9, 32 }
 0x89f   : > { %v4575_v12 = vld [vmem:[#allocation2 + $0x169] sm:$0xff] }
 0x8a0   : > { %v4479_v37 = vpop.permute.xlu1 %4478  ;;  %v5138_v11 = vpack.i.bf16 %v4559_v30, %v4575_v12 }
 0x8a1   : > { %4545 = vst.msk [vmem:[#allocation2 + $0x181] sm:$0xff] %vm4514_vm3, %v4479_v37 }
 0x8a2   : > { %5139 = vxpose.xlu1.b32.cont [13/16] (narrow) %v5138_v11, 32 }
 0x8a3   : > { %v4576_v4 = vld [vmem:[#allocation2 + $0x171] sm:$0xff] }
 0x8a4   : > { %v4481_v33 = vpop.permute.xlu1 %4480  ;;  %v5140_v24 = vpack.i.bf16 %v4560_v46, %v4576_v4 }
 0x8a5   : > { %4546 = vst.msk [vmem:[#allocation2 + $0x189] sm:$0xff] %vm4514_vm3, %v4481_v33 }
 0x8a6   : > { %5141 = vxpose.xlu1.b32.cont [14/16] (narrow) %v5140_v24, 32 }
 0x8a8   : > { %v4577_v56 = vld [vmem:[#allocation2 + $0x181] sm:$0xff] }
 0x8a9   : > { %v5142_v35 = vpack.i.bf16 %v4561_v38, %v4577_v56 }
 0x8ab   : > { %5143 = vxpose.xlu1.b32.cont [15/16] (narrow) %v5142_v35, 32 }
 0x8ac   : > { %v4578_v60 = vld [vmem:[#allocation2 + $0x189] sm:$0xff] }
 0x8ad   : > { %v5144_v52 = vpack.i.bf16 %v4562_v6, %v4578_v60 }
 0x8af   : > { %5145 = vxpose.xlu1.b32.end [16/16] (narrow) %v5144_v52, 32 }
 0x8f3   : > { %v5146_v3 = vpop.trf.xlu1 }
 0x8f4   : > { %v5150_v57 = vunpack.i.h.bf16 %v5146_v3  ;;  %v5147_v48 = vunpack.i.l.bf16 %v5146_v3 }
 0x8f7   : > { %v5151_v20 = vpop.trf.xlu1 }
 0x8f8   : > { %v5155_v43 = vunpack.i.h.bf16 %v5151_v20  ;;  %v5152_v34 = vunpack.i.l.bf16 %v5151_v20 }
 0x8fa   : > { %v4644_v7 = vpack.c.bf16 %v5152_v34, %v5147_v48  ;;  %v4643_v16 = vpack.c.bf16 %v5155_v43, %v5150_v57 }
 0x8fb   : > { %v5156_v55 = vpop.trf.xlu1 }
 0x8fc   : > { %4651 = vmatprep.subr.bf16.mxu1 %v4644_v7  ;;  %v5160_v17 = vunpack.i.h.bf16 %v5156_v55  ;;  %v5157_v18 = vunpack.i.l.bf16 %v5156_v55 }
 0x8fd   : > { %4652 = vmatpush1.bf16.msra.mxu1 %v4643_v16 }
 0x8ff   : > { %v5161_v58 = vpop.trf.xlu1 }
 0x900   : > { %v5165_v42 = vunpack.i.h.bf16 %v5161_v58  ;;  %v5162_v15 = vunpack.i.l.bf16 %v5161_v58 }
 0x902   : > { %v4645_v21 = vpack.c.bf16 %v5165_v42, %v5160_v17  ;;  %v4646_v19 = vpack.c.bf16 %v5162_v15, %v5157_v18 }
 0x904   : > { %4653 = vmatprep.subr.bf16.mxu1 %v4646_v19 }
 0x905   : > { %4654 = vmatpush1.bf16.msra.mxu1 %v4645_v21 }
 0x908   : > { %4910 = vmatmul.mubr.msk.bf16.vlgmr.msra.gmra.mrb[72].mxu1 %vm300_vm0, %v4647_v45 }
 0x9db   : > { %v4685_v63 = vpop.f32.mrb[72].mxu1 }
 0x9dc   : > { %v4686_v49 = vadd.f32 %v5194_v50, %v4685_v63  ;;  %v4687_v14 = vpop.f32.mrb[73].mxu1 }
 0x9dd   : > { %v4688_v40 = vadd.f32 %v5195_v23, %v4687_v14  ;;  %v4689_v0 = vpop.f32.mrb[74].mxu1 }
 0x9de   : > { %4692 = vst [vmem:[%s296_s9] sm:$0xff] %v4686_v49  ;;  %v4690_v36 = vpop.f32.mrb[75].mxu1 }
 0x9df   : > { %4693 = vst [vmem:[%s296_s9 + $0x8] sm:$0xff] %v4688_v40 }
 0x9e0   : > { %5351 = shalt.err (!%p5348_p0)
}
 0x9e1   : > { %s5352_s11 = scalar_lea.hbm %s7724_s16, 256  ;;  %s5356_s22 = scalar_lea.hbm %s7773_s5, 512 }
 0x9e2   : > { %p5353_p2 = scmp.ne.s32.totalorder %s7724_s16, %s5352_s11  ;;  %p5357_p10 = scmp.lt.u32.totalorder %s7724_s16, %s7773_s5 }
 0x9e3   : > { %p5358_p11 = scmp.lt.u32.totalorder %s5356_s22, %s5352_s11  ;;  %p5360_p6 = scmp.lt.u32.totalorder %s5352_s11, %s7724_s16 }
 0x9e4   : > { %p5354_p8 = pnand %p5353_p2, %p7791_p5 }
 0x9e5   : > { %p5359_p1 = por %p5358_p11, %p5357_p10 }
 0x9e6   : > { %p5355_p4 = pneg %p5354_p8 }
 0x9e7   : > { %p5361_p7 = por %p5360_p6, %p5359_p1 }
 0x9e9   : > { %p5362_p9 = pnand %p5361_p7, %p5355_p4 }
 0x9eb   : > { %5365 = shalt.err (!%p5362_p9)
}
 0x9ec   : > { %5028 = dma.vmem_to_hbm [thread:$0]  (%p7791_p5), %s7726_s26, 256, %s7724_s16, %s4695_s24  }
 0x9ed PF: > { %s4721_s25 = sand.u32 1, %s5400_s18   ;;  %p7792_p12 = scmp.ne.s32.totalorder %s7784_s12, 0 }
 0x9ee   : > { %p7793_p3 = scmp.ge.s32.totalorder %s5412_s21, 2  ;;  %s4722_s9 = scalar_lea.sflag [#allocation5], %s4721_s25 }
 0x9f0   : > { %p5048_p13 = pnand %p7793_p3, %p7792_p12 }
 0x9f2   : > { %5395 = dma.done.wait (!%p5048_p13), %s4722_s9, 256  }
 0x9f3   : > { %5397 = vsyncadd (!%p5048_p13), %s4722_s9, 4294967040  ;;  %p20_p0 = scmp.ge.s32.totalorder %s5616_s28, 4   ;;  %s7794_s18 = smov %s5404_s19 }
 0x9f4   : > { %s7795_s19 = smov %s5408_s20  ;;  %s7796_s20 = smov %s5627_s27 }
 0x9f5   : > { %s7797_s21 = smov %s5616_s28  ;;  %22 = sbr.rel (!%p20_p0) target bundleno = 7 (0x7), region = 103 }
 0x9fc   :  { %4727 = vsyncpa [#allocation4], 1 }
 0x9fd   :  { %4729 = vsyncpa [#allocation4 + $0x1], 1 }
 0x9fe   :  { %4730 = vsyncpa [#allocation7], 1 }
 0x9ff   :  { %4731 = vsyncpa [#allocation10], 1 }
 0xa00   :  { %4732 = vsyncpa [#allocation5], 1 }
 0xa01   :  { %4734 = vsyncpa [#allocation5 + $0x1], 1 }

</bundles_post_ra>
